<compile_context>
chip_gen: v7x
topology: tpu7x:2x2x1
jax: 0.10.0
libtpu: 0.0.40
codegen_flags: <defaults>
</compile_context>

<pallas_src>
import numpy as np

import jax
import jax.numpy as jnp
from jax.experimental import pallas as pl
from jax.experimental.pallas import tpu as pltpu


# ---------------------------------------------------------------------------
# Pallas kernel 1: the full stacked LSTM in a single call.
#   grid = (1,); time recurrence = unrolled fori_loop inside the kernel.
#   args: x2d, w_ih0, w_hh0, b0, [w_cat_l, b_l]*(L-1), h_out, gx_scratch
# ---------------------------------------------------------------------------
def _make_lstm_stack_kernel(num_layers, T, Bp, H):
    def kernel(*args):
        x_ref = args[0]                                   # (T*Bp, E)   f32
        wih0_ref, whh0_ref, b0_ref = args[1], args[2], args[3]
        upper = [(args[4 + 2 * i], args[5 + 2 * i]) for i in range(num_layers - 1)]
        h_out_ref = args[4 + 2 * (num_layers - 1)]        # (T*Bp, H)   f32
        gx_scr = args[5 + 2 * (num_layers - 1)]           # (T*Bp, 4H)  f32 scratch

        # ---- Prologue: hoisted layer-0 input projection for ALL timesteps at once (MXU).
        x2d = x_ref[...].astype(jnp.bfloat16)
        gx_scr[...] = (jnp.dot(x2d, wih0_ref[...], preferred_element_type=jnp.float32)
                       + b0_ref[...])

        def gates_to_hc(g, c_prev):
            # PyTorch gate order i | f | g | o ; all slices are 128-lane aligned.
            i_g = jax.nn.sigmoid(g[:, 0 * H:1 * H])
            f_g = jax.nn.sigmoid(g[:, 1 * H:2 * H])
            g_g = jnp.tanh(g[:, 2 * H:3 * H])
            o_g = jax.nn.sigmoid(g[:, 3 * H:4 * H])
            c_new = f_g * c_prev + i_g * g_g
            return o_g * jnp.tanh(c_new), c_new

        zero = jnp.zeros((Bp, H), jnp.float32)
        init = tuple(zero for _ in range(2 * num_layers))     # (h_0, c_0, h_1, c_1, ...)

        def step(t, carry):
            carry = list(carry)
            row = t * Bp                                       # Bp is a multiple of 8

            # Layer 0: only the recurrent matmul is on the serial path.
            g0 = (gx_scr[pl.ds(row, Bp), :]
                  + jnp.dot(carry[0].astype(jnp.bfloat16), whh0_ref[...],
                            preferred_element_type=jnp.float32))
            h_l, c_l = gates_to_hc(g0, carry[1])
            carry[0], carry[1] = h_l, c_l

            # Upper layers: single stacked [x ; h_prev] @ (2H, 4H) matmul (K = 2H).
            for l, (wcat_ref, bl_ref) in enumerate(upper, start=1):
                xh = jnp.concatenate([h_l, carry[2 * l]], axis=-1).astype(jnp.bfloat16)
                g = (jnp.dot(xh, wcat_ref[...], preferred_element_type=jnp.float32)
                     + bl_ref[...])
                h_l, c_l = gates_to_hc(g, carry[2 * l + 1])
                carry[2 * l], carry[2 * l + 1] = h_l, c_l

            h_out_ref[pl.ds(row, Bp), :] = h_l
            return tuple(carry)

        unroll = True if T <= 32 else 8
        jax.lax.fori_loop(0, T, step, init, unroll=unroll)

    return kernel


def lstm_stack_pallas(x2d, layers, T, Bp):
    """x2d: (T*Bp, E) f32 time-major (batch padded to Bp).  Returns (T*Bp, H) f32 top-layer h."""
    E = x2d.shape[1]
    H = layers[0]["w_hh"].shape[0]
    L = len(layers)

    operands = [x2d, layers[0]["w_ih"], layers[0]["w_hh"], layers[0]["b"]]
    in_specs = [
        pl.BlockSpec((T * Bp, E), lambda i: (0, 0)),
        pl.BlockSpec((E, 4 * H), lambda i: (0, 0)),
        pl.BlockSpec((H, 4 * H), lambda i: (0, 0)),
        pl.BlockSpec((1, 4 * H), lambda i: (0, 0)),
    ]
    for layer in layers[1:]:
        operands += [layer["w_cat"], layer["b"]]
        in_specs += [pl.BlockSpec((2 * H, 4 * H), lambda i: (0, 0)),
                     pl.BlockSpec((1, 4 * H), lambda i: (0, 0))]

    return pl.pallas_call(
        _make_lstm_stack_kernel(L, T, Bp, H),
        out_shape=jax.ShapeDtypeStruct((T * Bp, H), jnp.float32),
        grid=(1,),
        in_specs=in_specs,
        out_specs=pl.BlockSpec((T * Bp, H), lambda i: (0, 0)),
        scratch_shapes=[pltpu.VMEM((T * Bp, 4 * H), jnp.float32)],   # hoisted input gates
        compiler_params=pltpu.CompilerParams(dimension_semantics=("arbitrary",)),
    )(*operands)


# ---------------------------------------------------------------------------
# Pallas kernel 2: fused Linear (bf16 matmul + f32 bias), M x N tiled, parallel grid.
# ---------------------------------------------------------------------------
def _linear_kernel(x_ref, w_ref, b_ref, o_ref):
    o_ref[...] = (jnp.dot(x_ref[...], w_ref[...], preferred_element_type=jnp.float32)
                  + b_ref[...])


def linear_pallas(x, w, b, tile_m=512, tile_n=2048):
    """x: (P, H), w: (H, V), b: (V,).  Returns (P, V) f32 logits."""
    P, H = x.shape
    V = w.shape[1]
    xb = x.astype(jnp.bfloat16)
    wb = w.astype(jnp.bfloat16)
    b2 = b.reshape(1, V).astype(jnp.float32)

    bm = ((P + 7) // 8) * 8 if P <= tile_m else tile_m
    Pp = ((P + bm - 1) // bm) * bm
    if Pp != P:
        xb = jnp.pad(xb, ((0, Pp - P), (0, 0)))

    if V <= tile_n:
        bn, Vp = V, V
    else:
        bn = tile_n
        Vp = ((V + bn - 1) // bn) * bn
        if Vp != V:
            wb = jnp.pad(wb, ((0, 0), (0, Vp - V)))
            b2 = jnp.pad(b2, ((0, 0), (0, Vp - V)))

    out = pl.pallas_call(
        _linear_kernel,
        out_shape=jax.ShapeDtypeStruct((Pp, Vp), jnp.float32),
        grid=(Pp // bm, Vp // bn),
        in_specs=[
            pl.BlockSpec((bm, H), lambda i, j: (i, 0)),
            pl.BlockSpec((H, bn), lambda i, j: (0, j)),
            pl.BlockSpec((1, bn), lambda i, j: (0, j)),
        ],
        out_specs=pl.BlockSpec((bm, bn), lambda i, j: (i, j)),
        compiler_params=pltpu.CompilerParams(
            dimension_semantics=("parallel", "parallel")),
    )(xb, wb, b2)
    return out[:P, :V]


# ---------------------------------------------------------------------------
# pack_padded_sequence bookkeeping (static, resolved at trace time)
# ---------------------------------------------------------------------------
def _packed_indices(lengths, batch, stride):
    lengths = tuple(int(l) for l in lengths)
    assert len(lengths) == batch
    assert all(lengths[i] >= lengths[i + 1] for i in range(batch - 1)), \
        "lengths must be sorted descending (pack_padded_sequence enforce_sorted=True)"
    assert min(lengths) >= 1
    idx = []
    for t in range(lengths[0]):
        bs_t = sum(1 for L in lengths if L > t)          # batch_sizes[t]
        idx.extend(t * stride + b for b in range(bs_t))  # rows in the (T, Bp) time-major slab
    return np.asarray(idx, dtype=np.int32)


# ---------------------------------------------------------------------------
# Deterministic synthetic parameter init (PyTorch LSTM layout, pre-transposed / pre-folded)
# ---------------------------------------------------------------------------
class ParamGen:
    def __init__(self, seed=0):
        self._key = jax.random.PRNGKey(seed)

    def normal(self, shape, std=0.05):
        self._key, sub = jax.random.split(self._key)
        return std * jax.random.normal(sub, shape, dtype=jnp.float32)


def init_decoder_params(embed_size, hidden_size, vocab_size, num_layers, seed=0):
    gen = ParamGen(seed)
    params = {"embed": gen.normal((vocab_size, embed_size), std=0.1)}
    layers = []
    for l in range(num_layers):
        in_size = embed_size if l == 0 else hidden_size
        w_ih = gen.normal((in_size, 4 * hidden_size))            # (in, 4H), gates i|f|g|o
        w_hh = gen.normal((hidden_size, 4 * hidden_size))
        bias = (gen.normal((4 * hidden_size,), 0.01)
                + gen.normal((4 * hidden_size,), 0.01)).reshape(1, 4 * hidden_size)
        if l == 0:
            layers.append({"w_ih": w_ih.astype(jnp.bfloat16),
                           "w_hh": w_hh.astype(jnp.bfloat16),
                           "b": bias})
        else:
            # Stacked [w_ih ; w_hh] so the in-kernel [x ; h] matmul is a single MXU push.
            layers.append({"w_cat": jnp.concatenate([w_ih, w_hh], axis=0).astype(jnp.bfloat16),
                           "b": bias})
    params["lstm"] = layers
    params["out_w"] = gen.normal((hidden_size, vocab_size)).astype(jnp.bfloat16)
    params["out_b"] = gen.normal((vocab_size,), 0.01)
    return params


# ---------------------------------------------------------------------------
# Forward pass (mirrors Decoder.forward)
# ---------------------------------------------------------------------------
def decoder_forward(params, features, captions, lengths):
    """features: (B, E) f32, captions: (B, T) int32, lengths: static tuple (sorted desc).
    Returns logits over the packed hidden states: (sum(lengths), vocab)."""
    B, Tcap = captions.shape
    H = params["lstm"][0]["w_hh"].shape[0]
    lengths = tuple(int(l) for l in lengths)
    max_t = lengths[0]
    assert max_t <= Tcap + 1

    # Embedding lookup: data-dependent row gather -> plain XLA (not a matmul hot path).
    emb = jnp.take(params["embed"], captions, axis=0)               # (B, Tcap, E)

    # Prepend features as timestep 0, trim to longest length, go time-major.
    x = jnp.concatenate([features[:, None, :].astype(jnp.float32), emb], axis=1)
    x = x[:, :max_t, :]
    x_seq = jnp.transpose(x, (1, 0, 2))                             # (max_t, B, E)

    # Pad the batch (sublane) dim to a multiple of 8 for full-vreg tiles.
    Bp = ((B + 7) // 8) * 8
    if Bp != B:
        x_seq = jnp.pad(x_seq, ((0, 0), (0, Bp - B), (0, 0)))
    x2d = x_seq.reshape(max_t * Bp, -1)

    # Fused stacked LSTM: one Pallas call, recurrence + layers inside.
    h2d = lstm_stack_pallas(x2d, params["lstm"], max_t, Bp)         # (max_t*Bp, H)

    # pack_padded_sequence: padded rows never influence valid rows (causal LSTM, right pad,
    # no cross-batch mixing), so gathering valid rows in packed order is exact.
    idx = _packed_indices(lengths, B, Bp)
    h_packed = jnp.take(h2d, jnp.asarray(idx), axis=0)              # (sum(lengths), H)

    # Final Linear -> vocab logits (M x N tiled fused matmul + bias kernel).
    return linear_pallas(h_packed, params["out_w"], params["out_b"])


if __name__ == "__main__":
    EMBED_SIZE, HIDDEN_SIZE, VOCAB_SIZE, NUM_LAYERS = 128, 128, 256, 2
    BATCH, CAP_LEN = 4, 8
    LENGTHS = (9, 7, 5, 3)      # per-sequence lengths incl. the feature step, sorted desc

    params = init_decoder_params(EMBED_SIZE, HIDDEN_SIZE, VOCAB_SIZE, NUM_LAYERS, seed=0)

    key = jax.random.PRNGKey(0)
    kf, kc = jax.random.split(key)
    features = jax.random.normal(kf, (BATCH, EMBED_SIZE), dtype=jnp.float32)
    captions = jax.random.randint(kc, (BATCH, CAP_LEN), 0, VOCAB_SIZE, dtype=jnp.int32)

    fwd = jax.jit(decoder_forward, static_argnames=("lengths",))
    out = fwd(params, features, captions, lengths=LENGTHS)
    out = jax.block_until_ready(out)

    assert out.shape == (sum(LENGTHS), VOCAB_SIZE), out.shape
    assert bool(jnp.all(jnp.isfinite(out)))
    print("KERNEL_OK")
</pallas_src>

<mosaic_0001>
module attributes {stable_mosaic.version = 11 : i64} {
  func.func @_linear_kernel(%arg0: i32, %arg1: i32, %arg2: memref<24x128xbf16, #tpu.memory_space<vmem>>, %arg3: memref<128x256xbf16, #tpu.memory_space<vmem>>, %arg4: memref<1x256xf32, #tpu.memory_space<vmem>>, %arg5: memref<24x256xf32, #tpu.memory_space<vmem>>) attributes {dimension_semantics = [#tpu.dimension_semantics<parallel>, #tpu.dimension_semantics<parallel>], iteration_bounds = array<i64: 1, 1>, scalar_prefetch = 0 : i64, scratch_operands = 0 : i64, tpu.core_type = #tpu.core_type<tc>, window_params = [{transform_indices = @transform_0, window_bounds = array<i64: 24, 128>}, {transform_indices = @transform_1, window_bounds = array<i64: 128, 256>}, {transform_indices = @transform_2, window_bounds = array<i64: 1, 256>}, {transform_indices = @transform_3, window_bounds = array<i64: 24, 256>}]} {
    %c0 = arith.constant 0 : index
    %c0_0 = arith.constant 0 : index
    %0 = vector.load %arg2[%c0, %c0_0] : memref<24x128xbf16, #tpu.memory_space<vmem>>, vector<24x128xbf16>
    %c0_1 = arith.constant 0 : index
    %c0_2 = arith.constant 0 : index
    %1 = vector.load %arg3[%c0_1, %c0_2] : memref<128x256xbf16, #tpu.memory_space<vmem>>, vector<128x256xbf16>
    %cst = arith.constant dense<0.000000e+00> : vector<24x256xf32>
    %2 = tpu.matmul %0, %1, %cst {dimension_numbers = #tpu.dot_dimension_numbers<[1], [0], [0], [1], [0, 0, 1, 1], [], []>} : vector<24x128xbf16>, vector<128x256xbf16>, vector<24x256xf32> -> vector<24x256xf32>
    %c0_3 = arith.constant 0 : index
    %c0_4 = arith.constant 0 : index
    %3 = vector.load %arg4[%c0_3, %c0_4] : memref<1x256xf32, #tpu.memory_space<vmem>>, vector<1x256xf32>
    %4 = vector.broadcast %3 : vector<1x256xf32> to vector<24x256xf32>
    %5 = arith.addf %2, %4 : vector<24x256xf32>
    %c0_5 = arith.constant 0 : index
    %c0_6 = arith.constant 0 : index
    %6 = vector.load %arg5[%c0_5, %c0_6] : memref<24x256xf32, #tpu.memory_space<vmem>>, vector<24x256xf32>
    tpu.vector_store %arg5[%c0_5, %c0_6], %5 {strides = array<i32>} : memref<24x256xf32, #tpu.memory_space<vmem>>, vector<24x256xf32>,
    return
  }
  func.func @transform_0(%arg0: i32, %arg1: i32) -> (i32, i32) {
    %c0_i32 = arith.constant 0 : i32
    %c0_i32_0 = arith.constant 0 : i32
    return %arg0, %c0_i32 : i32, i32
  }
  func.func @transform_1(%arg0: i32, %arg1: i32) -> (i32, i32) {
    %c0_i32 = arith.constant 0 : i32
    %c0_i32_0 = arith.constant 0 : i32
    return %c0_i32, %arg1 : i32, i32
  }
  func.func @transform_2(%arg0: i32, %arg1: i32) -> (i32, i32) {
    %c0_i32 = arith.constant 0 : i32
    %c0_i32_0 = arith.constant 0 : i32
    return %c0_i32, %arg1 : i32, i32
  }
  func.func @transform_3(%arg0: i32, %arg1: i32) -> (i32, i32) {
    %c0_i32 = arith.constant 0 : i32
    return %arg0, %arg1 : i32, i32
  }
}

module attributes {stable_mosaic.version = 11 : i64} {
  func.func @kernel(%arg0: i32, %arg1: memref<72x128xf32, #tpu.memory_space<vmem>>, %arg2: memref<128x512xbf16, #tpu.memory_space<vmem>>, %arg3: memref<128x512xbf16, #tpu.memory_space<vmem>>, %arg4: memref<1x512xf32, #tpu.memory_space<vmem>>, %arg5: memref<256x512xbf16, #tpu.memory_space<vmem>>, %arg6: memref<1x512xf32, #tpu.memory_space<vmem>>, %arg7: memref<72x128xf32, #tpu.memory_space<vmem>>, %arg8: memref<72x512xf32, #tpu.memory_space<vmem>>) attributes {dimension_semantics = [#tpu.dimension_semantics<arbitrary>], iteration_bounds = array<i64: 1>, scalar_prefetch = 0 : i64, scratch_operands = 1 : i64, tpu.core_type = #tpu.core_type<tc>, window_params = [{pipeline_mode = #tpu.pipeline_mode<synchronous>, transform_indices = @transform_0, window_bounds = array<i64: 72, 128>}, {pipeline_mode = #tpu.pipeline_mode<synchronous>, transform_indices = @transform_1, window_bounds = array<i64: 128, 512>}, {pipeline_mode = #tpu.pipeline_mode<synchronous>, transform_indices = @transform_2, window_bounds = array<i64: 128, 512>}, {pipeline_mode = #tpu.pipeline_mode<synchronous>, transform_indices = @transform_3, window_bounds = array<i64: 1, 512>}, {pipeline_mode = #tpu.pipeline_mode<synchronous>, transform_indices = @transform_4, window_bounds = array<i64: 256, 512>}, {pipeline_mode = #tpu.pipeline_mode<synchronous>, transform_indices = @transform_5, window_bounds = array<i64: 1, 512>}, {pipeline_mode = #tpu.pipeline_mode<synchronous>, transform_indices = @transform_6, window_bounds = array<i64: 72, 128>}]} {
    %c0 = arith.constant 0 : index
    %c0_0 = arith.constant 0 : index
    %0 = vector.load %arg1[%c0, %c0_0] : memref<72x128xf32, #tpu.memory_space<vmem>>, vector<72x128xf32>
    %1 = arith.truncf %0 : vector<72x128xf32> to vector<72x128xbf16>
    %c0_1 = arith.constant 0 : index
    %c0_2 = arith.constant 0 : index
    %2 = vector.load %arg2[%c0_1, %c0_2] : memref<128x512xbf16, #tpu.memory_space<vmem>>, vector<128x512xbf16>
    %cst = arith.constant dense<0.000000e+00> : vector<72x512xf32>
    %3 = tpu.matmul %1, %2, %cst {dimension_numbers = #tpu.dot_dimension_numbers<[1], [0], [0], [1], [0, 0, 1, 1], [], []>} : vector<72x128xbf16>, vector<128x512xbf16>, vector<72x512xf32> -> vector<72x512xf32>
    %c0_3 = arith.constant 0 : index
    %c0_4 = arith.constant 0 : index
    %4 = vector.load %arg4[%c0_3, %c0_4] : memref<1x512xf32, #tpu.memory_space<vmem>>, vector<1x512xf32>
    %5 = vector.broadcast %4 : vector<1x512xf32> to vector<72x512xf32>
    %6 = arith.addf %3, %5 : vector<72x512xf32>
    %c0_5 = arith.constant 0 : index
    %c0_6 = arith.constant 0 : index
    %7 = vector.load %arg8[%c0_5, %c0_6] : memref<72x512xf32, #tpu.memory_space<vmem>>, vector<72x512xf32>
    tpu.vector_store %arg8[%c0_5, %c0_6], %6 {strides = array<i32>} : memref<72x512xf32, #tpu.memory_space<vmem>>, vector<72x512xf32>,
    %cst_7 = arith.constant 0.000000e+00 : f32
    %8 = vector.broadcast %cst_7 : f32 to vector<8x128xf32>
    %c0_i32 = arith.constant 0 : i32
    %c8_i32 = arith.constant 8 : i32
    %9 = arith.muli %c0_i32, %c8_i32 : i32
    %10 = arith.index_cast %9 : i32 to index
    %c0_8 = arith.constant 0 : index
    %11 = vector.load %arg8[%10, %c0_8] : memref<72x512xf32, #tpu.memory_space<vmem>>, vector<8x512xf32>
    %12 = arith.truncf %8 : vector<8x128xf32> to vector<8x128xbf16>
    %c0_9 = arith.constant 0 : index
    %c0_10 = arith.constant 0 : index
    %13 = vector.load %arg3[%c0_9, %c0_10] : memref<128x512xbf16, #tpu.memory_space<vmem>>, vector<128x512xbf16>
    %cst_11 = arith.constant dense<0.000000e+00> : vector<8x512xf32>
    %14 = tpu.matmul %12, %13, %cst_11 {dimension_numbers = #tpu.dot_dimension_numbers<[1], [0], [0], [1], [0, 0, 1, 1], [], []>} : vector<8x128xbf16>, vector<128x512xbf16>, vector<8x512xf32> -> vector<8x512xf32>
    %15 = arith.addf %11, %14 : vector<8x512xf32>
    %16 = vector.extract_strided_slice %15 {offsets = [0, 0], sizes = [8, 128], strides = [1, 1]} : vector<8x512xf32> to vector<8x128xf32>
    %17 = arith.negf %16 : vector<8x128xf32>
    %18 = math.exp %17 : vector<8x128xf32>
    %cst_12 = arith.constant 1.000000e+00 : f32
    %19 = vector.broadcast %cst_12 : f32 to vector<8x128xf32>
    %20 = arith.addf %19, %18 : vector<8x128xf32>
    %21 = arith.divf %19, %20 : vector<8x128xf32>
    %22 = vector.extract_strided_slice %15 {offsets = [0, 128], sizes = [8, 128], strides = [1, 1]} : vector<8x512xf32> to vector<8x128xf32>
    %23 = arith.negf %22 : vector<8x128xf32>
    %24 = math.exp %23 : vector<8x128xf32>
    %cst_13 = arith.constant 1.000000e+00 : f32
    %25 = vector.broadcast %cst_13 : f32 to vector<8x128xf32>
    %26 = arith.addf %25, %24 : vector<8x128xf32>
    %27 = arith.divf %25, %26 : vector<8x128xf32>
    %28 = vector.extract_strided_slice %15 {offsets = [0, 256], sizes = [8, 128], strides = [1, 1]} : vector<8x512xf32> to vector<8x128xf32>
    %29 = math.tanh %28 : vector<8x128xf32>
    %30 = vector.extract_strided_slice %15 {offsets = [0, 384], sizes = [8, 128], strides = [1, 1]} : vector<8x512xf32> to vector<8x128xf32>
    %31 = arith.negf %30 : vector<8x128xf32>
    %32 = math.exp %31 : vector<8x128xf32>
    %cst_14 = arith.constant 1.000000e+00 : f32
    %33 = vector.broadcast %cst_14 : f32 to vector<8x128xf32>
    %34 = arith.addf %33, %32 : vector<8x128xf32>
    %35 = arith.divf %33, %34 : vector<8x128xf32>
    %36 = arith.mulf %27, %8 : vector<8x128xf32>
    %37 = arith.mulf %21, %29 : vector<8x128xf32>
    %38 = arith.addf %36, %37 : vector<8x128xf32>
    %39 = math.tanh %38 : vector<8x128xf32>
    %40 = arith.mulf %35, %39 : vector<8x128xf32>
    %41 = tpu.concatenate %40, %8 in 1 : vector<8x128xf32>, vector<8x128xf32> -> vector<8x256xf32>
    %42 = arith.truncf %41 : vector<8x256xf32> to vector<8x256xbf16>
    %c0_15 = arith.constant 0 : index
    %c0_16 = arith.constant 0 : index
    %43 = vector.load %arg5[%c0_15, %c0_16] : memref<256x512xbf16, #tpu.memory_space<vmem>>, vector<256x512xbf16>
    %cst_17 = arith.constant dense<0.000000e+00> : vector<8x512xf32>
    %44 = tpu.matmul %42, %43, %cst_17 {dimension_numbers = #tpu.dot_dimension_numbers<[1], [0], [0], [1], [0, 0, 1, 1], [], []>} : vector<8x256xbf16>, vector<256x512xbf16>, vector<8x512xf32> -> vector<8x512xf32>
    %c0_18 = arith.constant 0 : index
    %c0_19 = arith.constant 0 : index
    %45 = vector.load %arg6[%c0_18, %c0_19] : memref<1x512xf32, #tpu.memory_space<vmem>>, vector<1x512xf32>
    %46 = vector.broadcast %45 : vector<1x512xf32> to vector<8x512xf32>
    %47 = arith.addf %44, %46 : vector<8x512xf32>
    %48 = vector.extract_strided_slice %47 {offsets = [0, 0], sizes = [8, 128], strides = [1, 1]} : vector<8x512xf32> to vector<8x128xf32>
    %49 = arith.negf %48 : vector<8x128xf32>
    %50 = math.exp %49 : vector<8x128xf32>
    %cst_20 = arith.constant 1.000000e+00 : f32
    %51 = vector.broadcast %cst_20 : f32 to vector<8x128xf32>
    %52 = arith.addf %51, %50 : vector<8x128xf32>
    %53 = arith.divf %51, %52 : vector<8x128xf32>
    %54 = vector.extract_strided_slice %47 {offsets = [0, 128], sizes = [8, 128], strides = [1, 1]} : vector<8x512xf32> to vector<8x128xf32>
    %55 = arith.negf %54 : vector<8x128xf32>
    %56 = math.exp %55 : vector<8x128xf32>
    %cst_21 = arith.constant 1.000000e+00 : f32
    %57 = vector.broadcast %cst_21 : f32 to vector<8x128xf32>
    %58 = arith.addf %57, %56 : vector<8x128xf32>
    %59 = arith.divf %57, %58 : vector<8x128xf32>
    %60 = vector.extract_strided_slice %47 {offsets = [0, 256], sizes = [8, 128], strides = [1, 1]} : vector<8x512xf32> to vector<8x128xf32>
    %61 = math.tanh %60 : vector<8x128xf32>
    %62 = vector.extract_strided_slice %47 {offsets = [0, 384], sizes = [8, 128], strides = [1, 1]} : vector<8x512xf32> to vector<8x128xf32>
    %63 = arith.negf %62 : vector<8x128xf32>
    %64 = math.exp %63 : vector<8x128xf32>
    %cst_22 = arith.constant 1.000000e+00 : f32
    %65 = vector.broadcast %cst_22 : f32 to vector<8x128xf32>
    %66 = arith.addf %65, %64 : vector<8x128xf32>
    %67 = arith.divf %65, %66 : vector<8x128xf32>
    %68 = arith.mulf %59, %8 : vector<8x128xf32>
    %69 = arith.mulf %53, %61 : vector<8x128xf32>
    %70 = arith.addf %68, %69 : vector<8x128xf32>
    %71 = math.tanh %70 : vector<8x128xf32>
    %72 = arith.mulf %67, %71 : vector<8x128xf32>
    %73 = arith.index_cast %9 : i32 to index
    %c0_23 = arith.constant 0 : index
    %74 = vector.load %arg7[%73, %c0_23] : memref<72x128xf32, #tpu.memory_space<vmem>>, vector<8x128xf32>
    tpu.vector_store %arg7[%73, %c0_23], %72 {strides = array<i32>} : memref<72x128xf32, #tpu.memory_space<vmem>>, vector<8x128xf32>,
    %c1_i32 = arith.constant 1 : i32
    %c8_i32_24 = arith.constant 8 : i32
    %75 = arith.muli %c1_i32, %c8_i32_24 : i32
    %76 = arith.index_cast %75 : i32 to index
    %c0_25 = arith.constant 0 : index
    %77 = vector.load %arg8[%76, %c0_25] : memref<72x512xf32, #tpu.memory_space<vmem>>, vector<8x512xf32>
    %78 = arith.truncf %40 : vector<8x128xf32> to vector<8x128xbf16>
    %c0_26 = arith.constant 0 : index
    %c0_27 = arith.constant 0 : index
    %79 = vector.load %arg3[%c0_26, %c0_27] : memref<128x512xbf16, #tpu.memory_space<vmem>>, vector<128x512xbf16>
    %cst_28 = arith.constant dense<0.000000e+00> : vector<8x512xf32>
    %80 = tpu.matmul %78, %79, %cst_28 {dimension_numbers = #tpu.dot_dimension_numbers<[1], [0], [0], [1], [0, 0, 1, 1], [], []>} : vector<8x128xbf16>, vector<128x512xbf16>, vector<8x512xf32> -> vector<8x512xf32>
    %81 = arith.addf %77, %80 : vector<8x512xf32>
    %82 = vector.extract_strided_slice %81 {offsets = [0, 0], sizes = [8, 128], strides = [1, 1]} : vector<8x512xf32> to vector<8x128xf32>
    %83 = arith.negf %82 : vector<8x128xf32>
    %84 = math.exp %83 : vector<8x128xf32>
    %cst_29 = arith.constant 1.000000e+00 : f32
    %85 = vector.broadcast %cst_29 : f32 to vector<8x128xf32>
    %86 = arith.addf %85, %84 : vector<8x128xf32>
    %87 = arith.divf %85, %86 : vector<8x128xf32>
    %88 = vector.extract_strided_slice %81 {offsets = [0, 128], sizes = [8, 128], strides = [1, 1]} : vector<8x512xf32> to vector<8x128xf32>
    %89 = arith.negf %88 : vector<8x128xf32>
    %90 = math.exp %89 : vector<8x128xf32>
    %cst_30 = arith.constant 1.000000e+00 : f32
    %91 = vector.broadcast %cst_30 : f32 to vector<8x128xf32>
    %92 = arith.addf %91, %90 : vector<8x128xf32>
    %93 = arith.divf %91, %92 : vector<8x128xf32>
    %94 = vector.extract_strided_slice %81 {offsets = [0, 256], sizes = [8, 128], strides = [1, 1]} : vector<8x512xf32> to vector<8x128xf32>
    %95 = math.tanh %94 : vector<8x128xf32>
    %96 = vector.extract_strided_slice %81 {offsets = [0, 384], sizes = [8, 128], strides = [1, 1]} : vector<8x512xf32> to vector<8x128xf32>
    %97 = arith.negf %96 : vector<8x128xf32>
    %98 = math.exp %97 : vector<8x128xf32>
    %cst_31 = arith.constant 1.000000e+00 : f32
    %99 = vector.broadcast %cst_31 : f32 to vector<8x128xf32>
    %100 = arith.addf %99, %98 : vector<8x128xf32>
    %101 = arith.divf %99, %100 : vector<8x128xf32>
    %102 = arith.mulf %93, %38 : vector<8x128xf32>
    %103 = arith.mulf %87, %95 : vector<8x128xf32>
    %104 = arith.addf %102, %103 : vector<8x128xf32>
    %105 = math.tanh %104 : vector<8x128xf32>
    %106 = arith.mulf %101, %105 : vector<8x128xf32>
    %107 = tpu.concatenate %106, %72 in 1 : vector<8x128xf32>, vector<8x128xf32> -> vector<8x256xf32>
    %108 = arith.truncf %107 : vector<8x256xf32> to vector<8x256xbf16>
    %c0_32 = arith.constant 0 : index
    %c0_33 = arith.constant 0 : index
    %109 = vector.load %arg5[%c0_32, %c0_33] : memref<256x512xbf16, #tpu.memory_space<vmem>>, vector<256x512xbf16>
    %cst_34 = arith.constant dense<0.000000e+00> : vector<8x512xf32>
    %110 = tpu.matmul %108, %109, %cst_34 {dimension_numbers = #tpu.dot_dimension_numbers<[1], [0], [0], [1], [0, 0, 1, 1], [], []>} : vector<8x256xbf16>, vector<256x512xbf16>, vector<8x512xf32> -> vector<8x512xf32>
    %c0_35 = arith.constant 0 : index
    %c0_36 = arith.constant 0 : index
    %111 = vector.load %arg6[%c0_35, %c0_36] : memref<1x512xf32, #tpu.memory_space<vmem>>, vector<1x512xf32>
    %112 = vector.broadcast %111 : vector<1x512xf32> to vector<8x512xf32>
    %113 = arith.addf %110, %112 : vector<8x512xf32>
    %114 = vector.extract_strided_slice %113 {offsets = [0, 0], sizes = [8, 128], strides = [1, 1]} : vector<8x512xf32> to vector<8x128xf32>
    %115 = arith.negf %114 : vector<8x128xf32>
    %116 = math.exp %115 : vector<8x128xf32>
    %cst_37 = arith.constant 1.000000e+00 : f32
    %117 = vector.broadcast %cst_37 : f32 to vector<8x128xf32>
    %118 = arith.addf %117, %116 : vector<8x128xf32>
    %119 = arith.divf %117, %118 : vector<8x128xf32>
    %120 = vector.extract_strided_slice %113 {offsets = [0, 128], sizes = [8, 128], strides = [1, 1]} : vector<8x512xf32> to vector<8x128xf32>
    %121 = arith.negf %120 : vector<8x128xf32>
    %122 = math.exp %121 : vector<8x128xf32>
    %cst_38 = arith.constant 1.000000e+00 : f32
    %123 = vector.broadcast %cst_38 : f32 to vector<8x128xf32>
    %124 = arith.addf %123, %122 : vector<8x128xf32>
    %125 = arith.divf %123, %124 : vector<8x128xf32>
    %126 = vector.extract_strided_slice %113 {offsets = [0, 256], sizes = [8, 128], strides = [1, 1]} : vector<8x512xf32> to vector<8x128xf32>
    %127 = math.tanh %126 : vector<8x128xf32>
    %128 = vector.extract_strided_slice %113 {offsets = [0, 384], sizes = [8, 128], strides = [1, 1]} : vector<8x512xf32> to vector<8x128xf32>
    %129 = arith.negf %128 : vector<8x128xf32>
    %130 = math.exp %129 : vector<8x128xf32>
    %cst_39 = arith.constant 1.000000e+00 : f32
    %131 = vector.broadcast %cst_39 : f32 to vector<8x128xf32>
    %132 = arith.addf %131, %130 : vector<8x128xf32>
    %133 = arith.divf %131, %132 : vector<8x128xf32>
    %134 = arith.mulf %125, %70 : vector<8x128xf32>
    %135 = arith.mulf %119, %127 : vector<8x128xf32>
    %136 = arith.addf %134, %135 : vector<8x128xf32>
    %137 = math.tanh %136 : vector<8x128xf32>
    %138 = arith.mulf %133, %137 : vector<8x128xf32>
    %139 = arith.index_cast %75 : i32 to index
    %c0_40 = arith.constant 0 : index
    %140 = vector.load %arg7[%139, %c0_40] : memref<72x128xf32, #tpu.memory_space<vmem>>, vector<8x128xf32>
    tpu.vector_store %arg7[%139, %c0_40], %138 {strides = array<i32>} : memref<72x128xf32, #tpu.memory_space<vmem>>, vector<8x128xf32>,
    %c2_i32 = arith.constant 2 : i32
    %c8_i32_41 = arith.constant 8 : i32
    %141 = arith.muli %c2_i32, %c8_i32_41 : i32
    %142 = arith.index_cast %141 : i32 to index
    %c0_42 = arith.constant 0 : index
    %143 = vector.load %arg8[%142, %c0_42] : memref<72x512xf32, #tpu.memory_space<vmem>>, vector<8x512xf32>
    %144 = arith.truncf %106 : vector<8x128xf32> to vector<8x128xbf16>
    %c0_43 = arith.constant 0 : index
    %c0_44 = arith.constant 0 : index
    %145 = vector.load %arg3[%c0_43, %c0_44] : memref<128x512xbf16, #tpu.memory_space<vmem>>, vector<128x512xbf16>
    %cst_45 = arith.constant dense<0.000000e+00> : vector<8x512xf32>
    %146 = tpu.matmul %144, %145, %cst_45 {dimension_numbers = #tpu.dot_dimension_numbers<[1], [0], [0], [1], [0, 0, 1, 1], [], []>} : vector<8x128xbf16>, vector<128x512xbf16>, vector<8x512xf32> -> vector<8x512xf32>
    %147 = arith.addf %143, %146 : vector<8x512xf32>
    %148 = vector.extract_strided_slice %147 {offsets = [0, 0], sizes = [8, 128], strides = [1, 1]} : vector<8x512xf32> to vector<8x128xf32>
    %149 = arith.negf %148 : vector<8x128xf32>
    %150 = math.exp %149 : vector<8x128xf32>
    %cst_46 = arith.constant 1.000000e+00 : f32
    %151 = vector.broadcast %cst_46 : f32 to vector<8x128xf32>
    %152 = arith.addf %151, %150 : vector<8x128xf32>
    %153 = arith.divf %151, %152 : vector<8x128xf32>
    %154 = vector.extract_strided_slice %147 {offsets = [0, 128], sizes = [8, 128], strides = [1, 1]} : vector<8x512xf32> to vector<8x128xf32>
    %155 = arith.negf %154 : vector<8x128xf32>
    %156 = math.exp %155 : vector<8x128xf32>
    %cst_47 = arith.constant 1.000000e+00 : f32
    %157 = vector.broadcast %cst_47 : f32 to vector<8x128xf32>
    %158 = arith.addf %157, %156 : vector<8x128xf32>
    %159 = arith.divf %157, %158 : vector<8x128xf32>
    %160 = vector.extract_strided_slice %147 {offsets = [0, 256], sizes = [8, 128], strides = [1, 1]} : vector<8x512xf32> to vector<8x128xf32>
    %161 = math.tanh %160 : vector<8x128xf32>
    %162 = vector.extract_strided_slice %147 {offsets = [0, 384], sizes = [8, 128], strides = [1, 1]} : vector<8x512xf32> to vector<8x128xf32>
    %163 = arith.negf %162 : vector<8x128xf32>
    %164 = math.exp %163 : vector<8x128xf32>
    %cst_48 = arith.constant 1.000000e+00 : f32
    %165 = vector.broadcast %cst_48 : f32 to vector<8x128xf32>
    %166 = arith.addf %165, %164 : vector<8x128xf32>
    %167 = arith.divf %165, %166 : vector<8x128xf32>
    %168 = arith.mulf %159, %104 : vector<8x128xf32>
    %169 = arith.mulf %153, %161 : vector<8x128xf32>
    %170 = arith.addf %168, %169 : vector<8x128xf32>
    %171 = math.tanh %170 : vector<8x128xf32>
    %172 = arith.mulf %167, %171 : vector<8x128xf32>
    %173 = tpu.concatenate %172, %138 in 1 : vector<8x128xf32>, vector<8x128xf32> -> vector<8x256xf32>
    %174 = arith.truncf %173 : vector<8x256xf32> to vector<8x256xbf16>
    %c0_49 = arith.constant 0 : index
    %c0_50 = arith.constant 0 : index
    %175 = vector.load %arg5[%c0_49, %c0_50] : memref<256x512xbf16, #tpu.memory_space<vmem>>, vector<256x512xbf16>
    %cst_51 = arith.constant dense<0.000000e+00> : vector<8x512xf32>
    %176 = tpu.matmul %174, %175, %cst_51 {dimension_numbers = #tpu.dot_dimension_numbers<[1], [0], [0], [1], [0, 0, 1, 1], [], []>} : vector<8x256xbf16>, vector<256x512xbf16>, vector<8x512xf32> -> vector<8x512xf32>
    %c0_52 = arith.constant 0 : index
    %c0_53 = arith.constant 0 : index
    %177 = vector.load %arg6[%c0_52, %c0_53] : memref<1x512xf32, #tpu.memory_space<vmem>>, vector<1x512xf32>
    %178 = vector.broadcast %177 : vector<1x512xf32> to vector<8x512xf32>
    %179 = arith.addf %176, %178 : vector<8x512xf32>
    %180 = vector.extract_strided_slice %179 {offsets = [0, 0], sizes = [8, 128], strides = [1, 1]} : vector<8x512xf32> to vector<8x128xf32>
    %181 = arith.negf %180 : vector<8x128xf32>
    %182 = math.exp %181 : vector<8x128xf32>
    %cst_54 = arith.constant 1.000000e+00 : f32
    %183 = vector.broadcast %cst_54 : f32 to vector<8x128xf32>
    %184 = arith.addf %183, %182 : vector<8x128xf32>
    %185 = arith.divf %183, %184 : vector<8x128xf32>
    %186 = vector.extract_strided_slice %179 {offsets = [0, 128], sizes = [8, 128], strides = [1, 1]} : vector<8x512xf32> to vector<8x128xf32>
    %187 = arith.negf %186 : vector<8x128xf32>
    %188 = math.exp %187 : vector<8x128xf32>
    %cst_55 = arith.constant 1.000000e+00 : f32
    %189 = vector.broadcast %cst_55 : f32 to vector<8x128xf32>
    %190 = arith.addf %189, %188 : vector<8x128xf32>
    %191 = arith.divf %189, %190 : vector<8x128xf32>
    %192 = vector.extract_strided_slice %179 {offsets = [0, 256], sizes = [8, 128], strides = [1, 1]} : vector<8x512xf32> to vector<8x128xf32>
    %193 = math.tanh %192 : vector<8x128xf32>
    %194 = vector.extract_strided_slice %179 {offsets = [0, 384], sizes = [8, 128], strides = [1, 1]} : vector<8x512xf32> to vector<8x128xf32>
    %195 = arith.negf %194 : vector<8x128xf32>
    %196 = math.exp %195 : vector<8x128xf32>
    %cst_56 = arith.constant 1.000000e+00 : f32
    %197 = vector.broadcast %cst_56 : f32 to vector<8x128xf32>
    %198 = arith.addf %197, %196 : vector<8x128xf32>
    %199 = arith.divf %197, %198 : vector<8x128xf32>
    %200 = arith.mulf %191, %136 : vector<8x128xf32>
    %201 = arith.mulf %185, %193 : vector<8x128xf32>
    %202 = arith.addf %200, %201 : vector<8x128xf32>
    %203 = math.tanh %202 : vector<8x128xf32>
    %204 = arith.mulf %199, %203 : vector<8x128xf32>
    %205 = arith.index_cast %141 : i32 to index
    %c0_57 = arith.constant 0 : index
    %206 = vector.load %arg7[%205, %c0_57] : memref<72x128xf32, #tpu.memory_space<vmem>>, vector<8x128xf32>
    tpu.vector_store %arg7[%205, %c0_57], %204 {strides = array<i32>} : memref<72x128xf32, #tpu.memory_space<vmem>>, vector<8x128xf32>,
    %c3_i32 = arith.constant 3 : i32
    %c8_i32_58 = arith.constant 8 : i32
    %207 = arith.muli %c3_i32, %c8_i32_58 : i32
    %208 = arith.index_cast %207 : i32 to index
    %c0_59 = arith.constant 0 : index
    %209 = vector.load %arg8[%208, %c0_59] : memref<72x512xf32, #tpu.memory_space<vmem>>, vector<8x512xf32>
    %210 = arith.truncf %172 : vector<8x128xf32> to vector<8x128xbf16>
    %c0_60 = arith.constant 0 : index
    %c0_61 = arith.constant 0 : index
    %211 = vector.load %arg3[%c0_60, %c0_61] : memref<128x512xbf16, #tpu.memory_space<vmem>>, vector<128x512xbf16>
    %cst_62 = arith.constant dense<0.000000e+00> : vector<8x512xf32>
    %212 = tpu.matmul %210, %211, %cst_62 {dimension_numbers = #tpu.dot_dimension_numbers<[1], [0], [0], [1], [0, 0, 1, 1], [], []>} : vector<8x128xbf16>, vector<128x512xbf16>, vector<8x512xf32> -> vector<8x512xf32>
    %213 = arith.addf %209, %212 : vector<8x512xf32>
    %214 = vector.extract_strided_slice %213 {offsets = [0, 0], sizes = [8, 128], strides = [1, 1]} : vector<8x512xf32> to vector<8x128xf32>
    %215 = arith.negf %214 : vector<8x128xf32>
    %216 = math.exp %215 : vector<8x128xf32>
    %cst_63 = arith.constant 1.000000e+00 : f32
    %217 = vector.broadcast %cst_63 : f32 to vector<8x128xf32>
    %218 = arith.addf %217, %216 : vector<8x128xf32>
    %219 = arith.divf %217, %218 : vector<8x128xf32>
    %220 = vector.extract_strided_slice %213 {offsets = [0, 128], sizes = [8, 128], strides = [1, 1]} : vector<8x512xf32> to vector<8x128xf32>
    %221 = arith.negf %220 : vector<8x128xf32>
    %222 = math.exp %221 : vector<8x128xf32>
    %cst_64 = arith.constant 1.000000e+00 : f32
    %223 = vector.broadcast %cst_64 : f32 to vector<8x128xf32>
    %224 = arith.addf %223, %222 : vector<8x128xf32>
    %225 = arith.divf %223, %224 : vector<8x128xf32>
    %226 = vector.extract_strided_slice %213 {offsets = [0, 256], sizes = [8, 128], strides = [1, 1]} : vector<8x512xf32> to vector<8x128xf32>
    %227 = math.tanh %226 : vector<8x128xf32>
    %228 = vector.extract_strided_slice %213 {offsets = [0, 384], sizes = [8, 128], strides = [1, 1]} : vector<8x512xf32> to vector<8x128xf32>
    %229 = arith.negf %228 : vector<8x128xf32>
    %230 = math.exp %229 : vector<8x128xf32>
    %cst_65 = arith.constant 1.000000e+00 : f32
    %231 = vector.broadcast %cst_65 : f32 to vector<8x128xf32>
    %232 = arith.addf %231, %230 : vector<8x128xf32>
    %233 = arith.divf %231, %232 : vector<8x128xf32>
    %234 = arith.mulf %225, %170 : vector<8x128xf32>
    %235 = arith.mulf %219, %227 : vector<8x128xf32>
    %236 = arith.addf %234, %235 : vector<8x128xf32>
    %237 = math.tanh %236 : vector<8x128xf32>
    %238 = arith.mulf %233, %237 : vector<8x128xf32>
    %239 = tpu.concatenate %238, %204 in 1 : vector<8x128xf32>, vector<8x128xf32> -> vector<8x256xf32>
    %240 = arith.truncf %239 : vector<8x256xf32> to vector<8x256xbf16>
    %c0_66 = arith.constant 0 : index
    %c0_67 = arith.constant 0 : index
    %241 = vector.load %arg5[%c0_66, %c0_67] : memref<256x512xbf16, #tpu.memory_space<vmem>>, vector<256x512xbf16>
    %cst_68 = arith.constant dense<0.000000e+00> : vector<8x512xf32>
    %242 = tpu.matmul %240, %241, %cst_68 {dimension_numbers = #tpu.dot_dimension_numbers<[1], [0], [0], [1], [0, 0, 1, 1], [], []>} : vector<8x256xbf16>, vector<256x512xbf16>, vector<8x512xf32> -> vector<8x512xf32>
    %c0_69 = arith.constant 0 : index
    %c0_70 = arith.constant 0 : index
    %243 = vector.load %arg6[%c0_69, %c0_70] : memref<1x512xf32, #tpu.memory_space<vmem>>, vector<1x512xf32>
    %244 = vector.broadcast %243 : vector<1x512xf32> to vector<8x512xf32>
    %245 = arith.addf %242, %244 : vector<8x512xf32>
    %246 = vector.extract_strided_slice %245 {offsets = [0, 0], sizes = [8, 128], strides = [1, 1]} : vector<8x512xf32> to vector<8x128xf32>
    %247 = arith.negf %246 : vector<8x128xf32>
    %248 = math.exp %247 : vector<8x128xf32>
    %cst_71 = arith.constant 1.000000e+00 : f32
    %249 = vector.broadcast %cst_71 : f32 to vector<8x128xf32>
    %250 = arith.addf %249, %248 : vector<8x128xf32>
    %251 = arith.divf %249, %250 : vector<8x128xf32>
    %252 = vector.extract_strided_slice %245 {offsets = [0, 128], sizes = [8, 128], strides = [1, 1]} : vector<8x512xf32> to vector<8x128xf32>
    %253 = arith.negf %252 : vector<8x128xf32>
    %254 = math.exp %253 : vector<8x128xf32>
    %cst_72 = arith.constant 1.000000e+00 : f32
    %255 = vector.broadcast %cst_72 : f32 to vector<8x128xf32>
    %256 = arith.addf %255, %254 : vector<8x128xf32>
    %257 = arith.divf %255, %256 : vector<8x128xf32>
    %258 = vector.extract_strided_slice %245 {offsets = [0, 256], sizes = [8, 128], strides = [1, 1]} : vector<8x512xf32> to vector<8x128xf32>
    %259 = math.tanh %258 : vector<8x128xf32>
    %260 = vector.extract_strided_slice %245 {offsets = [0, 384], sizes = [8, 128], strides = [1, 1]} : vector<8x512xf32> to vector<8x128xf32>
    %261 = arith.negf %260 : vector<8x128xf32>
    %262 = math.exp %261 : vector<8x128xf32>
    %cst_73 = arith.constant 1.000000e+00 : f32
    %263 = vector.broadcast %cst_73 : f32 to vector<8x128xf32>
    %264 = arith.addf %263, %262 : vector<8x128xf32>
    %265 = arith.divf %263, %264 : vector<8x128xf32>
    %266 = arith.mulf %257, %202 : vector<8x128xf32>
    %267 = arith.mulf %251, %259 : vector<8x128xf32>
    %268 = arith.addf %266, %267 : vector<8x128xf32>
    %269 = math.tanh %268 : vector<8x128xf32>
    %270 = arith.mulf %265, %269 : vector<8x128xf32>
    %271 = arith.index_cast %207 : i32 to index
    %c0_74 = arith.constant 0 : index
    %272 = vector.load %arg7[%271, %c0_74] : memref<72x128xf32, #tpu.memory_space<vmem>>, vector<8x128xf32>
    tpu.vector_store %arg7[%271, %c0_74], %270 {strides = array<i32>} : memref<72x128xf32, #tpu.memory_space<vmem>>, vector<8x128xf32>,
    %c4_i32 = arith.constant 4 : i32
    %c8_i32_75 = arith.constant 8 : i32
    %273 = arith.muli %c4_i32, %c8_i32_75 : i32
    %274 = arith.index_cast %273 : i32 to index
    %c0_76 = arith.constant 0 : index
    %275 = vector.load %arg8[%274, %c0_76] : memref<72x512xf32, #tpu.memory_space<vmem>>, vector<8x512xf32>
    %276 = arith.truncf %238 : vector<8x128xf32> to vector<8x128xbf16>
    %c0_77 = arith.constant 0 : index
    %c0_78 = arith.constant 0 : index
    %277 = vector.load %arg3[%c0_77, %c0_78] : memref<128x512xbf16, #tpu.memory_space<vmem>>, vector<128x512xbf16>
    %cst_79 = arith.constant dense<0.000000e+00> : vector<8x512xf32>
    %278 = tpu.matmul %276, %277, %cst_79 {dimension_numbers = #tpu.dot_dimension_numbers<[1], [0], [0], [1], [0, 0, 1, 1], [], []>} : vector<8x128xbf16>, vector<128x512xbf16>, vector<8x512xf32> -> vector<8x512xf32>
    %279 = arith.addf %275, %278 : vector<8x512xf32>
    %280 = vector.extract_strided_slice %279 {offsets = [0, 0], sizes = [8, 128], strides = [1, 1]} : vector<8x512xf32> to vector<8x128xf32>
    %281 = arith.negf %280 : vector<8x128xf32>
    %282 = math.exp %281 : vector<8x128xf32>
    %cst_80 = arith.constant 1.000000e+00 : f32
    %283 = vector.broadcast %cst_80 : f32 to vector<8x128xf32>
    %284 = arith.addf %283, %282 : vector<8x128xf32>
    %285 = arith.divf %283, %284 : vector<8x128xf32>
    %286 = vector.extract_strided_slice %279 {offsets = [0, 128], sizes = [8, 128], strides = [1, 1]} : vector<8x512xf32> to vector<8x128xf32>
    %287 = arith.negf %286 : vector<8x128xf32>
    %288 = math.exp %287 : vector<8x128xf32>
    %cst_81 = arith.constant 1.000000e+00 : f32
    %289 = vector.broadcast %cst_81 : f32 to vector<8x128xf32>
    %290 = arith.addf %289, %288 : vector<8x128xf32>
    %291 = arith.divf %289, %290 : vector<8x128xf32>
    %292 = vector.extract_strided_slice %279 {offsets = [0, 256], sizes = [8, 128], strides = [1, 1]} : vector<8x512xf32> to vector<8x128xf32>
    %293 = math.tanh %292 : vector<8x128xf32>
    %294 = vector.extract_strided_slice %279 {offsets = [0, 384], sizes = [8, 128], strides = [1, 1]} : vector<8x512xf32> to vector<8x128xf32>
    %295 = arith.negf %294 : vector<8x128xf32>
    %296 = math.exp %295 : vector<8x128xf32>
    %cst_82 = arith.constant 1.000000e+00 : f32
    %297 = vector.broadcast %cst_82 : f32 to vector<8x128xf32>
    %298 = arith.addf %297, %296 : vector<8x128xf32>
    %299 = arith.divf %297, %298 : vector<8x128xf32>
    %300 = arith.mulf %291, %236 : vector<8x128xf32>
    %301 = arith.mulf %285, %293 : vector<8x128xf32>
    %302 = arith.addf %300, %301 : vector<8x128xf32>
    %303 = math.tanh %302 : vector<8x128xf32>
    %304 = arith.mulf %299, %303 : vector<8x128xf32>
    %305 = tpu.concatenate %304, %270 in 1 : vector<8x128xf32>, vector<8x128xf32> -> vector<8x256xf32>
    %306 = arith.truncf %305 : vector<8x256xf32> to vector<8x256xbf16>
    %c0_83 = arith.constant 0 : index
    %c0_84 = arith.constant 0 : index
    %307 = vector.load %arg5[%c0_83, %c0_84] : memref<256x512xbf16, #tpu.memory_space<vmem>>, vector<256x512xbf16>
    %cst_85 = arith.constant dense<0.000000e+00> : vector<8x512xf32>
    %308 = tpu.matmul %306, %307, %cst_85 {dimension_numbers = #tpu.dot_dimension_numbers<[1], [0], [0], [1], [0, 0, 1, 1], [], []>} : vector<8x256xbf16>, vector<256x512xbf16>, vector<8x512xf32> -> vector<8x512xf32>
    %c0_86 = arith.constant 0 : index
    %c0_87 = arith.constant 0 : index
    %309 = vector.load %arg6[%c0_86, %c0_87] : memref<1x512xf32, #tpu.memory_space<vmem>>, vector<1x512xf32>
    %310 = vector.broadcast %309 : vector<1x512xf32> to vector<8x512xf32>
    %311 = arith.addf %308, %310 : vector<8x512xf32>
    %312 = vector.extract_strided_slice %311 {offsets = [0, 0], sizes = [8, 128], strides = [1, 1]} : vector<8x512xf32> to vector<8x128xf32>
    %313 = arith.negf %312 : vector<8x128xf32>
    %314 = math.exp %313 : vector<8x128xf32>
    %cst_88 = arith.constant 1.000000e+00 : f32
    %315 = vector.broadcast %cst_88 : f32 to vector<8x128xf32>
    %316 = arith.addf %315, %314 : vector<8x128xf32>
    %317 = arith.divf %315, %316 : vector<8x128xf32>
    %318 = vector.extract_strided_slice %311 {offsets = [0, 128], sizes = [8, 128], strides = [1, 1]} : vector<8x512xf32> to vector<8x128xf32>
    %319 = arith.negf %318 : vector<8x128xf32>
    %320 = math.exp %319 : vector<8x128xf32>
    %cst_89 = arith.constant 1.000000e+00 : f32
    %321 = vector.broadcast %cst_89 : f32 to vector<8x128xf32>
    %322 = arith.addf %321, %320 : vector<8x128xf32>
    %323 = arith.divf %321, %322 : vector<8x128xf32>
    %324 = vector.extract_strided_slice %311 {offsets = [0, 256], sizes = [8, 128], strides = [1, 1]} : vector<8x512xf32> to vector<8x128xf32>
    %325 = math.tanh %324 : vector<8x128xf32>
    %326 = vector.extract_strided_slice %311 {offsets = [0, 384], sizes = [8, 128], strides = [1, 1]} : vector<8x512xf32> to vector<8x128xf32>
    %327 = arith.negf %326 : vector<8x128xf32>
    %328 = math.exp %327 : vector<8x128xf32>
    %cst_90 = arith.constant 1.000000e+00 : f32
    %329 = vector.broadcast %cst_90 : f32 to vector<8x128xf32>
    %330 = arith.addf %329, %328 : vector<8x128xf32>
    %331 = arith.divf %329, %330 : vector<8x128xf32>
    %332 = arith.mulf %323, %268 : vector<8x128xf32>
    %333 = arith.mulf %317, %325 : vector<8x128xf32>
    %334 = arith.addf %332, %333 : vector<8x128xf32>
    %335 = math.tanh %334 : vector<8x128xf32>
    %336 = arith.mulf %331, %335 : vector<8x128xf32>
    %337 = arith.index_cast %273 : i32 to index
    %c0_91 = arith.constant 0 : index
    %338 = vector.load %arg7[%337, %c0_91] : memref<72x128xf32, #tpu.memory_space<vmem>>, vector<8x128xf32>
    tpu.vector_store %arg7[%337, %c0_91], %336 {strides = array<i32>} : memref<72x128xf32, #tpu.memory_space<vmem>>, vector<8x128xf32>,
    %c5_i32 = arith.constant 5 : i32
    %c8_i32_92 = arith.constant 8 : i32
    %339 = arith.muli %c5_i32, %c8_i32_92 : i32
    %340 = arith.index_cast %339 : i32 to index
    %c0_93 = arith.constant 0 : index
    %341 = vector.load %arg8[%340, %c0_93] : memref<72x512xf32, #tpu.memory_space<vmem>>, vector<8x512xf32>
    %342 = arith.truncf %304 : vector<8x128xf32> to vector<8x128xbf16>
    %c0_94 = arith.constant 0 : index
    %c0_95 = arith.constant 0 : index
    %343 = vector.load %arg3[%c0_94, %c0_95] : memref<128x512xbf16, #tpu.memory_space<vmem>>, vector<128x512xbf16>
    %cst_96 = arith.constant dense<0.000000e+00> : vector<8x512xf32>
    %344 = tpu.matmul %342, %343, %cst_96 {dimension_numbers = #tpu.dot_dimension_numbers<[1], [0], [0], [1], [0, 0, 1, 1], [], []>} : vector<8x128xbf16>, vector<128x512xbf16>, vector<8x512xf32> -> vector<8x512xf32>
    %345 = arith.addf %341, %344 : vector<8x512xf32>
    %346 = vector.extract_strided_slice %345 {offsets = [0, 0], sizes = [8, 128], strides = [1, 1]} : vector<8x512xf32> to vector<8x128xf32>
    %347 = arith.negf %346 : vector<8x128xf32>
    %348 = math.exp %347 : vector<8x128xf32>
    %cst_97 = arith.constant 1.000000e+00 : f32
    %349 = vector.broadcast %cst_97 : f32 to vector<8x128xf32>
    %350 = arith.addf %349, %348 : vector<8x128xf32>
    %351 = arith.divf %349, %350 : vector<8x128xf32>
    %352 = vector.extract_strided_slice %345 {offsets = [0, 128], sizes = [8, 128], strides = [1, 1]} : vector<8x512xf32> to vector<8x128xf32>
    %353 = arith.negf %352 : vector<8x128xf32>
    %354 = math.exp %353 : vector<8x128xf32>
    %cst_98 = arith.constant 1.000000e+00 : f32
    %355 = vector.broadcast %cst_98 : f32 to vector<8x128xf32>
    %356 = arith.addf %355, %354 : vector<8x128xf32>
    %357 = arith.divf %355, %356 : vector<8x128xf32>
    %358 = vector.extract_strided_slice %345 {offsets = [0, 256], sizes = [8, 128], strides = [1, 1]} : vector<8x512xf32> to vector<8x128xf32>
    %359 = math.tanh %358 : vector<8x128xf32>
    %360 = vector.extract_strided_slice %345 {offsets = [0, 384], sizes = [8, 128], strides = [1, 1]} : vector<8x512xf32> to vector<8x128xf32>
    %361 = arith.negf %360 : vector<8x128xf32>
    %362 = math.exp %361 : vector<8x128xf32>
    %cst_99 = arith.constant 1.000000e+00 : f32
    %363 = vector.broadcast %cst_99 : f32 to vector<8x128xf32>
    %364 = arith.addf %363, %362 : vector<8x128xf32>
    %365 = arith.divf %363, %364 : vector<8x128xf32>
    %366 = arith.mulf %357, %302 : vector<8x128xf32>
    %367 = arith.mulf %351, %359 : vector<8x128xf32>
    %368 = arith.addf %366, %367 : vector<8x128xf32>
    %369 = math.tanh %368 : vector<8x128xf32>
    %370 = arith.mulf %365, %369 : vector<8x128xf32>
    %371 = tpu.concatenate %370, %336 in 1 : vector<8x128xf32>, vector<8x128xf32> -> vector<8x256xf32>
    %372 = arith.truncf %371 : vector<8x256xf32> to vector<8x256xbf16>
    %c0_100 = arith.constant 0 : index
    %c0_101 = arith.constant 0 : index
    %373 = vector.load %arg5[%c0_100, %c0_101] : memref<256x512xbf16, #tpu.memory_space<vmem>>, vector<256x512xbf16>
    %cst_102 = arith.constant dense<0.000000e+00> : vector<8x512xf32>
    %374 = tpu.matmul %372, %373, %cst_102 {dimension_numbers = #tpu.dot_dimension_numbers<[1], [0], [0], [1], [0, 0, 1, 1], [], []>} : vector<8x256xbf16>, vector<256x512xbf16>, vector<8x512xf32> -> vector<8x512xf32>
    %c0_103 = arith.constant 0 : index
    %c0_104 = arith.constant 0 : index
    %375 = vector.load %arg6[%c0_103, %c0_104] : memref<1x512xf32, #tpu.memory_space<vmem>>, vector<1x512xf32>
    %376 = vector.broadcast %375 : vector<1x512xf32> to vector<8x512xf32>
    %377 = arith.addf %374, %376 : vector<8x512xf32>
    %378 = vector.extract_strided_slice %377 {offsets = [0, 0], sizes = [8, 128], strides = [1, 1]} : vector<8x512xf32> to vector<8x128xf32>
    %379 = arith.negf %378 : vector<8x128xf32>
    %380 = math.exp %379 : vector<8x128xf32>
    %cst_105 = arith.constant 1.000000e+00 : f32
    %381 = vector.broadcast %cst_105 : f32 to vector<8x128xf32>
    %382 = arith.addf %381, %380 : vector<8x128xf32>
    %383 = arith.divf %381, %382 : vector<8x128xf32>
    %384 = vector.extract_strided_slice %377 {offsets = [0, 128], sizes = [8, 128], strides = [1, 1]} : vector<8x512xf32> to vector<8x128xf32>
    %385 = arith.negf %384 : vector<8x128xf32>
    %386 = math.exp %385 : vector<8x128xf32>
    %cst_106 = arith.constant 1.000000e+00 : f32
    %387 = vector.broadcast %cst_106 : f32 to vector<8x128xf32>
    %388 = arith.addf %387, %386 : vector<8x128xf32>
    %389 = arith.divf %387, %388 : vector<8x128xf32>
    %390 = vector.extract_strided_slice %377 {offsets = [0, 256], sizes = [8, 128], strides = [1, 1]} : vector<8x512xf32> to vector<8x128xf32>
    %391 = math.tanh %390 : vector<8x128xf32>
    %392 = vector.extract_strided_slice %377 {offsets = [0, 384], sizes = [8, 128], strides = [1, 1]} : vector<8x512xf32> to vector<8x128xf32>
    %393 = arith.negf %392 : vector<8x128xf32>
    %394 = math.exp %393 : vector<8x128xf32>
    %cst_107 = arith.constant 1.000000e+00 : f32
    %395 = vector.broadcast %cst_107 : f32 to vector<8x128xf32>
    %396 = arith.addf %395, %394 : vector<8x128xf32>
    %397 = arith.divf %395, %396 : vector<8x128xf32>
    %398 = arith.mulf %389, %334 : vector<8x128xf32>
    %399 = arith.mulf %383, %391 : vector<8x128xf32>
    %400 = arith.addf %398, %399 : vector<8x128xf32>
    %401 = math.tanh %400 : vector<8x128xf32>
    %402 = arith.mulf %397, %401 : vector<8x128xf32>
    %403 = arith.index_cast %339 : i32 to index
    %c0_108 = arith.constant 0 : index
    %404 = vector.load %arg7[%403, %c0_108] : memref<72x128xf32, #tpu.memory_space<vmem>>, vector<8x128xf32>
    tpu.vector_store %arg7[%403, %c0_108], %402 {strides = array<i32>} : memref<72x128xf32, #tpu.memory_space<vmem>>, vector<8x128xf32>,
    %c6_i32 = arith.constant 6 : i32
    %c8_i32_109 = arith.constant 8 : i32
    %405 = arith.muli %c6_i32, %c8_i32_109 : i32
    %406 = arith.index_cast %405 : i32 to index
    %c0_110 = arith.constant 0 : index
    %407 = vector.load %arg8[%406, %c0_110] : memref<72x512xf32, #tpu.memory_space<vmem>>, vector<8x512xf32>
    %408 = arith.truncf %370 : vector<8x128xf32> to vector<8x128xbf16>
    %c0_111 = arith.constant 0 : index
    %c0_112 = arith.constant 0 : index
    %409 = vector.load %arg3[%c0_111, %c0_112] : memref<128x512xbf16, #tpu.memory_space<vmem>>, vector<128x512xbf16>
    %cst_113 = arith.constant dense<0.000000e+00> : vector<8x512xf32>
    %410 = tpu.matmul %408, %409, %cst_113 {dimension_numbers = #tpu.dot_dimension_numbers<[1], [0], [0], [1], [0, 0, 1, 1], [], []>} : vector<8x128xbf16>, vector<128x512xbf16>, vector<8x512xf32> -> vector<8x512xf32>
    %411 = arith.addf %407, %410 : vector<8x512xf32>
    %412 = vector.extract_strided_slice %411 {offsets = [0, 0], sizes = [8, 128], strides = [1, 1]} : vector<8x512xf32> to vector<8x128xf32>
    %413 = arith.negf %412 : vector<8x128xf32>
    %414 = math.exp %413 : vector<8x128xf32>
    %cst_114 = arith.constant 1.000000e+00 : f32
    %415 = vector.broadcast %cst_114 : f32 to vector<8x128xf32>
    %416 = arith.addf %415, %414 : vector<8x128xf32>
    %417 = arith.divf %415, %416 : vector<8x128xf32>
    %418 = vector.extract_strided_slice %411 {offsets = [0, 128], sizes = [8, 128], strides = [1, 1]} : vector<8x512xf32> to vector<8x128xf32>
    %419 = arith.negf %418 : vector<8x128xf32>
    %420 = math.exp %419 : vector<8x128xf32>
    %cst_115 = arith.constant 1.000000e+00 : f32
    %421 = vector.broadcast %cst_115 : f32 to vector<8x128xf32>
    %422 = arith.addf %421, %420 : vector<8x128xf32>
    %423 = arith.divf %421, %422 : vector<8x128xf32>
    %424 = vector.extract_strided_slice %411 {offsets = [0, 256], sizes = [8, 128], strides = [1, 1]} : vector<8x512xf32> to vector<8x128xf32>
    %425 = math.tanh %424 : vector<8x128xf32>
    %426 = vector.extract_strided_slice %411 {offsets = [0, 384], sizes = [8, 128], strides = [1, 1]} : vector<8x512xf32> to vector<8x128xf32>
    %427 = arith.negf %426 : vector<8x128xf32>
    %428 = math.exp %427 : vector<8x128xf32>
    %cst_116 = arith.constant 1.000000e+00 : f32
    %429 = vector.broadcast %cst_116 : f32 to vector<8x128xf32>
    %430 = arith.addf %429, %428 : vector<8x128xf32>
    %431 = arith.divf %429, %430 : vector<8x128xf32>
    %432 = arith.mulf %423, %368 : vector<8x128xf32>
    %433 = arith.mulf %417, %425 : vector<8x128xf32>
    %434 = arith.addf %432, %433 : vector<8x128xf32>
    %435 = math.tanh %434 : vector<8x128xf32>
    %436 = arith.mulf %431, %435 : vector<8x128xf32>
    %437 = tpu.concatenate %436, %402 in 1 : vector<8x128xf32>, vector<8x128xf32> -> vector<8x256xf32>
    %438 = arith.truncf %437 : vector<8x256xf32> to vector<8x256xbf16>
    %c0_117 = arith.constant 0 : index
    %c0_118 = arith.constant 0 : index
    %439 = vector.load %arg5[%c0_117, %c0_118] : memref<256x512xbf16, #tpu.memory_space<vmem>>, vector<256x512xbf16>
    %cst_119 = arith.constant dense<0.000000e+00> : vector<8x512xf32>
    %440 = tpu.matmul %438, %439, %cst_119 {dimension_numbers = #tpu.dot_dimension_numbers<[1], [0], [0], [1], [0, 0, 1, 1], [], []>} : vector<8x256xbf16>, vector<256x512xbf16>, vector<8x512xf32> -> vector<8x512xf32>
    %c0_120 = arith.constant 0 : index
    %c0_121 = arith.constant 0 : index
    %441 = vector.load %arg6[%c0_120, %c0_121] : memref<1x512xf32, #tpu.memory_space<vmem>>, vector<1x512xf32>
    %442 = vector.broadcast %441 : vector<1x512xf32> to vector<8x512xf32>
    %443 = arith.addf %440, %442 : vector<8x512xf32>
    %444 = vector.extract_strided_slice %443 {offsets = [0, 0], sizes = [8, 128], strides = [1, 1]} : vector<8x512xf32> to vector<8x128xf32>
    %445 = arith.negf %444 : vector<8x128xf32>
    %446 = math.exp %445 : vector<8x128xf32>
    %cst_122 = arith.constant 1.000000e+00 : f32
    %447 = vector.broadcast %cst_122 : f32 to vector<8x128xf32>
    %448 = arith.addf %447, %446 : vector<8x128xf32>
    %449 = arith.divf %447, %448 : vector<8x128xf32>
    %450 = vector.extract_strided_slice %443 {offsets = [0, 128], sizes = [8, 128], strides = [1, 1]} : vector<8x512xf32> to vector<8x128xf32>
    %451 = arith.negf %450 : vector<8x128xf32>
    %452 = math.exp %451 : vector<8x128xf32>
    %cst_123 = arith.constant 1.000000e+00 : f32
    %453 = vector.broadcast %cst_123 : f32 to vector<8x128xf32>
    %454 = arith.addf %453, %452 : vector<8x128xf32>
    %455 = arith.divf %453, %454 : vector<8x128xf32>
    %456 = vector.extract_strided_slice %443 {offsets = [0, 256], sizes = [8, 128], strides = [1, 1]} : vector<8x512xf32> to vector<8x128xf32>
    %457 = math.tanh %456 : vector<8x128xf32>
    %458 = vector.extract_strided_slice %443 {offsets = [0, 384], sizes = [8, 128], strides = [1, 1]} : vector<8x512xf32> to vector<8x128xf32>
    %459 = arith.negf %458 : vector<8x128xf32>
    %460 = math.exp %459 : vector<8x128xf32>
    %cst_124 = arith.constant 1.000000e+00 : f32
    %461 = vector.broadcast %cst_124 : f32 to vector<8x128xf32>
    %462 = arith.addf %461, %460 : vector<8x128xf32>
    %463 = arith.divf %461, %462 : vector<8x128xf32>
    %464 = arith.mulf %455, %400 : vector<8x128xf32>
    %465 = arith.mulf %449, %457 : vector<8x128xf32>
    %466 = arith.addf %464, %465 : vector<8x128xf32>
    %467 = math.tanh %466 : vector<8x128xf32>
    %468 = arith.mulf %463, %467 : vector<8x128xf32>
    %469 = arith.index_cast %405 : i32 to index
    %c0_125 = arith.constant 0 : index
    %470 = vector.load %arg7[%469, %c0_125] : memref<72x128xf32, #tpu.memory_space<vmem>>, vector<8x128xf32>
    tpu.vector_store %arg7[%469, %c0_125], %468 {strides = array<i32>} : memref<72x128xf32, #tpu.memory_space<vmem>>, vector<8x128xf32>,
    %c7_i32 = arith.constant 7 : i32
    %c8_i32_126 = arith.constant 8 : i32
    %471 = arith.muli %c7_i32, %c8_i32_126 : i32
    %472 = arith.index_cast %471 : i32 to index
    %c0_127 = arith.constant 0 : index
    %473 = vector.load %arg8[%472, %c0_127] : memref<72x512xf32, #tpu.memory_space<vmem>>, vector<8x512xf32>
    %474 = arith.truncf %436 : vector<8x128xf32> to vector<8x128xbf16>
    %c0_128 = arith.constant 0 : index
    %c0_129 = arith.constant 0 : index
    %475 = vector.load %arg3[%c0_128, %c0_129] : memref<128x512xbf16, #tpu.memory_space<vmem>>, vector<128x512xbf16>
    %cst_130 = arith.constant dense<0.000000e+00> : vector<8x512xf32>
    %476 = tpu.matmul %474, %475, %cst_130 {dimension_numbers = #tpu.dot_dimension_numbers<[1], [0], [0], [1], [0, 0, 1, 1], [], []>} : vector<8x128xbf16>, vector<128x512xbf16>, vector<8x512xf32> -> vector<8x512xf32>
    %477 = arith.addf %473, %476 : vector<8x512xf32>
    %478 = vector.extract_strided_slice %477 {offsets = [0, 0], sizes = [8, 128], strides = [1, 1]} : vector<8x512xf32> to vector<8x128xf32>
    %479 = arith.negf %478 : vector<8x128xf32>
    %480 = math.exp %479 : vector<8x128xf32>
    %cst_131 = arith.constant 1.000000e+00 : f32
    %481 = vector.broadcast %cst_131 : f32 to vector<8x128xf32>
    %482 = arith.addf %481, %480 : vector<8x128xf32>
    %483 = arith.divf %481, %482 : vector<8x128xf32>
    %484 = vector.extract_strided_slice %477 {offsets = [0, 128], sizes = [8, 128], strides = [1, 1]} : vector<8x512xf32> to vector<8x128xf32>
    %485 = arith.negf %484 : vector<8x128xf32>
    %486 = math.exp %485 : vector<8x128xf32>
    %cst_132 = arith.constant 1.000000e+00 : f32
    %487 = vector.broadcast %cst_132 : f32 to vector<8x128xf32>
    %488 = arith.addf %487, %486 : vector<8x128xf32>
    %489 = arith.divf %487, %488 : vector<8x128xf32>
    %490 = vector.extract_strided_slice %477 {offsets = [0, 256], sizes = [8, 128], strides = [1, 1]} : vector<8x512xf32> to vector<8x128xf32>
    %491 = math.tanh %490 : vector<8x128xf32>
    %492 = vector.extract_strided_slice %477 {offsets = [0, 384], sizes = [8, 128], strides = [1, 1]} : vector<8x512xf32> to vector<8x128xf32>
    %493 = arith.negf %492 : vector<8x128xf32>
    %494 = math.exp %493 : vector<8x128xf32>
    %cst_133 = arith.constant 1.000000e+00 : f32
    %495 = vector.broadcast %cst_133 : f32 to vector<8x128xf32>
    %496 = arith.addf %495, %494 : vector<8x128xf32>
    %497 = arith.divf %495, %496 : vector<8x128xf32>
    %498 = arith.mulf %489, %434 : vector<8x128xf32>
    %499 = arith.mulf %483, %491 : vector<8x128xf32>
    %500 = arith.addf %498, %499 : vector<8x128xf32>
    %501 = math.tanh %500 : vector<8x128xf32>
    %502 = arith.mulf %497, %501 : vector<8x128xf32>
    %503 = tpu.concatenate %502, %468 in 1 : vector<8x128xf32>, vector<8x128xf32> -> vector<8x256xf32>
    %504 = arith.truncf %503 : vector<8x256xf32> to vector<8x256xbf16>
    %c0_134 = arith.constant 0 : index
    %c0_135 = arith.constant 0 : index
    %505 = vector.load %arg5[%c0_134, %c0_135] : memref<256x512xbf16, #tpu.memory_space<vmem>>, vector<256x512xbf16>
    %cst_136 = arith.constant dense<0.000000e+00> : vector<8x512xf32>
    %506 = tpu.matmul %504, %505, %cst_136 {dimension_numbers = #tpu.dot_dimension_numbers<[1], [0], [0], [1], [0, 0, 1, 1], [], []>} : vector<8x256xbf16>, vector<256x512xbf16>, vector<8x512xf32> -> vector<8x512xf32>
    %c0_137 = arith.constant 0 : index
    %c0_138 = arith.constant 0 : index
    %507 = vector.load %arg6[%c0_137, %c0_138] : memref<1x512xf32, #tpu.memory_space<vmem>>, vector<1x512xf32>
    %508 = vector.broadcast %507 : vector<1x512xf32> to vector<8x512xf32>
    %509 = arith.addf %506, %508 : vector<8x512xf32>
    %510 = vector.extract_strided_slice %509 {offsets = [0, 0], sizes = [8, 128], strides = [1, 1]} : vector<8x512xf32> to vector<8x128xf32>
    %511 = arith.negf %510 : vector<8x128xf32>
    %512 = math.exp %511 : vector<8x128xf32>
    %cst_139 = arith.constant 1.000000e+00 : f32
    %513 = vector.broadcast %cst_139 : f32 to vector<8x128xf32>
    %514 = arith.addf %513, %512 : vector<8x128xf32>
    %515 = arith.divf %513, %514 : vector<8x128xf32>
    %516 = vector.extract_strided_slice %509 {offsets = [0, 128], sizes = [8, 128], strides = [1, 1]} : vector<8x512xf32> to vector<8x128xf32>
    %517 = arith.negf %516 : vector<8x128xf32>
    %518 = math.exp %517 : vector<8x128xf32>
    %cst_140 = arith.constant 1.000000e+00 : f32
    %519 = vector.broadcast %cst_140 : f32 to vector<8x128xf32>
    %520 = arith.addf %519, %518 : vector<8x128xf32>
    %521 = arith.divf %519, %520 : vector<8x128xf32>
    %522 = vector.extract_strided_slice %509 {offsets = [0, 256], sizes = [8, 128], strides = [1, 1]} : vector<8x512xf32> to vector<8x128xf32>
    %523 = math.tanh %522 : vector<8x128xf32>
    %524 = vector.extract_strided_slice %509 {offsets = [0, 384], sizes = [8, 128], strides = [1, 1]} : vector<8x512xf32> to vector<8x128xf32>
    %525 = arith.negf %524 : vector<8x128xf32>
    %526 = math.exp %525 : vector<8x128xf32>
    %cst_141 = arith.constant 1.000000e+00 : f32
    %527 = vector.broadcast %cst_141 : f32 to vector<8x128xf32>
    %528 = arith.addf %527, %526 : vector<8x128xf32>
    %529 = arith.divf %527, %528 : vector<8x128xf32>
    %530 = arith.mulf %521, %466 : vector<8x128xf32>
    %531 = arith.mulf %515, %523 : vector<8x128xf32>
    %532 = arith.addf %530, %531 : vector<8x128xf32>
    %533 = math.tanh %532 : vector<8x128xf32>
    %534 = arith.mulf %529, %533 : vector<8x128xf32>
    %535 = arith.index_cast %471 : i32 to index
    %c0_142 = arith.constant 0 : index
    %536 = vector.load %arg7[%535, %c0_142] : memref<72x128xf32, #tpu.memory_space<vmem>>, vector<8x128xf32>
    tpu.vector_store %arg7[%535, %c0_142], %534 {strides = array<i32>} : memref<72x128xf32, #tpu.memory_space<vmem>>, vector<8x128xf32>,
    %c8_i32_143 = arith.constant 8 : i32
    %c8_i32_144 = arith.constant 8 : i32
    %537 = arith.muli %c8_i32_143, %c8_i32_144 : i32
    %538 = arith.index_cast %537 : i32 to index
    %c0_145 = arith.constant 0 : index
    %539 = vector.load %arg8[%538, %c0_145] : memref<72x512xf32, #tpu.memory_space<vmem>>, vector<8x512xf32>
    %540 = arith.truncf %502 : vector<8x128xf32> to vector<8x128xbf16>
    %c0_146 = arith.constant 0 : index
    %c0_147 = arith.constant 0 : index
    %541 = vector.load %arg3[%c0_146, %c0_147] : memref<128x512xbf16, #tpu.memory_space<vmem>>, vector<128x512xbf16>
    %cst_148 = arith.constant dense<0.000000e+00> : vector<8x512xf32>
    %542 = tpu.matmul %540, %541, %cst_148 {dimension_numbers = #tpu.dot_dimension_numbers<[1], [0], [0], [1], [0, 0, 1, 1], [], []>} : vector<8x128xbf16>, vector<128x512xbf16>, vector<8x512xf32> -> vector<8x512xf32>
    %543 = arith.addf %539, %542 : vector<8x512xf32>
    %544 = vector.extract_strided_slice %543 {offsets = [0, 0], sizes = [8, 128], strides = [1, 1]} : vector<8x512xf32> to vector<8x128xf32>
    %545 = arith.negf %544 : vector<8x128xf32>
    %546 = math.exp %545 : vector<8x128xf32>
    %cst_149 = arith.constant 1.000000e+00 : f32
    %547 = vector.broadcast %cst_149 : f32 to vector<8x128xf32>
    %548 = arith.addf %547, %546 : vector<8x128xf32>
    %549 = arith.divf %547, %548 : vector<8x128xf32>
    %550 = vector.extract_strided_slice %543 {offsets = [0, 128], sizes = [8, 128], strides = [1, 1]} : vector<8x512xf32> to vector<8x128xf32>
    %551 = arith.negf %550 : vector<8x128xf32>
    %552 = math.exp %551 : vector<8x128xf32>
    %cst_150 = arith.constant 1.000000e+00 : f32
    %553 = vector.broadcast %cst_150 : f32 to vector<8x128xf32>
    %554 = arith.addf %553, %552 : vector<8x128xf32>
    %555 = arith.divf %553, %554 : vector<8x128xf32>
    %556 = vector.extract_strided_slice %543 {offsets = [0, 256], sizes = [8, 128], strides = [1, 1]} : vector<8x512xf32> to vector<8x128xf32>
    %557 = math.tanh %556 : vector<8x128xf32>
    %558 = vector.extract_strided_slice %543 {offsets = [0, 384], sizes = [8, 128], strides = [1, 1]} : vector<8x512xf32> to vector<8x128xf32>
    %559 = arith.negf %558 : vector<8x128xf32>
    %560 = math.exp %559 : vector<8x128xf32>
    %cst_151 = arith.constant 1.000000e+00 : f32
    %561 = vector.broadcast %cst_151 : f32 to vector<8x128xf32>
    %562 = arith.addf %561, %560 : vector<8x128xf32>
    %563 = arith.divf %561, %562 : vector<8x128xf32>
    %564 = arith.mulf %555, %500 : vector<8x128xf32>
    %565 = arith.mulf %549, %557 : vector<8x128xf32>
    %566 = arith.addf %564, %565 : vector<8x128xf32>
    %567 = math.tanh %566 : vector<8x128xf32>
    %568 = arith.mulf %563, %567 : vector<8x128xf32>
    %569 = tpu.concatenate %568, %534 in 1 : vector<8x128xf32>, vector<8x128xf32> -> vector<8x256xf32>
    %570 = arith.truncf %569 : vector<8x256xf32> to vector<8x256xbf16>
    %c0_152 = arith.constant 0 : index
    %c0_153 = arith.constant 0 : index
    %571 = vector.load %arg5[%c0_152, %c0_153] : memref<256x512xbf16, #tpu.memory_space<vmem>>, vector<256x512xbf16>
    %cst_154 = arith.constant dense<0.000000e+00> : vector<8x512xf32>
    %572 = tpu.matmul %570, %571, %cst_154 {dimension_numbers = #tpu.dot_dimension_numbers<[1], [0], [0], [1], [0, 0, 1, 1], [], []>} : vector<8x256xbf16>, vector<256x512xbf16>, vector<8x512xf32> -> vector<8x512xf32>
    %c0_155 = arith.constant 0 : index
    %c0_156 = arith.constant 0 : index
    %573 = vector.load %arg6[%c0_155, %c0_156] : memref<1x512xf32, #tpu.memory_space<vmem>>, vector<1x512xf32>
    %574 = vector.broadcast %573 : vector<1x512xf32> to vector<8x512xf32>
    %575 = arith.addf %572, %574 : vector<8x512xf32>
    %576 = vector.extract_strided_slice %575 {offsets = [0, 0], sizes = [8, 128], strides = [1, 1]} : vector<8x512xf32> to vector<8x128xf32>
    %577 = arith.negf %576 : vector<8x128xf32>
    %578 = math.exp %577 : vector<8x128xf32>
    %cst_157 = arith.constant 1.000000e+00 : f32
    %579 = vector.broadcast %cst_157 : f32 to vector<8x128xf32>
    %580 = arith.addf %579, %578 : vector<8x128xf32>
    %581 = arith.divf %579, %580 : vector<8x128xf32>
    %582 = vector.extract_strided_slice %575 {offsets = [0, 128], sizes = [8, 128], strides = [1, 1]} : vector<8x512xf32> to vector<8x128xf32>
    %583 = arith.negf %582 : vector<8x128xf32>
    %584 = math.exp %583 : vector<8x128xf32>
    %cst_158 = arith.constant 1.000000e+00 : f32
    %585 = vector.broadcast %cst_158 : f32 to vector<8x128xf32>
    %586 = arith.addf %585, %584 : vector<8x128xf32>
    %587 = arith.divf %585, %586 : vector<8x128xf32>
    %588 = vector.extract_strided_slice %575 {offsets = [0, 256], sizes = [8, 128], strides = [1, 1]} : vector<8x512xf32> to vector<8x128xf32>
    %589 = math.tanh %588 : vector<8x128xf32>
    %590 = vector.extract_strided_slice %575 {offsets = [0, 384], sizes = [8, 128], strides = [1, 1]} : vector<8x512xf32> to vector<8x128xf32>
    %591 = arith.negf %590 : vector<8x128xf32>
    %592 = math.exp %591 : vector<8x128xf32>
    %cst_159 = arith.constant 1.000000e+00 : f32
    %593 = vector.broadcast %cst_159 : f32 to vector<8x128xf32>
    %594 = arith.addf %593, %592 : vector<8x128xf32>
    %595 = arith.divf %593, %594 : vector<8x128xf32>
    %596 = arith.mulf %587, %532 : vector<8x128xf32>
    %597 = arith.mulf %581, %589 : vector<8x128xf32>
    %598 = arith.addf %596, %597 : vector<8x128xf32>
    %599 = math.tanh %598 : vector<8x128xf32>
    %600 = arith.mulf %595, %599 : vector<8x128xf32>
    %601 = arith.index_cast %537 : i32 to index
    %c0_160 = arith.constant 0 : index
    %602 = vector.load %arg7[%601, %c0_160] : memref<72x128xf32, #tpu.memory_space<vmem>>, vector<8x128xf32>
    tpu.vector_store %arg7[%601, %c0_160], %600 {strides = array<i32>} : memref<72x128xf32, #tpu.memory_space<vmem>>, vector<8x128xf32>,
    %c9_i32 = arith.constant 9 : i32
    return
  }
  func.func @transform_0(%arg0: i32) -> (i32, i32) {
    %c0_i32 = arith.constant 0 : i32
    %c0_i32_0 = arith.constant 0 : i32
    %c0_i32_1 = arith.constant 0 : i32
    return %c0_i32, %c0_i32_0 : i32, i32
  }
  func.func @transform_1(%arg0: i32) -> (i32, i32) {
    %c0_i32 = arith.constant 0 : i32
    %c0_i32_0 = arith.constant 0 : i32
    %c0_i32_1 = arith.constant 0 : i32
    return %c0_i32, %c0_i32_0 : i32, i32
  }
  func.func @transform_2(%arg0: i32) -> (i32, i32) {
    %c0_i32 = arith.constant 0 : i32
    %c0_i32_0 = arith.constant 0 : i32
    %c0_i32_1 = arith.constant 0 : i32
    return %c0_i32, %c0_i32_0 : i32, i32
  }
  func.func @transform_3(%arg0: i32) -> (i32, i32) {
    %c0_i32 = arith.constant 0 : i32
    %c0_i32_0 = arith.constant 0 : i32
    %c0_i32_1 = arith.constant 0 : i32
    return %c0_i32, %c0_i32_0 : i32, i32
  }
  func.func @transform_4(%arg0: i32) -> (i32, i32) {
    %c0_i32 = arith.constant 0 : i32
    %c0_i32_0 = arith.constant 0 : i32
    %c0_i32_1 = arith.constant 0 : i32
    return %c0_i32, %c0_i32_0 : i32, i32
  }
  func.func @transform_5(%arg0: i32) -> (i32, i32) {
    %c0_i32 = arith.constant 0 : i32
    %c0_i32_0 = arith.constant 0 : i32
    %c0_i32_1 = arith.constant 0 : i32
    return %c0_i32, %c0_i32_0 : i32, i32
  }
  func.func @transform_6(%arg0: i32) -> (i32, i32) {
    %c0_i32 = arith.constant 0 : i32
    %c0_i32_0 = arith.constant 0 : i32
    %c0_i32_1 = arith.constant 0 : i32
    return %c0_i32, %c0_i32_0 : i32, i32
  }
}

</mosaic_0001>

<bundles_post_ra>
// kernel: decoder_forward.3
= control target key start
LH: loop header
LB: loop body
LE: loop exit
PB: predicated region body
PF: predicated region fallthrough
CT: control target
= control target key end

     0   :  { %v298_v2 = vmov 0   ;;  %s391_s0 = inlined_call_operand.vmem [shape: bf16[24,128], index: 0, kind: input, shape index: {}]   ;;  %s392_s1 = inlined_call_operand.vmem [shape: bf16[128,256], index: 1, kind: input, shape index: {}]   ;;  %s393_s2 = inlined_call_operand.vmem [shape: f32[1,256], index: 2, kind: input, shape index: {}]   ;;  %s394_s3 = inlined_call_operand.hbm [shape: f32[24,256], index: 3, kind: output, shape index: {}]  }
   0x1   :  { %v248_v0 = vld [vmem:[%s392_s1 + $0x4] ss:$8 sps:$4 sm:$0xff]   ;;  %v250_v1 = vld [vmem:[%s392_s1] ss:$8 sps:$4 sm:$0xff]   ;;  %169 = vmatprep.mubr.bf16.mxu0 %v298_v2  ;;  %179 = vmatprep.mubr.bf16.mxu1 %v298_v2  ;;  %v251_v3 = vld [vmem:[%s392_s1 + $0x14] ss:$8 sps:$4 sm:$0xff]  }
   0x2   :  { %137 = vmatprep.subr.bf16.mxu0 %v248_v0  ;;  %228 = vmatprep.subr.bf16.mxu1 %v248_v0  ;;  %v253_v4 = vld [vmem:[%s392_s1 + $0x10] ss:$8 sps:$4 sm:$0xff]   ;;  %v254_v5 = vld [vmem:[%s392_s1 + $0x24] ss:$8 sps:$4 sm:$0xff]   ;;  %v256_v6 = vld [vmem:[%s392_s1 + $0x20] ss:$8 sps:$4 sm:$0xff]  }
   0x3   :  { %138 = vmatpush1.bf16.msra.mxu0 %v250_v1  ;;  %236 = vmatpush1.bf16.msra.mxu1 %v250_v1  ;;  %v257_v7 = vld [vmem:[%s392_s1 + $0x34] ss:$8 sps:$4 sm:$0xff]   ;;  %v259_v8 = vld [vmem:[%s392_s1 + $0x30] ss:$8 sps:$4 sm:$0xff]   ;;  %v260_v9 = vld [vmem:[%s392_s1 + $0x44] ss:$8 sps:$4 sm:$0xff]  }
   0x4   :  { %139 = vmatprep.subr.bf16.mxu0 %v251_v3  ;;  %229 = vmatprep.subr.bf16.mxu1 %v251_v3 }
   0x7   :  { %140 = vmatpush1.bf16.msra.mxu0 %v253_v4  ;;  %237 = vmatpush1.bf16.msra.mxu1 %v253_v4 }
   0x8   :  { %141 = vmatprep.subr.bf16.mxu0 %v254_v5  ;;  %230 = vmatprep.subr.bf16.mxu1 %v254_v5 }
   0xb   :  { %142 = vmatpush1.bf16.msra.mxu0 %v256_v6  ;;  %238 = vmatpush1.bf16.msra.mxu1 %v256_v6 }
   0xc   :  { %143 = vmatprep.subr.bf16.mxu0 %v257_v7  ;;  %231 = vmatprep.subr.bf16.mxu1 %v257_v7 }
   0xd   :  { %8 = vsyncpa [#allocation3], 0  ;;  %v262_v10 = vld [vmem:[%s392_s1 + $0x40] ss:$8 sps:$4 sm:$0xff]   ;;  %v263_v11 = vld [vmem:[%s392_s1 + $0x54] ss:$8 sps:$4 sm:$0xff]   ;;  %v37_v19 = vlaneseq }
   0xe   :  { %v265_v12 = vld [vmem:[%s392_s1 + $0x50] ss:$8 sps:$4 sm:$0xff]   ;;  %v266_v13 = vld [vmem:[%s392_s1 + $0x64] ss:$8 sps:$4 sm:$0xff]   ;;  %v268_v14 = vld [vmem:[%s392_s1 + $0x60] ss:$8 sps:$4 sm:$0xff]  }
   0xf   :  { %144 = vmatpush1.bf16.msra.mxu0 %v259_v8  ;;  %239 = vmatpush1.bf16.msra.mxu1 %v259_v8  ;;  %v269_v15 = vld [vmem:[%s392_s1 + $0x74] ss:$8 sps:$4 sm:$0xff]   ;;  %v271_v16 = vld [vmem:[%s392_s1 + $0x70] ss:$8 sps:$4 sm:$0xff]   ;;  %v272_v17 = vld [vmem:[%s391_s0] sm:$0xff]   ;;  %v38_v20 = vshrl.u32 %v37_v19, 7 }
  0x10   :  { %145 = vmatprep.subr.bf16.mxu0 %v260_v9  ;;  %232 = vmatprep.subr.bf16.mxu1 %v260_v9  ;;  %v273_v18 = vld [vmem:[%s391_s0 + $0x8] ss:$0 sps:$4 sm:$0xff]   ;;  %v35_v22 = vld [vmem:[%s393_s2] sm:$0x3]  ;;  %s299_s1 = smov [#allocation2]  }
  0x11   :  { %v39_v21 = vsub.s32 0, %v38_v20  ;;  %v43_v23 = vsub.s32 1, %v38_v20  ;;  %s199_s23 = sshll.u32 %s299_s1, 4  ;;  %s200_s23 = int_to_ptr.vmem [resolvable:$true] %s199_s23 }
  0x12   :  { %s274_s0 = scalar_lea.vmem %s200_s23, 768  ;;  %p279_p1 = scmp.lt.s32.totalorder %s200_s23, %s200_s23 }
  0x13   :  { %146 = vmatpush1.bf16.msra.mxu0 %v262_v10  ;;  %240 = vmatpush1.bf16.msra.mxu1 %v262_v10  ;;  %v40_v24 = vrot.slane %v35_v22, %v39_v21  ;;  %v44_v25 = vrot.slane %v35_v22, %v43_v23  ;;  %p275_p0 = scmp.ne.s32.totalorder %s200_s23, %s274_s0  ;;  %p280_p2 = scmp.lt.s32.totalorder %s274_s0, %s274_s0 }
  0x14   :  { %147 = vmatprep.subr.bf16.mxu0 %v263_v11  ;;  %233 = vmatprep.subr.bf16.mxu1 %v263_v11 }
  0x15   :  { %p281_p3 = por %p280_p2, %p279_p1 }
  0x17   :  { %148 = vmatpush1.bf16.msra.mxu0 %v265_v12  ;;  %241 = vmatpush1.bf16.msra.mxu1 %v265_v12  ;;  %p282_p4 = pnand %p281_p3, %p275_p0 }
  0x18   :  { %149 = vmatprep.subr.bf16.mxu0 %v266_v13  ;;  %234 = vmatprep.subr.bf16.mxu1 %v266_v13 }
  0x1b   :  { %150 = vmatpush1.bf16.msra.mxu0 %v268_v14  ;;  %242 = vmatpush1.bf16.msra.mxu1 %v268_v14 }
  0x1c   :  { %151 = vmatprep.subr.bf16.mxu0 %v269_v15  ;;  %235 = vmatprep.subr.bf16.mxu1 %v269_v15 }
  0x1f   :  { %152 = vmatpush1.bf16.msra.mxu0 %v271_v16  ;;  %243 = vmatpush1.bf16.msra.mxu1 %v271_v16 }
  0x22   :  { %170 = vmatmul.mubr.bf16.vlgmr.msra.gmra.mrb[0].mxu0 %v272_v17  ;;  %180 = vmatmul.mubr.bf16.vlgmr.msra.gmra.mrb[0].mxu1 %v273_v18 }
  0xf5   :  { %v171_v26 = vpop.f32.mrb[0].mxu0  ;;  %v181_v27 = vpop.f32.mrb[0].mxu1 }
  0xf6   :  { %v172_v28 = vadd.f32 %v171_v26, %v40_v24  ;;  %v182_v29 = vadd.f32 %v181_v27, %v40_v24  ;;  %v173_v30 = vpop.f32.mrb[1].mxu0  ;;  %v183_v31 = vpop.f32.mrb[1].mxu1 }
  0xf7   :  { %v174_v32 = vadd.f32 %v173_v30, %v44_v25  ;;  %v184_v33 = vadd.f32 %v183_v31, %v44_v25  ;;  %v175_v34 = vpop.f32.mrb[2].mxu0  ;;  %v185_v35 = vpop.f32.mrb[2].mxu1 }
  0xf8   :  { %188 = vst [vmem:[#allocation2] sm:$0xff] %v172_v28  ;;  %192 = vst [vmem:[#allocation2 + $0x20] sm:$0xff] %v182_v29  ;;  %v176_v36 = vadd.f32 %v175_v34, %v40_v24  ;;  %v177_v37 = vpop.f32.mrb[3].mxu0  ;;  %v186_v38 = vpop.f32.mrb[3].mxu1 }
  0xf9   :  { %189 = vst [vmem:[#allocation2 + $0x8] sm:$0xff] %v174_v32  ;;  %193 = vst [vmem:[#allocation2 + $0x28] sm:$0xff] %v184_v33  ;;  %v178_v39 = vadd.f32 %v177_v37, %v44_v25 }
  0xfa   :  { %190 = vst [vmem:[#allocation2 + $0x10] sm:$0xff] %v176_v36 }
  0xfb   :  { %191 = vst [vmem:[#allocation2 + $0x18] sm:$0xff] %v178_v39 }
  0xfc   :  { %285 = shalt.err (!%p282_p4)
}
  0xfd   :  { %s286_s25 = scalar_lea.hbm %s394_s3, 768 }
  0xfe   :  { %p287_p5 = scmp.ne.s32.totalorder %s394_s3, %s286_s25  ;;  %p290_p6 = scmp.lt.u32.totalorder %s286_s25, %s394_s3 }
 0x100   :  { %p292_p7 = pnand %p290_p6, %p287_p5 }
 0x102   :  { %295 = shalt.err (!%p292_p7)
}
 0x103   :  { %s300_s30 = smov 256   ;;  %s301_s4 = smov 16  }
 0x104   :  { %205 = dma.vmem_to_hbm [thread:$0]  %s200_s23, 768, %s394_s3, [#allocation3], %s300_s30, %s300_s30, %s301_s4  }
 0x105   :  { %296 = dma.done.wait [#allocation3], 768  }
 0x106   :  { %297 = vsyncadd [#allocation3], 4294966528 }
 0x107   :  { %209 = vsyncpa [#allocation3], 1 }

// kernel: decoder_forward.2
= control target key start
LH: loop header
LB: loop body
LE: loop exit
PB: predicated region body
PF: predicated region fallthrough
CT: control target
= control target key end

     0   :  { %11 = vsyncpa [#allocation4], 0  ;;  %s12794_s0 = inlined_call_operand.vmem [shape: f32[72,128], index: 0, kind: input, shape index: {}]   ;;  %s12795_s1 = inlined_call_operand.hbm [shape: bf16[128,512], index: 1, kind: input, shape index: {}]   ;;  %s12796_s2 = inlined_call_operand.hbm [shape: bf16[128,512], index: 2, kind: input, shape index: {}]   ;;  %s12797_s3 = inlined_call_operand.vmem [shape: f32[1,512], index: 3, kind: input, shape index: {}]   ;;  %s12798_s4 = inlined_call_operand.vmem [shape: bf16[256,512], index: 4, kind: input, shape index: {}]   ;;  %s12799_s5 = inlined_call_operand.vmem [shape: f32[1,512], index: 5, kind: input, shape index: {}]   ;;  %s12800_s6 = inlined_call_operand.vmem [shape: f32[72,128], index: 6, kind: output, shape index: {}]  }
   0x1   :  { %12 = vsyncpa [#allocation6], 0  ;;  %s9977_s21 = smov [#allocation3]   ;;  %s9929_s25 = scalar_lea.hbm %s12795_s1, 4096 }
   0x2   :  { %s20_s22 = sshll.u32 %s9977_s21, 4  ;;  %p9930_p0 = scmp.ne.s32.totalorder %s12795_s1, %s9929_s25  ;;  %s21_s22 = int_to_ptr.vmem [resolvable:$true] %s20_s22 }
   0x3   :  { %p9933_p1 = scmp.lt.u32.totalorder %s9929_s25, %s12795_s1 }
   0x5   :  { %p9935_p2 = pnand %p9933_p1, %p9930_p0 }
   0x7   :  { %9938 = shalt.err (!%p9935_p2)
}
   0x8   :  { %s9939_s30 = scalar_lea.vmem %s21_s22, 4096  ;;  %p9944_p4 = scmp.lt.s32.totalorder %s21_s22, %s21_s22 }
   0x9   :  { %p9940_p3 = scmp.ne.s32.totalorder %s21_s22, %s9939_s30  ;;  %p9945_p5 = scmp.lt.s32.totalorder %s9939_s30, %s9939_s30 }
   0xb   :  { %p9946_p6 = por %p9945_p5, %p9944_p4 }
   0xd   :  { %p9947_p7 = pnand %p9946_p6, %p9940_p3 }
   0xf   :  { %9950 = shalt.err (!%p9947_p7)
}
  0x10   :  { %s9978_s7 = smov 256   ;;  %s9979_s8 = smov 16  }
  0x11   :  { %26 = dma.hbm_to_vmem [thread:$0]  %s12795_s1, 4096, %s21_s22, [#allocation4], %s9978_s7, %s9978_s7, %s9979_s8  }
  0x12   :  { %s9980_s11 = smov [#allocation5]   ;;  %s9951_s15 = scalar_lea.hbm %s12796_s2, 4096 }
  0x13   :  { %s32_s12 = sshll.u32 %s9980_s11, 4  ;;  %p9952_p8 = scmp.ne.s32.totalorder %s12796_s2, %s9951_s15  ;;  %s33_s12 = int_to_ptr.vmem [resolvable:$true] %s32_s12 }
  0x14   :  { %p9955_p9 = scmp.lt.u32.totalorder %s9951_s15, %s12796_s2 }
  0x16   :  { %p9957_p10 = pnand %p9955_p9, %p9952_p8 }
  0x18   :  { %9960 = shalt.err (!%p9957_p10)
}
  0x19   :  { %s9961_s20 = scalar_lea.vmem %s33_s12, 4096  ;;  %p9966_p12 = scmp.lt.s32.totalorder %s33_s12, %s33_s12 }
  0x1a   :  { %p9962_p11 = scmp.ne.s32.totalorder %s33_s12, %s9961_s20  ;;  %p9967_p13 = scmp.lt.s32.totalorder %s9961_s20, %s9961_s20 }
  0x1c   :  { %p9968_p0 = por %p9967_p13, %p9966_p12 }
  0x1e   :  { %p9969_p1 = pnand %p9968_p0, %p9962_p11 }
  0x20   :  { %9972 = shalt.err (!%p9969_p1)
}
  0x21   :  { %38 = dma.hbm_to_vmem [thread:$0]  %s12796_s2, 4096, %s33_s12, [#allocation6], %s9978_s7, %s9978_s7, %s9979_s8  }
  0x22   :  { %9973 = dma.done.wait [#allocation4], 4096  }
  0x23   :  { %9974 = vsyncadd [#allocation4], 4294963200 }
  0x24   :  { %9975 = dma.done.wait [#allocation6], 4096  }
  0x25   :  { %9976 = vsyncadd [#allocation6], 4294963200  ;;  %v12801_v0 = vmov 0   ;;  %v8841_v1 = vld [vmem:[#allocation3 + $0x4] ss:$16 sps:$4 sm:$0xff]   ;;  %v53_v34 = vld [vmem:[%s12794_s0 + $0x8] sm:$0xff] }
  0x26   :  { %312 = vmatprep.mubr.bf16.mxu0 %v12801_v0  ;;  %393 = vmatprep.mubr.bf16.mxu1 %v12801_v0  ;;  %v8843_v2 = vld [vmem:[#allocation3 + $0xc] ss:$16 sps:$4 sm:$0xff]   ;;  %v8845_v3 = vld [vmem:[#allocation3] ss:$16 sps:$4 sm:$0xff]   ;;  %v8846_v4 = vld [vmem:[#allocation3 + $0x8] ss:$16 sps:$4 sm:$0xff]  }
  0x27   :  { %280 = vmatprep.subr.bf16.mxu0 %v8841_v1  ;;  %361 = vmatprep.subr.bf16.mxu1 %v8843_v2  ;;  %v8847_v5 = vld [vmem:[#allocation3 + $0x24] ss:$16 sps:$4 sm:$0xff]   ;;  %v8849_v6 = vld [vmem:[#allocation3 + $0x2c] ss:$16 sps:$4 sm:$0xff]   ;;  %v8851_v7 = vld [vmem:[#allocation3 + $0x20] ss:$16 sps:$4 sm:$0xff]  }
  0x28   :  { %281 = vmatpush1.bf16.msra.mxu0 %v8845_v3  ;;  %362 = vmatpush1.bf16.msra.mxu1 %v8846_v4  ;;  %v8852_v8 = vld [vmem:[#allocation3 + $0x28] ss:$16 sps:$4 sm:$0xff]   ;;  %v8853_v9 = vld [vmem:[#allocation3 + $0x44] ss:$16 sps:$4 sm:$0xff]   ;;  %v8855_v10 = vld [vmem:[#allocation3 + $0x4c] ss:$16 sps:$4 sm:$0xff]  }
  0x29   :  { %282 = vmatprep.subr.bf16.mxu0 %v8847_v5  ;;  %363 = vmatprep.subr.bf16.mxu1 %v8849_v6  ;;  %v8857_v11 = vld [vmem:[#allocation3 + $0x40] ss:$16 sps:$4 sm:$0xff]   ;;  %v8858_v12 = vld [vmem:[#allocation3 + $0x48] ss:$16 sps:$4 sm:$0xff]   ;;  %v8859_v13 = vld [vmem:[#allocation3 + $0x64] ss:$16 sps:$4 sm:$0xff]  }
  0x2a   :  { %v8861_v14 = vld [vmem:[#allocation3 + $0x6c] ss:$16 sps:$4 sm:$0xff]   ;;  %v8863_v15 = vld [vmem:[#allocation3 + $0x60] ss:$16 sps:$4 sm:$0xff]   ;;  %v8864_v16 = vld [vmem:[#allocation3 + $0x68] ss:$16 sps:$4 sm:$0xff]  }
  0x2b   :  { %v8865_v17 = vld [vmem:[#allocation3 + $0x84] ss:$16 sps:$4 sm:$0xff]   ;;  %v8867_v18 = vld [vmem:[#allocation3 + $0x8c] ss:$16 sps:$4 sm:$0xff]   ;;  %v8869_v19 = vld [vmem:[#allocation3 + $0x80] ss:$16 sps:$4 sm:$0xff]  }
  0x2c   :  { %283 = vmatpush1.bf16.msra.mxu0 %v8851_v7  ;;  %364 = vmatpush1.bf16.msra.mxu1 %v8852_v8  ;;  %v8870_v20 = vld [vmem:[#allocation3 + $0x88] ss:$16 sps:$4 sm:$0xff]   ;;  %v8871_v21 = vld [vmem:[#allocation3 + $0xa4] ss:$16 sps:$4 sm:$0xff]   ;;  %v8873_v22 = vld [vmem:[#allocation3 + $0xac] ss:$16 sps:$4 sm:$0xff]  }
  0x2d   :  { %284 = vmatprep.subr.bf16.mxu0 %v8853_v9  ;;  %365 = vmatprep.subr.bf16.mxu1 %v8855_v10  ;;  %v8875_v23 = vld [vmem:[#allocation3 + $0xa0] ss:$16 sps:$4 sm:$0xff]   ;;  %v8876_v24 = vld [vmem:[#allocation3 + $0xa8] ss:$16 sps:$4 sm:$0xff]   ;;  %v8877_v25 = vld [vmem:[#allocation3 + $0xc4] ss:$16 sps:$4 sm:$0xff]  }
  0x2e   :  { %v8879_v26 = vld [vmem:[#allocation3 + $0xcc] ss:$16 sps:$4 sm:$0xff]   ;;  %v8881_v27 = vld [vmem:[#allocation3 + $0xc0] ss:$16 sps:$4 sm:$0xff]   ;;  %v8882_v28 = vld [vmem:[#allocation3 + $0xc8] ss:$16 sps:$4 sm:$0xff]  }
  0x2f   :  { %v8883_v29 = vld [vmem:[#allocation3 + $0xe4] ss:$16 sps:$4 sm:$0xff]   ;;  %v8885_v30 = vld [vmem:[#allocation3 + $0xec] ss:$16 sps:$4 sm:$0xff]   ;;  %v8887_v31 = vld [vmem:[#allocation3 + $0xe0] ss:$16 sps:$4 sm:$0xff]  }
  0x30   :  { %285 = vmatpush1.bf16.msra.mxu0 %v8857_v11  ;;  %366 = vmatpush1.bf16.msra.mxu1 %v8858_v12  ;;  %v8888_v32 = vld [vmem:[#allocation3 + $0xe8] ss:$16 sps:$4 sm:$0xff]   ;;  %v52_v33 = vld [vmem:[%s12794_s0] sm:$0xff]  ;;  %v8897_v36 = vld [vmem:[#allocation5 + $0xc] ss:$16 sps:$4 sm:$0xff]  }
  0x31   :  { %286 = vmatprep.subr.bf16.mxu0 %v8859_v13  ;;  %367 = vmatprep.subr.bf16.mxu1 %v8861_v14  ;;  %v8891_v35 = vld [vmem:[#allocation5 + $0x4] ss:$16 sps:$4 sm:$0xff]   ;;  %v61_v37 = vpack.c.bf16 %v53_v34, %v52_v33  ;;  %v8889_v38 = vld [vmem:[#allocation5] ss:$16 sps:$4 sm:$0xff]   ;;  %v8895_v40 = vld [vmem:[#allocation5 + $0x8] ss:$16 sps:$4 sm:$0xff]  }
  0x32   :  { %v8894_v39 = vld [vmem:[#allocation5 + $0x24] ss:$16 sps:$4 sm:$0xff]   ;;  %v8892_v41 = vld [vmem:[#allocation5 + $0x20] ss:$16 sps:$4 sm:$0xff]   ;;  %v8903_v43 = vld [vmem:[#allocation5 + $0x2c] ss:$16 sps:$4 sm:$0xff]  }
  0x33   :  { %v54_v42 = vld [vmem:[%s12794_s0 + $0x10] sm:$0xff]  ;;  %v55_v44 = vld [vmem:[%s12794_s0 + $0x18] sm:$0xff]  ;;  %v56_v51 = vld [vmem:[%s12794_s0 + $0x20] sm:$0xff] }
  0x34   :  { %287 = vmatpush1.bf16.msra.mxu0 %v8863_v15  ;;  %368 = vmatpush1.bf16.msra.mxu1 %v8864_v16  ;;  %v8900_v45 = vld [vmem:[#allocation5 + $0x44] ss:$16 sps:$4 sm:$0xff]   ;;  %v8901_v46 = vld [vmem:[#allocation5 + $0x28] ss:$16 sps:$4 sm:$0xff]   ;;  %v62_v47 = vpack.c.bf16 %v55_v44, %v54_v42  ;;  %v8898_v48 = vld [vmem:[#allocation5 + $0x40] ss:$16 sps:$4 sm:$0xff]  }
  0x35   :  { %288 = vmatprep.subr.bf16.mxu0 %v8865_v17  ;;  %369 = vmatprep.subr.bf16.mxu1 %v8867_v18  ;;  %v8906_v49 = vld [vmem:[#allocation5 + $0x64] ss:$16 sps:$4 sm:$0xff]   ;;  %v8904_v50 = vld [vmem:[#allocation5 + $0x60] ss:$16 sps:$4 sm:$0xff]   ;;  %v57_v52 = vld [vmem:[%s12794_s0 + $0x28] sm:$0xff] }
  0x36   :  { %v8909_v53 = vld [vmem:[#allocation5 + $0x4c] ss:$16 sps:$4 sm:$0xff]   ;;  %v8907_v54 = vld [vmem:[#allocation5 + $0x48] ss:$16 sps:$4 sm:$0xff]   ;;  %v8912_v56 = vld [vmem:[#allocation5 + $0x84] ss:$16 sps:$4 sm:$0xff]   ;;  %v63_v59 = vpack.c.bf16 %v57_v52, %v56_v51 }
  0x37   :  { %v8915_v55 = vld [vmem:[#allocation5 + $0x6c] ss:$16 sps:$4 sm:$0xff]   ;;  %v8910_v57 = vld [vmem:[#allocation5 + $0x80] ss:$16 sps:$4 sm:$0xff]   ;;  %v8913_v58 = vld [vmem:[#allocation5 + $0x68] ss:$16 sps:$4 sm:$0xff]  }
  0x38   :  { %289 = vmatpush1.bf16.msra.mxu0 %v8869_v19  ;;  %370 = vmatpush1.bf16.msra.mxu1 %v8870_v20  ;;  %v8918_v60 = vld [vmem:[#allocation5 + $0x8c] ss:$16 sps:$4 sm:$0xff]   ;;  %v8921_v61 = vld [vmem:[#allocation5 + $0xa4] ss:$16 sps:$4 sm:$0xff]   ;;  %v8916_v1 = vld [vmem:[#allocation5 + $0x88] ss:$16 sps:$4 sm:$0xff]  }
  0x39   :  { %290 = vmatprep.subr.bf16.mxu0 %v8871_v21  ;;  %371 = vmatprep.subr.bf16.mxu1 %v8873_v22  ;;  %v58_v62 = vld [vmem:[%s12794_s0 + $0x30] sm:$0xff]  ;;  %v59_v63 = vld [vmem:[%s12794_s0 + $0x38] sm:$0xff]  ;;  %v60_v10 = vld [vmem:[%s12794_s0 + $0x40] sm:$0xff] }
  0x3a   :  { %v8919_v2 = vld [vmem:[#allocation5 + $0xa0] ss:$16 sps:$4 sm:$0xff]   ;;  %v8924_v3 = vld [vmem:[#allocation5 + $0xac] ss:$16 sps:$4 sm:$0xff]   ;;  %v8927_v4 = vld [vmem:[#allocation5 + $0xc4] ss:$16 sps:$4 sm:$0xff]   ;;  %v64_v6 = vpack.c.bf16 %v59_v63, %v58_v62  ;;  %v65_v15 = vpack.c.bf16 %v60_v10, %v60_v10 }
  0x3b   :  { %v8922_v5 = vld [vmem:[#allocation5 + $0xa8] ss:$16 sps:$4 sm:$0xff]   ;;  %v8925_v7 = vld [vmem:[#allocation5 + $0xc0] ss:$16 sps:$4 sm:$0xff]   ;;  %v8930_v8 = vld [vmem:[#allocation5 + $0xcc] ss:$16 sps:$4 sm:$0xff]  }
  0x3c   :  { %291 = vmatpush1.bf16.msra.mxu0 %v8875_v23  ;;  %372 = vmatpush1.bf16.msra.mxu1 %v8876_v24  ;;  %v8933_v9 = vld [vmem:[#allocation5 + $0xe4] ss:$16 sps:$4 sm:$0xff]   ;;  %v8928_v11 = vld [vmem:[#allocation5 + $0xc8] ss:$16 sps:$4 sm:$0xff]   ;;  %v8931_v12 = vld [vmem:[#allocation5 + $0xe0] ss:$16 sps:$4 sm:$0xff]  }
  0x3d   :  { %292 = vmatprep.subr.bf16.mxu0 %v8877_v25  ;;  %373 = vmatprep.subr.bf16.mxu1 %v8879_v26  ;;  %v8936_v13 = vld [vmem:[#allocation5 + $0xec] ss:$16 sps:$4 sm:$0xff]   ;;  %v8934_v14 = vld [vmem:[#allocation5 + $0xe8] ss:$16 sps:$4 sm:$0xff]   ;;  %v10086_v16 = vld [vmem:[%s12798_s4 + $0x4] ss:$16 sps:$4 sm:$0xff]  }
  0x3e   :  { %v10091_v17 = vld [vmem:[%s12798_s4 + $0xc] ss:$16 sps:$4 sm:$0xff]   ;;  %v10096_v18 = vld [vmem:[%s12798_s4] ss:$16 sps:$4 sm:$0xff]   ;;  %v10101_v19 = vld [vmem:[%s12798_s4 + $0x8] ss:$16 sps:$4 sm:$0xff]  }
  0x3f   :  { %v10110_v20 = vld [vmem:[%s12798_s4 + $0x24] ss:$16 sps:$4 sm:$0xff]   ;;  %v10115_v21 = vld [vmem:[%s12798_s4 + $0x2c] ss:$16 sps:$4 sm:$0xff]   ;;  %v10120_v22 = vld [vmem:[%s12798_s4 + $0x20] ss:$16 sps:$4 sm:$0xff]  }
  0x40   :  { %293 = vmatpush1.bf16.msra.mxu0 %v8881_v27  ;;  %374 = vmatpush1.bf16.msra.mxu1 %v8882_v28  ;;  %v10125_v23 = vld [vmem:[%s12798_s4 + $0x28] ss:$16 sps:$4 sm:$0xff]   ;;  %v10132_v24 = vld [vmem:[%s12798_s4 + $0x44] ss:$16 sps:$4 sm:$0xff]   ;;  %v10139_v25 = vld [vmem:[%s12798_s4 + $0x40] ss:$16 sps:$4 sm:$0xff]  }
  0x41   :  { %294 = vmatprep.subr.bf16.mxu0 %v8883_v29  ;;  %375 = vmatprep.subr.bf16.mxu1 %v8885_v30  ;;  %v10144_v26 = vld [vmem:[%s12798_s4 + $0x48] ss:$16 sps:$4 sm:$0xff]   ;;  %v10149_v27 = vld [vmem:[%s12798_s4 + $0x4c] ss:$16 sps:$4 sm:$0xff]   ;;  %v10155_v28 = vld [vmem:[%s12798_s4 + $0x64] ss:$16 sps:$4 sm:$0xff]  }
  0x42   :  { %v10160_v29 = vld [vmem:[%s12798_s4 + $0x6c] ss:$16 sps:$4 sm:$0xff]   ;;  %v10166_v30 = vld [vmem:[%s12798_s4 + $0x60] ss:$16 sps:$4 sm:$0xff]   ;;  %v10254_v44 = vld [vmem:[%s12798_s4 + $0xe4] ss:$16 sps:$4 sm:$0xff]  }
  0x43   :  { %v10187_v33 = vld [vmem:[%s12798_s4 + $0x8c] ss:$16 sps:$4 sm:$0xff]   ;;  %v10192_v34 = vld [vmem:[%s12798_s4 + $0x80] ss:$16 sps:$4 sm:$0xff]   ;;  %v10293_v51 = vld [vmem:[%s12798_s4 + $0x108] ss:$16 sps:$4 sm:$0xff]  }
  0x44   :  { %295 = vmatpush1.bf16.msra.mxu0 %v8887_v31  ;;  %376 = vmatpush1.bf16.msra.mxu1 %v8888_v32  ;;  %v10171_v31 = vld [vmem:[%s12798_s4 + $0x68] ss:$16 sps:$4 sm:$0xff]   ;;  %v10182_v32 = vld [vmem:[%s12798_s4 + $0x84] ss:$16 sps:$4 sm:$0xff]   ;;  %v10240_v42 = vld [vmem:[%s12798_s4 + $0xc0] ss:$16 sps:$4 sm:$0xff]  }
  0x45   :  { %674 = vmatprep.subr.bf16.mxu0 %v8891_v35  ;;  %715 = vmatprep.subr.bf16.mxu1 %v8897_v36  ;;  %v10197_v35 = vld [vmem:[%s12798_s4 + $0x88] ss:$16 sps:$4 sm:$0xff]   ;;  %v10206_v36 = vld [vmem:[%s12798_s4 + $0xa4] ss:$16 sps:$4 sm:$0xff]   ;;  %v10360_v62 = vld [vmem:[%s12798_s4 + $0x160] ss:$16 sps:$4 sm:$0xff]  }
  0x46   :  { %v10302_v52 = vld [vmem:[%s12798_s4 + $0x124] ss:$16 sps:$4 sm:$0xff]   ;;  %13034 = vst [vmem:[#allocation16_spill] sm:$0xff] %v10360_v62  ;;  %v10365_v63 = vld [vmem:[%s12798_s4 + $0x168] ss:$16 sps:$4 sm:$0xff]  }
  0x47   :  { %313 = vmatmul.mubr.bf16.vlgmr.msra.gmra.mrb[0].mxu0 %v61_v37  ;;  %394 = vmatmul.mubr.bf16.vlgmr.msra.gmra.mrb[0].mxu1 %v61_v37  ;;  %v10211_v37 = vld [vmem:[%s12798_s4 + $0xac] ss:$16 sps:$4 sm:$0xff]   ;;  %13035 = vst [vmem:[#allocation17_spill] sm:$0xff] %v10365_v63  ;;  %v10424_v10 = vld [vmem:[%s12798_s4 + $0x1c0] ss:$16 sps:$4 sm:$0xff]  }
  0x48   :  { %675 = vmatpush1.bf16.msra.mxu0 %v8889_v38  ;;  %322 = vmatprep.mubr.bf16.mxu0 %v12801_v0  ;;  %v10216_v38 = vld [vmem:[%s12798_s4 + $0xa0] ss:$16 sps:$4 sm:$0xff]   ;;  %13045 = vst [vmem:[#allocation27_spill] sm:$0xff] %v10424_v10 }
  0x49   :  { %676 = vmatprep.subr.bf16.mxu0 %v8894_v39  ;;  %403 = vmatprep.mubr.bf16.mxu1 %v12801_v0  ;;  %v10221_v39 = vld [vmem:[%s12798_s4 + $0xa8] ss:$16 sps:$4 sm:$0xff]  }
  0x4a   :  { %716 = vmatpush1.bf16.msra.mxu1 %v8895_v40  ;;  %v10230_v40 = vld [vmem:[%s12798_s4 + $0xc4] ss:$16 sps:$4 sm:$0xff]  }
  0x4b   :  { %717 = vmatprep.subr.bf16.mxu1 %v8903_v43  ;;  %v10245_v43 = vld [vmem:[%s12798_s4 + $0xc8] ss:$16 sps:$4 sm:$0xff]  }
  0x4c   :  { %677 = vmatpush1.bf16.msra.mxu0 %v8892_v41  ;;  %v10235_v41 = vld [vmem:[%s12798_s4 + $0xcc] ss:$16 sps:$4 sm:$0xff]  }
  0x4d   :  { %678 = vmatprep.subr.bf16.mxu0 %v8900_v45  ;;  %v10259_v45 = vld [vmem:[%s12798_s4 + $0xec] ss:$16 sps:$4 sm:$0xff]  }
  0x4e   :  { %718 = vmatpush1.bf16.msra.mxu1 %v8901_v46  ;;  %v10264_v46 = vld [vmem:[%s12798_s4 + $0xe0] ss:$16 sps:$4 sm:$0xff]  }
  0x4f   :  { %323 = vmatmul.mubr.bf16.gmra.mrb[4].mxu0 %v62_v47  ;;  %404 = vmatmul.mubr.bf16.gmra.mrb[4].mxu1 %v62_v47  ;;  %v10269_v47 = vld [vmem:[%s12798_s4 + $0xe8] ss:$16 sps:$4 sm:$0xff]  }
  0x50   :  { %679 = vmatpush1.bf16.msra.mxu0 %v8898_v48  ;;  %332 = vmatprep.mubr.bf16.mxu0 %v12801_v0  ;;  %v10278_v48 = vld [vmem:[%s12798_s4 + $0x104] ss:$16 sps:$4 sm:$0xff]  }
  0x51   :  { %413 = vmatprep.mubr.bf16.mxu1 %v12801_v0  ;;  %680 = vmatprep.subr.bf16.mxu0 %v8906_v49  ;;  %v10283_v49 = vld [vmem:[%s12798_s4 + $0x10c] ss:$16 sps:$4 sm:$0xff]  }
  0x52   :  { %719 = vmatprep.subr.bf16.mxu1 %v8909_v53  ;;  %v10307_v53 = vld [vmem:[%s12798_s4 + $0x12c] ss:$16 sps:$4 sm:$0xff]  }
  0x53   :  { %720 = vmatpush1.bf16.msra.mxu1 %v8907_v54  ;;  %v10312_v54 = vld [vmem:[%s12798_s4 + $0x120] ss:$16 sps:$4 sm:$0xff]  }
  0x54   :  { %681 = vmatpush1.bf16.msra.mxu0 %v8904_v50  ;;  %721 = vmatprep.subr.bf16.mxu1 %v8915_v55  ;;  %v10288_v50 = vld [vmem:[%s12798_s4 + $0x100] ss:$16 sps:$4 sm:$0xff]   ;;  %v10317_v55 = vld [vmem:[%s12798_s4 + $0x128] ss:$16 sps:$4 sm:$0xff]  }
  0x55   :  { %682 = vmatprep.subr.bf16.mxu0 %v8912_v56  ;;  %13027 = vst [vmem:[#allocation9_spill] sm:$0xff] %v10317_v55  ;;  %v10326_v56 = vld [vmem:[%s12798_s4 + $0x144] ss:$16 sps:$4 sm:$0xff]  }
  0x56   :  { %13028 = vst [vmem:[#allocation10_spill] sm:$0xff] %v10326_v56 }
  0x57   :  { %333 = vmatmul.mubr.bf16.gmra.mrb[8].mxu0 %v63_v59  ;;  %414 = vmatmul.mubr.bf16.gmra.mrb[8].mxu1 %v63_v59  ;;  %v10341_v59 = vld [vmem:[%s12798_s4 + $0x148] ss:$16 sps:$4 sm:$0xff]  }
  0x58   :  { %683 = vmatpush1.bf16.msra.mxu0 %v8910_v57  ;;  %722 = vmatpush1.bf16.msra.mxu1 %v8913_v58  ;;  %v10331_v57 = vld [vmem:[%s12798_s4 + $0x14c] ss:$16 sps:$4 sm:$0xff]   ;;  %v10336_v58 = vld [vmem:[%s12798_s4 + $0x140] ss:$16 sps:$4 sm:$0xff]   ;;  %13031 = vst [vmem:[#allocation13_spill] sm:$0xff] %v10341_v59 }
  0x59   :  { %342 = vmatprep.mubr.bf16.mxu0 %v12801_v0  ;;  %423 = vmatprep.mubr.bf16.mxu1 %v12801_v0  ;;  %13029 = vst [vmem:[#allocation11_spill] sm:$0xff] %v10331_v57  ;;  %13030 = vst [vmem:[#allocation12_spill] sm:$0xff] %v10336_v58 }
  0x5a   :  { %723 = vmatprep.subr.bf16.mxu1 %v8918_v60  ;;  %684 = vmatprep.subr.bf16.mxu0 %v8921_v61  ;;  %v10350_v60 = vld [vmem:[%s12798_s4 + $0x164] ss:$16 sps:$4 sm:$0xff]   ;;  %v10355_v61 = vld [vmem:[%s12798_s4 + $0x16c] ss:$16 sps:$4 sm:$0xff]  }
  0x5b   :  { %13032 = vst [vmem:[#allocation14_spill] sm:$0xff] %v10350_v60  ;;  %13033 = vst [vmem:[#allocation15_spill] sm:$0xff] %v10355_v61 }
  0x5c   :  { %724 = vmatpush1.bf16.msra.mxu1 %v8916_v1  ;;  %685 = vmatpush1.bf16.msra.mxu0 %v8919_v2  ;;  %v10374_v1 = vld [vmem:[%s12798_s4 + $0x184] ss:$16 sps:$4 sm:$0xff]   ;;  %v10379_v2 = vld [vmem:[%s12798_s4 + $0x18c] ss:$16 sps:$4 sm:$0xff]  }
  0x5d   :  { %725 = vmatprep.subr.bf16.mxu1 %v8924_v3  ;;  %686 = vmatprep.subr.bf16.mxu0 %v8927_v4  ;;  %13036 = vst [vmem:[#allocation18_spill] sm:$0xff] %v10374_v1  ;;  %13037 = vst [vmem:[#allocation19_spill] sm:$0xff] %v10379_v2  ;;  %v10384_v3 = vld [vmem:[%s12798_s4 + $0x180] ss:$16 sps:$4 sm:$0xff]   ;;  %v10389_v4 = vld [vmem:[%s12798_s4 + $0x188] ss:$16 sps:$4 sm:$0xff]  }
  0x5e   :  { %13038 = vst [vmem:[#allocation20_spill] sm:$0xff] %v10384_v3  ;;  %13039 = vst [vmem:[#allocation21_spill] sm:$0xff] %v10389_v4 }
  0x5f   :  { %343 = vmatmul.mubr.bf16.gmra.mrb[12].mxu0 %v64_v6  ;;  %424 = vmatmul.mubr.bf16.gmra.mrb[12].mxu1 %v64_v6  ;;  %v10403_v6 = vld [vmem:[%s12798_s4 + $0x1a4] ss:$16 sps:$4 sm:$0xff]  }
  0x60   :  { %726 = vmatpush1.bf16.msra.mxu1 %v8922_v5  ;;  %352 = vmatprep.mubr.bf16.mxu0 %v12801_v0  ;;  %v10398_v5 = vld [vmem:[%s12798_s4 + $0x1a0] ss:$16 sps:$4 sm:$0xff]   ;;  %13041 = vst [vmem:[#allocation23_spill] sm:$0xff] %v10403_v6 }
  0x61   :  { %433 = vmatprep.mubr.bf16.mxu1 %v12801_v0  ;;  %687 = vmatpush1.bf16.msra.mxu0 %v8925_v7  ;;  %13040 = vst [vmem:[#allocation22_spill] sm:$0xff] %v10398_v5  ;;  %v10408_v7 = vld [vmem:[%s12798_s4 + $0x1a8] ss:$16 sps:$4 sm:$0xff]  }
  0x62   :  { %727 = vmatprep.subr.bf16.mxu1 %v8930_v8  ;;  %688 = vmatprep.subr.bf16.mxu0 %v8933_v9  ;;  %13042 = vst [vmem:[#allocation24_spill] sm:$0xff] %v10408_v7  ;;  %v10413_v8 = vld [vmem:[%s12798_s4 + $0x1ac] ss:$16 sps:$4 sm:$0xff]   ;;  %v10418_v9 = vld [vmem:[%s12798_s4 + $0x1c4] ss:$16 sps:$4 sm:$0xff]  }
  0x63   :  { %13043 = vst [vmem:[#allocation25_spill] sm:$0xff] %v10413_v8  ;;  %13044 = vst [vmem:[#allocation26_spill] sm:$0xff] %v10418_v9 }
  0x64   :  { %728 = vmatpush1.bf16.msra.mxu1 %v8928_v11  ;;  %v10429_v11 = vld [vmem:[%s12798_s4 + $0x1cc] ss:$16 sps:$4 sm:$0xff]  }
  0x65   :  { %689 = vmatpush1.bf16.msra.mxu0 %v8931_v12  ;;  %729 = vmatprep.subr.bf16.mxu1 %v8936_v13  ;;  %13046 = vst [vmem:[#allocation28_spill] sm:$0xff] %v10429_v11  ;;  %v10435_v12 = vld [vmem:[%s12798_s4 + $0x1c8] ss:$16 sps:$4 sm:$0xff]   ;;  %v10440_v13 = vld [vmem:[%s12798_s4 + $0x1e4] ss:$16 sps:$4 sm:$0xff]  }
  0x66   :  { %1192 = vmatprep.subr.bf16.mxu0 %v10086_v16  ;;  %13047 = vst [vmem:[#allocation29_spill] sm:$0xff] %v10435_v12  ;;  %13048 = vst [vmem:[#allocation30_spill] sm:$0xff] %v10440_v13 }
  0x67   :  { %353 = vmatmul.mubr.bf16.gmra.mrb[16].mxu0 %v65_v15  ;;  %434 = vmatmul.mubr.bf16.gmra.mrb[16].mxu1 %v65_v15  ;;  %v10454_v15 = vld [vmem:[%s12798_s4 + $0x1e0] ss:$16 sps:$4 sm:$0xff]  }
  0x68   :  { %730 = vmatpush1.bf16.msra.mxu1 %v8934_v14  ;;  %706 = vmatprep.mubr.bf16.mxu0 %v12801_v0  ;;  %v10445_v14 = vld [vmem:[%s12798_s4 + $0x1ec] ss:$16 sps:$4 sm:$0xff]   ;;  %13050 = vst [vmem:[#allocation32_spill] sm:$0xff] %v10454_v15 }
  0x69   :  { %747 = vmatprep.mubr.bf16.mxu1 %v12801_v0  ;;  %1233 = vmatprep.subr.bf16.mxu1 %v10091_v17  ;;  %13049 = vst [vmem:[#allocation31_spill] sm:$0xff] %v10445_v14 }
  0x6f   :  { %707 = vmatmul.mubr.bf16.vlgmr.msra.gmra.mrb[20].mxu0 %v12801_v0  ;;  %748 = vmatmul.mubr.bf16.vlgmr.msra.gmra.mrb[20].mxu1 %v12801_v0  ;;  %v10459_v0 = vld [vmem:[%s12798_s4 + $0x1e8] ss:$16 sps:$4 sm:$0xff]  }
  0x70   :  { %1193 = vmatpush1.bf16.msra.mxu0 %v10096_v18  ;;  %1234 = vmatpush1.bf16.msra.mxu1 %v10101_v19  ;;  %13051 = vst [vmem:[#allocation33_spill] sm:$0xff] %v10459_v0 }
  0x71   :  { %1194 = vmatprep.subr.bf16.mxu0 %v10110_v20  ;;  %1235 = vmatprep.subr.bf16.mxu1 %v10115_v21 }
  0x74   :  { %1195 = vmatpush1.bf16.msra.mxu0 %v10120_v22  ;;  %1236 = vmatpush1.bf16.msra.mxu1 %v10125_v23 }
  0x75   :  { %1196 = vmatprep.subr.bf16.mxu0 %v10132_v24  ;;  %1237 = vmatprep.subr.bf16.mxu1 %v10149_v27 }
  0x78   :  { %1197 = vmatpush1.bf16.msra.mxu0 %v10139_v25  ;;  %1238 = vmatpush1.bf16.msra.mxu1 %v10144_v26 }
  0x79   :  { %1198 = vmatprep.subr.bf16.mxu0 %v10155_v28  ;;  %1239 = vmatprep.subr.bf16.mxu1 %v10160_v29 }
  0x7c   :  { %1199 = vmatpush1.bf16.msra.mxu0 %v10166_v30  ;;  %1240 = vmatpush1.bf16.msra.mxu1 %v10171_v31 }
  0x7d   :  { %1200 = vmatprep.subr.bf16.mxu0 %v10182_v32  ;;  %1241 = vmatprep.subr.bf16.mxu1 %v10187_v33 }
  0x80   :  { %1201 = vmatpush1.bf16.msra.mxu0 %v10192_v34  ;;  %1242 = vmatpush1.bf16.msra.mxu1 %v10197_v35 }
  0x81   :  { %1202 = vmatprep.subr.bf16.mxu0 %v10206_v36  ;;  %1243 = vmatprep.subr.bf16.mxu1 %v10211_v37 }
  0x84   :  { %1203 = vmatpush1.bf16.msra.mxu0 %v10216_v38  ;;  %1244 = vmatpush1.bf16.msra.mxu1 %v10221_v39 }
  0x85   :  { %1204 = vmatprep.subr.bf16.mxu0 %v10230_v40  ;;  %1245 = vmatprep.subr.bf16.mxu1 %v10235_v41 }
  0x88   :  { %1205 = vmatpush1.bf16.msra.mxu0 %v10240_v42  ;;  %1246 = vmatpush1.bf16.msra.mxu1 %v10245_v43 }
  0x89   :  { %1206 = vmatprep.subr.bf16.mxu0 %v10254_v44  ;;  %1247 = vmatprep.subr.bf16.mxu1 %v10259_v45 }
  0x8c   :  { %1207 = vmatpush1.bf16.msra.mxu0 %v10264_v46  ;;  %1248 = vmatpush1.bf16.msra.mxu1 %v10269_v47 }
  0x8d   :  { %1208 = vmatprep.subr.bf16.mxu0 %v10278_v48  ;;  %1249 = vmatprep.subr.bf16.mxu1 %v10283_v49 }
  0x90   :  { %1209 = vmatpush1.bf16.msra.mxu0 %v10288_v50  ;;  %1250 = vmatpush1.bf16.msra.mxu1 %v10293_v51 }
  0x91   :  { %1210 = vmatprep.subr.bf16.mxu0 %v10302_v52  ;;  %1251 = vmatprep.subr.bf16.mxu1 %v10307_v53 }
  0x94   :  { %1211 = vmatpush1.bf16.msra.mxu0 %v10312_v54  ;;  %1252 = vmatpush1.bf16.msra.mxu1 %v10317_v55 }
  0x95   :  { %1212 = vmatprep.subr.bf16.mxu0 %v10326_v56  ;;  %1253 = vmatprep.subr.bf16.mxu1 %v10331_v57 }
  0x98   :  { %1213 = vmatpush1.bf16.msra.mxu0 %v10336_v58  ;;  %1254 = vmatpush1.bf16.msra.mxu1 %v10341_v59 }
  0x99   :  { %1214 = vmatprep.subr.bf16.mxu0 %v10350_v60  ;;  %1255 = vmatprep.subr.bf16.mxu1 %v10355_v61 }
  0x9c   :  { %1215 = vmatpush1.bf16.msra.mxu0 %v10360_v62  ;;  %1256 = vmatpush1.bf16.msra.mxu1 %v10365_v63 }
  0x9d   :  { %1216 = vmatprep.subr.bf16.mxu0 %v10374_v1  ;;  %1257 = vmatprep.subr.bf16.mxu1 %v10379_v2 }
  0xa0   :  { %1217 = vmatpush1.bf16.msra.mxu0 %v10384_v3  ;;  %1258 = vmatpush1.bf16.msra.mxu1 %v10389_v4 }
  0xa1   :  { %1218 = vmatprep.subr.bf16.mxu0 %v10403_v6  ;;  %1259 = vmatprep.subr.bf16.mxu1 %v10413_v8  ;;  %v9982_v8 = vmov 0.0|0.0  }
  0xa2   :  { %1224 = vmatprep.mubr.bf16.mxu0 %v9982_v8  ;;  %1265 = vmatprep.mubr.bf16.mxu1 %v9982_v8 }
  0xa4   :  { %1219 = vmatpush1.bf16.msra.mxu0 %v10398_v5  ;;  %1260 = vmatpush1.bf16.msra.mxu1 %v10408_v7 }
  0xa5   :  { %1220 = vmatprep.subr.bf16.mxu0 %v10418_v9  ;;  %1261 = vmatprep.subr.bf16.mxu1 %v10429_v11  ;;  %v9897_v11 = vld [vmem:[#allocation5 + $0x4] ss:$16 sps:$4 sm:$0xff]   ;;  %v9898_v9 = vld [vmem:[#allocation5 + $0xc] ss:$16 sps:$4 sm:$0xff]  }
  0xa8   :  { %1221 = vmatpush1.bf16.msra.mxu0 %v10424_v10  ;;  %1262 = vmatpush1.bf16.msra.mxu1 %v10435_v12 }
  0xa9   :  { %1222 = vmatprep.subr.bf16.mxu0 %v10440_v13  ;;  %1263 = vmatprep.subr.bf16.mxu1 %v10445_v14 }
  0xac   :  { %1223 = vmatpush1.bf16.msra.mxu0 %v10454_v15  ;;  %1264 = vmatpush1.bf16.msra.mxu1 %v10459_v0 }
  0xad   :  { %1495 = vmatprep.subr.bf16.mxu0 %v9897_v11  ;;  %1536 = vmatprep.subr.bf16.mxu1 %v9898_v9 }
 0x11a   :  { %v314_v7 = vpop.f32.mrb[0].mxu0  ;;  %v395_v5 = vpop.f32.mrb[0].mxu1 }
 0x11b   :  { %v316_v6 = vpop.f32.mrb[1].mxu0  ;;  %v397_v8 = vpop.f32.mrb[1].mxu1 }
 0x11c   :  { %v10467_v4 = vpop.f32.mrb[2].mxu0  ;;  %v10469_v10 = vpop.f32.mrb[2].mxu1 }
 0x11d   :  { %13052 = vst [vmem:[#allocation34_spill] sm:$0xff] %v10467_v4  ;;  %13053 = vst [vmem:[#allocation35_spill] sm:$0xff] %v10469_v10  ;;  %v10471_v12 = vpop.f32.mrb[3].mxu0  ;;  %v10473_v13 = vpop.f32.mrb[3].mxu1 }
 0x11e   :  { %13054 = vst [vmem:[#allocation36_spill] sm:$0xff] %v10471_v12  ;;  %13055 = vst [vmem:[#allocation37_spill] sm:$0xff] %v10473_v13 }
 0x122   :  { %v10475_v14 = vpop.f32.mrb[4].mxu0  ;;  %v10477_v15 = vpop.f32.mrb[4].mxu1 }
 0x123   :  { %13056 = vst [vmem:[#allocation38_spill] sm:$0xff] %v10475_v14  ;;  %13057 = vst [vmem:[#allocation39_spill] sm:$0xff] %v10477_v15  ;;  %v10479_v0 = vpop.f32.mrb[5].mxu0  ;;  %v10481_v11 = vpop.f32.mrb[5].mxu1 }
 0x124   :  { %13058 = vst [vmem:[#allocation40_spill] sm:$0xff] %v10479_v0  ;;  %13059 = vst [vmem:[#allocation41_spill] sm:$0xff] %v10481_v11  ;;  %v10483_v9 = vpop.f32.mrb[6].mxu0  ;;  %v10485_v3 = vpop.f32.mrb[6].mxu1 }
 0x125   :  { %13060 = vst [vmem:[#allocation42_spill] sm:$0xff] %v10483_v9  ;;  %13061 = vst [vmem:[#allocation43_spill] sm:$0xff] %v10485_v3  ;;  %v10487_v2 = vpop.f32.mrb[7].mxu0  ;;  %v10489_v4 = vpop.f32.mrb[7].mxu1  ;;  %v100_v3 = vlaneseq }
 0x126   :  { %13062 = vst [vmem:[#allocation44_spill] sm:$0xff] %v10487_v2  ;;  %13063 = vst [vmem:[#allocation45_spill] sm:$0xff] %v10489_v4 }
 0x12a   :  { %v10491_v10 = vpop.f32.mrb[8].mxu0  ;;  %v10493_v12 = vpop.f32.mrb[8].mxu1 }
 0x12b   :  { %13064 = vst [vmem:[#allocation46_spill] sm:$0xff] %v10491_v10  ;;  %13065 = vst [vmem:[#allocation47_spill] sm:$0xff] %v10493_v12  ;;  %v10495_v13 = vpop.f32.mrb[9].mxu0  ;;  %v10497_v14 = vpop.f32.mrb[9].mxu1 }
 0x12c   :  { %13066 = vst [vmem:[#allocation48_spill] sm:$0xff] %v10495_v13  ;;  %13067 = vst [vmem:[#allocation49_spill] sm:$0xff] %v10497_v14  ;;  %v10499_v15 = vpop.f32.mrb[10].mxu0  ;;  %v10501_v0 = vpop.f32.mrb[10].mxu1 }
 0x12d   :  { %13068 = vst [vmem:[#allocation50_spill] sm:$0xff] %v10499_v15  ;;  %13069 = vst [vmem:[#allocation51_spill] sm:$0xff] %v10501_v0  ;;  %v10503_v11 = vpop.f32.mrb[11].mxu0  ;;  %v10505_v9 = vpop.f32.mrb[11].mxu1  ;;  %v101_v15 = vshrl.u32 %v100_v3, 7 }
 0x12e   :  { %13070 = vst [vmem:[#allocation52_spill] sm:$0xff] %v10503_v11  ;;  %13071 = vst [vmem:[#allocation53_spill] sm:$0xff] %v10505_v9 }
 0x12f   :  { %v10523_v11 = vsub.s32 0, %v101_v15  ;;  %v10525_v9 = vsub.s32 2, %v101_v15 }
 0x131   :  { %13080 = vst [vmem:[#allocation62_spill] sm:$0xff] %v10523_v11  ;;  %13081 = vst [vmem:[#allocation63_spill] sm:$0xff] %v10525_v9 }
 0x132   :  { %v10507_v2 = vpop.f32.mrb[12].mxu0  ;;  %v10509_v4 = vpop.f32.mrb[12].mxu1 }
 0x133   :  { %13072 = vst [vmem:[#allocation54_spill] sm:$0xff] %v10507_v2  ;;  %13073 = vst [vmem:[#allocation55_spill] sm:$0xff] %v10509_v4  ;;  %v10511_v10 = vpop.f32.mrb[13].mxu0  ;;  %v10513_v12 = vpop.f32.mrb[13].mxu1  ;;  %v98_v4 = vld [vmem:[%s12797_s3] sm:$0xf] }
 0x134   :  { %13074 = vst [vmem:[#allocation56_spill] sm:$0xff] %v10511_v10  ;;  %13075 = vst [vmem:[#allocation57_spill] sm:$0xff] %v10513_v12  ;;  %v10515_v13 = vpop.f32.mrb[14].mxu0  ;;  %v10517_v14 = vpop.f32.mrb[14].mxu1  ;;  %v10530_v10 = vsub.s32 1, %v101_v15  ;;  %v10532_v12 = vsub.s32 3, %v101_v15  ;;  %v10538_v3 = vrot.slane %v98_v4, %v10525_v9 }
 0x135   :  { %13076 = vst [vmem:[#allocation58_spill] sm:$0xff] %v10515_v13  ;;  %13077 = vst [vmem:[#allocation59_spill] sm:$0xff] %v10517_v14  ;;  %v10519_v1 = vpop.f32.mrb[15].mxu0  ;;  %v10521_v0 = vpop.f32.mrb[15].mxu1  ;;  %v10535_v13 = vrot.slane %v98_v4, %v10523_v11 }
 0x136   :  { %13078 = vst [vmem:[#allocation60_spill] sm:$0xff] %v10519_v1  ;;  %13079 = vst [vmem:[#allocation61_spill] sm:$0xff] %v10521_v0  ;;  %v10541_v0 = vrot.slane %v98_v4, %v10530_v10  ;;  %v10544_v1 = vrot.slane %v98_v4, %v10532_v12  ;;  %v396_v2 = vadd.f32 %v395_v5, %v10538_v3 }
 0x137   :  { %13082 = vst [vmem:[#allocation64_spill] sm:$0xff] %v10530_v10  ;;  %13083 = vst [vmem:[#allocation65_spill] sm:$0xff] %v10532_v12  ;;  %v315_v14 = vadd.f32 %v314_v7, %v10535_v13 }
 0x138   :  { %13084 = vst [vmem:[#allocation66_spill] sm:$0xff] %v10541_v0  ;;  %v317_v63 = vadd.f32 %v316_v6, %v10541_v0  ;;  %v398_v15 = vadd.f32 %v397_v8, %v10544_v1 }
 0x142   :  { %v708_v62 = vpop.f32.mrb[20].mxu0  ;;  %v749_v11 = vpop.f32.mrb[20].mxu1 }
 0x143   :  { %v756_v61 = vadd.f32 %v708_v62, %v315_v14  ;;  %v758_v60 = vadd.f32 %v749_v11, %v396_v2  ;;  %v710_v9 = vpop.f32.mrb[21].mxu0  ;;  %v751_v59 = vpop.f32.mrb[21].mxu1 }
 0x144   :  { %v757_v58 = vadd.f32 %v710_v9, %v317_v63  ;;  %v759_v10 = vadd.f32 %v751_v59, %v398_v15  ;;  %v712_v57 = vpop.f32.mrb[22].mxu0  ;;  %v753_v56 = vpop.f32.mrb[22].mxu1  ;;  %v9901_v9 = vld [vmem:[#allocation5 + $0x24] ss:$16 sps:$4 sm:$0xff]   ;;  %v9902_v15 = vld [vmem:[#allocation5 + $0x2c] ss:$16 sps:$4 sm:$0xff]  }
 0x145   :  { %v7937_v4 = vmul.f32 -1.442695, %v756_v61  ;;  %v713_v12 = vpop.f32.mrb[23].mxu0  ;;  %v754_v55 = vpop.f32.mrb[23].mxu1 }
 0x146   :  { %v7938_v7 = vmul.f32 -1.442695, %v757_v58  ;;  %v7939_v5 = vmul.f32 -1.442695, %v759_v10 }
 0x147   :  { %9609 = vpow2.f32 %v7937_v4  ;;  %v13085_v4 = vmov 0  }
 0x148   :  { %9611 = vpow2.f32 %v7938_v7  ;;  %v9903_v7 = vld [vmem:[#allocation5 + $0x20] ss:$16 sps:$4 sm:$0xff]  }
 0x149   :  { %9613 = vpow2.f32 %v7939_v5  ;;  %v9904_v5 = vld [vmem:[#allocation5 + $0x28] ss:$16 sps:$4 sm:$0xff]  }
 0x14a   :  { %9615 = vtanh.f32 %v758_v60  ;;  %v9900_v60 = vld [vmem:[#allocation5 + $0x8] ss:$16 sps:$4 sm:$0xff]  }
 0x151   :  { %v9610_v6 = vpop.eup %9609 }
 0x152   :  { %v9612_v0 = vpop.eup %9611  ;;  %v763_v8 = vadd.f32 1.0, %v9610_v6  ;;  %v9905_v6 = vld [vmem:[#allocation5 + $0x44] ss:$16 sps:$4 sm:$0xff]  }
 0x153   :  { %v769_v62 = vadd.f32 1.0, %v9612_v0  ;;  %v9614_v2 = vpop.eup %9613  ;;  %v9899_v0 = vld [vmem:[#allocation5] ss:$16 sps:$4 sm:$0xff]  }
 0x154   :  { %9617 = vrcp.f32 %v763_v8  ;;  %v9616_v63 = vpop.eup %9615  ;;  %v776_v61 = vadd.f32 1.0, %v9614_v2  ;;  %v9906_v8 = vld [vmem:[#allocation5 + $0x4c] ss:$16 sps:$4 sm:$0xff]   ;;  %v9908_v2 = vld [vmem:[#allocation5 + $0x48] ss:$16 sps:$4 sm:$0xff]  }
 0x155   :  { %9619 = vrcp.f32 %v769_v62  ;;  %v9907_v62 = vld [vmem:[#allocation5 + $0x40] ss:$16 sps:$4 sm:$0xff]  }
 0x156   :  { %9621 = vrcp.f32 %v776_v61  ;;  %v9913_v61 = vld [vmem:[#allocation5 + $0x84] ss:$16 sps:$4 sm:$0xff]  }
 0x15e   :  { %v9618_v59 = vpop.eup %9617 }
 0x15f   :  { %v9620_v57 = vpop.eup %9619  ;;  %v780_v56 = vmul.f32 %v9618_v59, %v9616_v63  ;;  %v9909_v63 = vld [vmem:[#allocation5 + $0x64] ss:$16 sps:$4 sm:$0xff]   ;;  %v9910_v59 = vld [vmem:[#allocation5 + $0x6c] ss:$16 sps:$4 sm:$0xff]  }
 0x160   :  { %v779_v12 = vmul.f32 0.0, %v9620_v57  ;;  %v9622_v58 = vpop.eup %9621  ;;  %v9911_v57 = vld [vmem:[#allocation5 + $0x60] ss:$16 sps:$4 sm:$0xff]  }
 0x162   :  { %v10550_v55 = vadd.f32 %v780_v56, %v779_v12  ;;  %v9912_v56 = vld [vmem:[#allocation5 + $0x68] ss:$16 sps:$4 sm:$0xff]   ;;  %v9914_v12 = vld [vmem:[#allocation5 + $0x8c] ss:$16 sps:$4 sm:$0xff]  }
 0x164   :  { %9623 = vtanh.f32 %v10550_v55 }
 0x16e   :  { %v9624_v10 = vpop.eup %9623 }
 0x16f   :  { %v783_v14 = vmul.f32 %v9624_v10, %v9622_v58  ;;  %v9915_v58 = vld [vmem:[#allocation5 + $0x80] ss:$16 sps:$4 sm:$0xff]   ;;  %v9916_v10 = vld [vmem:[#allocation5 + $0x88] ss:$16 sps:$4 sm:$0xff]  }
 0x171   :  { %v10553_v11 = vpack.c.bf16 %v783_v14, %v783_v14  ;;  %v9917_v14 = vld [vmem:[#allocation5 + $0xa4] ss:$16 sps:$4 sm:$0xff]  }
 0x173   :  { %1225 = vmatmul.mubr.bf16.vlgmr.msra.gmra.mrb[24].mxu0 %v10553_v11  ;;  %1266 = vmatmul.mubr.bf16.vlgmr.msra.gmra.mrb[24].mxu1 %v10553_v11 }
 0x174   :  { %1496 = vmatpush1.bf16.msra.mxu0 %v9899_v0  ;;  %1537 = vmatpush1.bf16.msra.mxu1 %v9900_v60  ;;  %v9918_v0 = vld [vmem:[#allocation5 + $0xac] ss:$16 sps:$4 sm:$0xff]   ;;  %v9919_v60 = vld [vmem:[#allocation5 + $0xa0] ss:$16 sps:$4 sm:$0xff]  }
 0x175   :  { %1497 = vmatprep.subr.bf16.mxu0 %v9901_v9  ;;  %1538 = vmatprep.subr.bf16.mxu1 %v9902_v15  ;;  %v9920_v9 = vld [vmem:[#allocation5 + $0xa8] ss:$16 sps:$4 sm:$0xff]   ;;  %v9921_v15 = vld [vmem:[#allocation5 + $0xc4] ss:$16 sps:$4 sm:$0xff]  }
 0x176   :  { %1527 = vmatprep.mubr.bf16.mxu0 %v13085_v4  ;;  %1568 = vmatprep.mubr.bf16.mxu1 %v13085_v4 }
 0x178   :  { %1498 = vmatpush1.bf16.msra.mxu0 %v9903_v7  ;;  %1539 = vmatpush1.bf16.msra.mxu1 %v9904_v5  ;;  %v9922_v7 = vld [vmem:[#allocation5 + $0xcc] ss:$16 sps:$4 sm:$0xff]   ;;  %v9923_v5 = vld [vmem:[#allocation5 + $0xc0] ss:$16 sps:$4 sm:$0xff]  }
 0x179   :  { %1499 = vmatprep.subr.bf16.mxu0 %v9905_v6  ;;  %1540 = vmatprep.subr.bf16.mxu1 %v9906_v8  ;;  %v9924_v6 = vld [vmem:[#allocation5 + $0xc8] ss:$16 sps:$4 sm:$0xff]   ;;  %v9925_v8 = vld [vmem:[#allocation5 + $0xe4] ss:$16 sps:$4 sm:$0xff]  }
 0x17c   :  { %1500 = vmatpush1.bf16.msra.mxu0 %v9907_v62  ;;  %1541 = vmatpush1.bf16.msra.mxu1 %v9908_v2  ;;  %v9926_v62 = vld [vmem:[#allocation5 + $0xec] ss:$16 sps:$4 sm:$0xff]   ;;  %v9927_v2 = vld [vmem:[#allocation5 + $0xe0] ss:$16 sps:$4 sm:$0xff]  }
 0x17d   :  { %1501 = vmatprep.subr.bf16.mxu0 %v9909_v63  ;;  %1542 = vmatprep.subr.bf16.mxu1 %v9910_v59  ;;  %v9928_v63 = vld [vmem:[#allocation5 + $0xe8] ss:$16 sps:$4 sm:$0xff]  }
 0x180   :  { %1502 = vmatpush1.bf16.msra.mxu0 %v9911_v57  ;;  %1543 = vmatpush1.bf16.msra.mxu1 %v9912_v56 }
 0x181   :  { %1503 = vmatprep.subr.bf16.mxu0 %v9913_v61  ;;  %1544 = vmatprep.subr.bf16.mxu1 %v9914_v12  ;;  %v13113_v12 = vld [vmem:[#allocation65_spill] sm:$0xff] }
 0x184   :  { %1504 = vmatpush1.bf16.msra.mxu0 %v9915_v58  ;;  %1545 = vmatpush1.bf16.msra.mxu1 %v9916_v10 }
 0x185   :  { %1505 = vmatprep.subr.bf16.mxu0 %v9917_v14  ;;  %1546 = vmatprep.subr.bf16.mxu1 %v9918_v0  ;;  %v13114_v14 = vld [vmem:[#allocation63_spill] sm:$0xff] }
 0x188   :  { %1506 = vmatpush1.bf16.msra.mxu0 %v9919_v60  ;;  %1547 = vmatpush1.bf16.msra.mxu1 %v9920_v9 }
 0x189   :  { %1507 = vmatprep.subr.bf16.mxu0 %v9921_v15  ;;  %1548 = vmatprep.subr.bf16.mxu1 %v9922_v7 }
 0x18c   :  { %1508 = vmatpush1.bf16.msra.mxu0 %v9923_v5  ;;  %1549 = vmatpush1.bf16.msra.mxu1 %v9924_v6 }
 0x18d   :  { %1509 = vmatprep.subr.bf16.mxu0 %v9925_v8  ;;  %1550 = vmatprep.subr.bf16.mxu1 %v9926_v62 }
 0x190   :  { %1510 = vmatpush1.bf16.msra.mxu0 %v9927_v2  ;;  %1551 = vmatpush1.bf16.msra.mxu1 %v9928_v63 }
 0x191   :  { %2013 = vmatprep.subr.bf16.mxu0 %v10086_v16  ;;  %2054 = vmatprep.subr.bf16.mxu1 %v10091_v17  ;;  %v13086_v16 = vld [vmem:[#allocation9_spill] sm:$0xff]  ;;  %v13087_v17 = vld [vmem:[#allocation10_spill] sm:$0xff] }
 0x193   :  { %1528 = vmatmul.mubr.bf16.vlgmr.msra.gmra.mrb[28].mxu0 %v10553_v11  ;;  %1569 = vmatmul.mubr.bf16.vlgmr.msra.gmra.mrb[28].mxu1 %v10553_v11 }
 0x194   :  { %2014 = vmatpush1.bf16.msra.mxu0 %v10096_v18  ;;  %2055 = vmatpush1.bf16.msra.mxu1 %v10101_v19  ;;  %v13088_v18 = vld [vmem:[#allocation11_spill] sm:$0xff]  ;;  %v13089_v19 = vld [vmem:[#allocation12_spill] sm:$0xff] }
 0x195   :  { %2015 = vmatprep.subr.bf16.mxu0 %v10110_v20  ;;  %2056 = vmatprep.subr.bf16.mxu1 %v10115_v21  ;;  %v13090_v20 = vld [vmem:[#allocation13_spill] sm:$0xff]  ;;  %v13091_v21 = vld [vmem:[#allocation14_spill] sm:$0xff] }
 0x198   :  { %2016 = vmatpush1.bf16.msra.mxu0 %v10120_v22  ;;  %2057 = vmatpush1.bf16.msra.mxu1 %v10125_v23  ;;  %v13092_v22 = vld [vmem:[#allocation15_spill] sm:$0xff]  ;;  %v13093_v23 = vld [vmem:[#allocation16_spill] sm:$0xff] }
 0x199   :  { %2017 = vmatprep.subr.bf16.mxu0 %v10132_v24  ;;  %2058 = vmatprep.subr.bf16.mxu1 %v10149_v27  ;;  %v13094_v24 = vld [vmem:[#allocation17_spill] sm:$0xff]  ;;  %v13097_v27 = vld [vmem:[#allocation20_spill] sm:$0xff] }
 0x19c   :  { %2018 = vmatpush1.bf16.msra.mxu0 %v10139_v25  ;;  %2059 = vmatpush1.bf16.msra.mxu1 %v10144_v26  ;;  %v13095_v25 = vld [vmem:[#allocation18_spill] sm:$0xff]  ;;  %v13096_v26 = vld [vmem:[#allocation19_spill] sm:$0xff] }
 0x19d   :  { %2019 = vmatprep.subr.bf16.mxu0 %v10155_v28  ;;  %2060 = vmatprep.subr.bf16.mxu1 %v10160_v29  ;;  %v13098_v28 = vld [vmem:[#allocation21_spill] sm:$0xff]  ;;  %v13099_v29 = vld [vmem:[#allocation23_spill] sm:$0xff] }
 0x1a0   :  { %2020 = vmatpush1.bf16.msra.mxu0 %v10166_v30  ;;  %2061 = vmatpush1.bf16.msra.mxu1 %v10171_v31  ;;  %v13100_v30 = vld [vmem:[#allocation25_spill] sm:$0xff]  ;;  %v13101_v31 = vld [vmem:[#allocation22_spill] sm:$0xff] }
 0x1a1   :  { %2021 = vmatprep.subr.bf16.mxu0 %v10182_v32  ;;  %2062 = vmatprep.subr.bf16.mxu1 %v10187_v33  ;;  %v13102_v32 = vld [vmem:[#allocation24_spill] sm:$0xff]  ;;  %v13103_v33 = vld [vmem:[#allocation26_spill] sm:$0xff] }
 0x1a4   :  { %2022 = vmatpush1.bf16.msra.mxu0 %v10192_v34  ;;  %2063 = vmatpush1.bf16.msra.mxu1 %v10197_v35  ;;  %v13104_v34 = vld [vmem:[#allocation28_spill] sm:$0xff]  ;;  %v13105_v35 = vld [vmem:[#allocation27_spill] sm:$0xff] }
 0x1a5   :  { %2023 = vmatprep.subr.bf16.mxu0 %v10206_v36  ;;  %2064 = vmatprep.subr.bf16.mxu1 %v10211_v37  ;;  %v13106_v36 = vld [vmem:[#allocation29_spill] sm:$0xff]  ;;  %v13107_v37 = vld [vmem:[#allocation30_spill] sm:$0xff] }
 0x1a8   :  { %2024 = vmatpush1.bf16.msra.mxu0 %v10216_v38  ;;  %2065 = vmatpush1.bf16.msra.mxu1 %v10221_v39  ;;  %v13108_v38 = vld [vmem:[#allocation31_spill] sm:$0xff]  ;;  %v13109_v39 = vld [vmem:[#allocation32_spill] sm:$0xff] }
 0x1a9   :  { %2025 = vmatprep.subr.bf16.mxu0 %v10230_v40  ;;  %2066 = vmatprep.subr.bf16.mxu1 %v10235_v41  ;;  %v13110_v40 = vld [vmem:[#allocation33_spill] sm:$0xff] }
 0x1aa   :  { %v10625_v41 = vld [vmem:[#allocation5 + $0x4] ss:$16 sps:$4 sm:$0xff]  }
 0x1ac   :  { %2026 = vmatpush1.bf16.msra.mxu0 %v10240_v42  ;;  %2067 = vmatpush1.bf16.msra.mxu1 %v10245_v43  ;;  %v10627_v42 = vld [vmem:[#allocation5 + $0xc] ss:$16 sps:$4 sm:$0xff]   ;;  %v850_v43 = vld [vmem:[%s12799_s5] sm:$0xf] }
 0x1ad   :  { %2027 = vmatprep.subr.bf16.mxu0 %v10254_v44  ;;  %2068 = vmatprep.subr.bf16.mxu1 %v10259_v45  ;;  %v13111_v44 = vld [vmem:[#allocation62_spill] sm:$0xff]  ;;  %v867_v58 = vrot.slane %v850_v43, %v13113_v12  ;;  %v863_v0 = vrot.slane %v850_v43, %v13114_v14 }
 0x1ae   :  { %v855_v45 = vrot.slane %v850_v43, %v13111_v44 }
 0x1b0   :  { %2028 = vmatpush1.bf16.msra.mxu0 %v10264_v46  ;;  %2069 = vmatpush1.bf16.msra.mxu1 %v10269_v47  ;;  %v13112_v46 = vld [vmem:[#allocation64_spill] sm:$0xff] }
 0x1b1   :  { %2029 = vmatprep.subr.bf16.mxu0 %v10278_v48  ;;  %2070 = vmatprep.subr.bf16.mxu1 %v10283_v49  ;;  %v859_v47 = vrot.slane %v850_v43, %v13112_v46 }
 0x1b4   :  { %2030 = vmatpush1.bf16.msra.mxu0 %v10288_v50  ;;  %2071 = vmatpush1.bf16.msra.mxu1 %v10293_v51 }
 0x1b5   :  { %2031 = vmatprep.subr.bf16.mxu0 %v10302_v52  ;;  %2072 = vmatprep.subr.bf16.mxu1 %v10307_v53 }
 0x1b8   :  { %2032 = vmatpush1.bf16.msra.mxu0 %v10312_v54  ;;  %2073 = vmatpush1.bf16.msra.mxu1 %v13086_v16 }
 0x1b9   :  { %2033 = vmatprep.subr.bf16.mxu0 %v13087_v17  ;;  %2074 = vmatprep.subr.bf16.mxu1 %v13088_v18 }
 0x1bc   :  { %2034 = vmatpush1.bf16.msra.mxu0 %v13089_v19  ;;  %2075 = vmatpush1.bf16.msra.mxu1 %v13090_v20  ;;  %v13115_v19 = vld [vmem:[#allocation34_spill] sm:$0xff] }
 0x1bd   :  { %2035 = vmatprep.subr.bf16.mxu0 %v13091_v21  ;;  %2076 = vmatprep.subr.bf16.mxu1 %v13092_v22  ;;  %v319_v20 = vadd.f32 %v13115_v19, %v10535_v13  ;;  %v13116_v21 = vld [vmem:[#allocation35_spill] sm:$0xff]  ;;  %v10686_v19 = vld [vmem:[#allocation5 + $0x48] ss:$16 sps:$4 sm:$0xff]  }
 0x1be   :  { %v400_v22 = vadd.f32 %v13116_v21, %v10538_v3  ;;  %v10692_v21 = vld [vmem:[#allocation5 + $0x6c] ss:$16 sps:$4 sm:$0xff]  }
 0x1c0   :  { %2036 = vmatpush1.bf16.msra.mxu0 %v13093_v23  ;;  %2077 = vmatpush1.bf16.msra.mxu1 %v13094_v24  ;;  %v13117_v23 = vld [vmem:[#allocation66_spill] sm:$0xff]  ;;  %v13118_v24 = vld [vmem:[#allocation36_spill] sm:$0xff] }
 0x1c1   :  { %2037 = vmatprep.subr.bf16.mxu0 %v13095_v25  ;;  %2078 = vmatprep.subr.bf16.mxu1 %v13096_v26  ;;  %v321_v25 = vadd.f32 %v13118_v24, %v13117_v23  ;;  %v13119_v26 = vld [vmem:[#allocation37_spill] sm:$0xff]  ;;  %v10698_v24 = vld [vmem:[#allocation5 + $0x68] ss:$16 sps:$4 sm:$0xff]  }
 0x1c4   :  { %2038 = vmatpush1.bf16.msra.mxu0 %v13097_v27  ;;  %2079 = vmatpush1.bf16.msra.mxu1 %v13098_v28  ;;  %v402_v27 = vadd.f32 %v13119_v26, %v10544_v1  ;;  %v10704_v26 = vld [vmem:[#allocation5 + $0x8c] ss:$16 sps:$4 sm:$0xff]  }
 0x1c5   :  { %2039 = vmatprep.subr.bf16.mxu0 %v13099_v29  ;;  %2080 = vmatprep.subr.bf16.mxu1 %v13100_v30 }
 0x1c8   :  { %2040 = vmatpush1.bf16.msra.mxu0 %v13101_v31  ;;  %2081 = vmatpush1.bf16.msra.mxu1 %v13102_v32 }
 0x1c9   :  { %2041 = vmatprep.subr.bf16.mxu0 %v13103_v33  ;;  %2082 = vmatprep.subr.bf16.mxu1 %v13104_v34 }
 0x1cc   :  { %2042 = vmatpush1.bf16.msra.mxu0 %v13105_v35  ;;  %2083 = vmatpush1.bf16.msra.mxu1 %v13106_v36 }
 0x1cd   :  { %2043 = vmatprep.subr.bf16.mxu0 %v13107_v37  ;;  %2084 = vmatprep.subr.bf16.mxu1 %v13108_v38 }
 0x1d0   :  { %2044 = vmatpush1.bf16.msra.mxu0 %v13109_v39  ;;  %2085 = vmatpush1.bf16.msra.mxu1 %v13110_v40 }
 0x1d1   :  { %2316 = vmatprep.subr.bf16.mxu0 %v10625_v41  ;;  %2357 = vmatprep.subr.bf16.mxu1 %v10627_v42 }
 0x246   :  { %v1226_v48 = vpop.f32.mrb[24].mxu0  ;;  %v1267_v49 = vpop.f32.mrb[24].mxu1 }
 0x247   :  { %v1227_v50 = vadd.f32 %v1226_v48, %v855_v45  ;;  %v1228_v51 = vpop.f32.mrb[25].mxu0  ;;  %v1269_v52 = vpop.f32.mrb[25].mxu1  ;;  %v1268_v9 = vadd.f32 %v1267_v49, %v863_v0 }
 0x248   :  { %v1229_v53 = vadd.f32 %v1228_v51, %v859_v47  ;;  %v1230_v54 = vpop.f32.mrb[26].mxu0  ;;  %v1271_v11 = vpop.f32.mrb[26].mxu1  ;;  %v1270_v10 = vadd.f32 %v1269_v52, %v867_v58 }
 0x249   :  { %v8004_v59 = vmul.f32 -1.442695, %v1227_v50  ;;  %v1231_v57 = vpop.f32.mrb[27].mxu0  ;;  %v1272_v56 = vpop.f32.mrb[27].mxu1 }
 0x24a   :  { %v8005_v61 = vmul.f32 -1.442695, %v1229_v53  ;;  %v8006_v60 = vmul.f32 -1.442695, %v1270_v10 }
 0x24b   :  { %9625 = vpow2.f32 %v8004_v59 }
 0x24c   :  { %9627 = vpow2.f32 %v8005_v61 }
 0x24d   :  { %9629 = vpow2.f32 %v8006_v60 }
 0x24e   :  { %9631 = vtanh.f32 %v1268_v9 }
 0x255   :  { %v9626_v15 = vpop.eup %9625 }
 0x256   :  { %v9628_v7 = vpop.eup %9627  ;;  %v1277_v5 = vadd.f32 1.0, %v9626_v15 }
 0x257   :  { %v1283_v6 = vadd.f32 1.0, %v9628_v7  ;;  %v9630_v8 = vpop.eup %9629 }
 0x258   :  { %9633 = vrcp.f32 %v1277_v5  ;;  %v9632_v62 = vpop.eup %9631  ;;  %v1290_v17 = vadd.f32 1.0, %v9630_v8  ;;  %v10656_v5 = vld [vmem:[#allocation5] ss:$16 sps:$4 sm:$0xff]  }
 0x259   :  { %9635 = vrcp.f32 %v1283_v6  ;;  %v10658_v6 = vld [vmem:[#allocation5 + $0x8] ss:$16 sps:$4 sm:$0xff]  }
 0x25a   :  { %9637 = vrcp.f32 %v1290_v17  ;;  %v10678_v17 = vld [vmem:[#allocation5 + $0x4c] ss:$16 sps:$4 sm:$0xff]  }
 0x262   :  { %v9634_v2 = vpop.eup %9633 }
 0x263   :  { %v9636_v63 = vpop.eup %9635  ;;  %v1294_v16 = vmul.f32 %v9634_v2, %v9632_v62  ;;  %v10662_v62 = vld [vmem:[#allocation5 + $0x24] ss:$16 sps:$4 sm:$0xff]   ;;  %v10664_v2 = vld [vmem:[#allocation5 + $0x2c] ss:$16 sps:$4 sm:$0xff]  }
 0x264   :  { %v1293_v18 = vmul.f32 0.0, %v9636_v63  ;;  %v9638_v47 = vpop.eup %9637  ;;  %v10672_v63 = vld [vmem:[#allocation5 + $0x28] ss:$16 sps:$4 sm:$0xff]  }
 0x266   :  { %v10646_v28 = vadd.f32 %v1294_v16, %v1293_v18  ;;  %v1529_v29 = vpop.f32.mrb[28].mxu0  ;;  %v1570_v30 = vpop.f32.mrb[28].mxu1  ;;  %v10676_v16 = vld [vmem:[#allocation5 + $0x44] ss:$16 sps:$4 sm:$0xff]   ;;  %v10684_v18 = vld [vmem:[#allocation5 + $0x40] ss:$16 sps:$4 sm:$0xff]  }
 0x267   :  { %v1577_v31 = vadd.f32 %v1529_v29, %v319_v20  ;;  %v1579_v32 = vadd.f32 %v1570_v30, %v400_v22  ;;  %v1531_v33 = vpop.f32.mrb[29].mxu0  ;;  %v1572_v34 = vpop.f32.mrb[29].mxu1  ;;  %v10690_v20 = vld [vmem:[#allocation5 + $0x64] ss:$16 sps:$4 sm:$0xff]   ;;  %v10696_v22 = vld [vmem:[#allocation5 + $0x60] ss:$16 sps:$4 sm:$0xff]  }
 0x268   :  { %9639 = vtanh.f32 %v10646_v28  ;;  %v1578_v35 = vadd.f32 %v1531_v33, %v321_v25  ;;  %v1580_v36 = vadd.f32 %v1572_v34, %v402_v27  ;;  %v1533_v37 = vpop.f32.mrb[30].mxu0  ;;  %v1574_v38 = vpop.f32.mrb[30].mxu1  ;;  %v10702_v25 = vld [vmem:[#allocation5 + $0x84] ss:$16 sps:$4 sm:$0xff]   ;;  %v10708_v27 = vld [vmem:[#allocation5 + $0x80] ss:$16 sps:$4 sm:$0xff]  }
 0x269   :  { %v8039_v39 = vmul.f32 -1.442695, %v1577_v31  ;;  %v1534_v40 = vpop.f32.mrb[31].mxu0  ;;  %v1575_v43 = vpop.f32.mrb[31].mxu1  ;;  %v10710_v29 = vld [vmem:[#allocation5 + $0x88] ss:$16 sps:$4 sm:$0xff]  }
 0x26a   :  { %v8040_v45 = vmul.f32 -1.442695, %v1578_v35  ;;  %v8041_v49 = vmul.f32 -1.442695, %v1580_v36  ;;  %v10714_v30 = vld [vmem:[#allocation5 + $0xa4] ss:$16 sps:$4 sm:$0xff]  }
 0x26b   :  { %9641 = vpow2.f32 %v8039_v39  ;;  %v10716_v31 = vld [vmem:[#allocation5 + $0xac] ss:$16 sps:$4 sm:$0xff]   ;;  %v10722_v33 = vld [vmem:[#allocation5 + $0xa8] ss:$16 sps:$4 sm:$0xff]   ;;  %v10726_v34 = vld [vmem:[#allocation5 + $0xc4] ss:$16 sps:$4 sm:$0xff]  }
 0x26c   :  { %9643 = vpow2.f32 %v8040_v45  ;;  %v10728_v35 = vld [vmem:[#allocation5 + $0xcc] ss:$16 sps:$4 sm:$0xff]   ;;  %v10732_v36 = vld [vmem:[#allocation5 + $0xc0] ss:$16 sps:$4 sm:$0xff]   ;;  %v10734_v37 = vld [vmem:[#allocation5 + $0xc8] ss:$16 sps:$4 sm:$0xff]  }
 0x26d   :  { %9645 = vpow2.f32 %v8041_v49  ;;  %v10738_v38 = vld [vmem:[#allocation5 + $0xe4] ss:$16 sps:$4 sm:$0xff]   ;;  %v10740_v39 = vld [vmem:[#allocation5 + $0xec] ss:$16 sps:$4 sm:$0xff]   ;;  %v10744_v40 = vld [vmem:[#allocation5 + $0xe0] ss:$16 sps:$4 sm:$0xff]  }
 0x26e   :  { %9647 = vtanh.f32 %v1579_v32  ;;  %v10720_v32 = vld [vmem:[#allocation5 + $0xa0] ss:$16 sps:$4 sm:$0xff]   ;;  %v10746_v43 = vld [vmem:[#allocation5 + $0xe8] ss:$16 sps:$4 sm:$0xff]   ;;  %v10757_v45 = vld [vmem:[%s12798_s4 + $0x4] ss:$16 sps:$4 sm:$0xff]  }
 0x26f   :  { %v10772_v49 = vld [vmem:[%s12798_s4 + $0x8] ss:$16 sps:$4 sm:$0xff]  }
 0x272   :  { %v9640_v48 = vpop.eup %9639 }
 0x273   :  { %v1297_v50 = vmul.f32 %v9640_v48, %v9638_v47  ;;  %v10762_v47 = vld [vmem:[%s12798_s4 + $0xc] ss:$16 sps:$4 sm:$0xff]   ;;  %v10767_v48 = vld [vmem:[%s12798_s4] ss:$16 sps:$4 sm:$0xff]  }
 0x275   :  { %v9642_v51 = vpop.eup %9641  ;;  %1298 = vst [vmem:[%s12800_s6] sm:$0xff] %v1297_v50  ;;  %v1606_v52 = vpack.c.bf16 %v1297_v50, %v1297_v50  ;;  %v10781_v50 = vld [vmem:[%s12798_s4 + $0x24] ss:$16 sps:$4 sm:$0xff]  }
 0x276   :  { %v9644_v53 = vpop.eup %9643  ;;  %v1584_v54 = vadd.f32 1.0, %v9642_v51  ;;  %13120 = vst [vmem:[#allocation9_spill] sm:$0xff] %v10781_v50  ;;  %v10786_v51 = vld [vmem:[%s12798_s4 + $0x2c] ss:$16 sps:$4 sm:$0xff]  }
 0x277   :  { %v1590_v11 = vadd.f32 1.0, %v9644_v53  ;;  %2045 = vmatprep.mubr.bf16.mxu0 %v1606_v52  ;;  %2086 = vmatprep.mubr.bf16.mxu1 %v1606_v52  ;;  %v9646_v59 = vpop.eup %9645  ;;  %13121 = vst [vmem:[#allocation10_spill] sm:$0xff] %v10786_v51  ;;  %v10791_v52 = vld [vmem:[%s12798_s4 + $0x20] ss:$16 sps:$4 sm:$0xff]   ;;  %v10796_v53 = vld [vmem:[%s12798_s4 + $0x28] ss:$16 sps:$4 sm:$0xff]  }
 0x278   :  { %9649 = vrcp.f32 %v1584_v54  ;;  %v9648_v57 = vpop.eup %9647  ;;  %v1597_v10 = vadd.f32 1.0, %v9646_v59  ;;  %13122 = vst [vmem:[#allocation11_spill] sm:$0xff] %v10791_v52  ;;  %13123 = vst [vmem:[#allocation12_spill] sm:$0xff] %v10796_v53  ;;  %v10805_v54 = vld [vmem:[%s12798_s4 + $0x44] ss:$16 sps:$4 sm:$0xff]  }
 0x279   :  { %9651 = vrcp.f32 %v1590_v11  ;;  %13124 = vst [vmem:[#allocation13_spill] sm:$0xff] %v10805_v54  ;;  %v10810_v11 = vld [vmem:[%s12798_s4 + $0x4c] ss:$16 sps:$4 sm:$0xff]   ;;  %v10815_v59 = vld [vmem:[%s12798_s4 + $0x40] ss:$16 sps:$4 sm:$0xff]  }
 0x27a   :  { %9653 = vrcp.f32 %v1597_v10  ;;  %13125 = vst [vmem:[#allocation14_spill] sm:$0xff] %v10810_v11  ;;  %13126 = vst [vmem:[#allocation15_spill] sm:$0xff] %v10815_v59  ;;  %v10844_v10 = vld [vmem:[%s12798_s4 + $0x68] ss:$16 sps:$4 sm:$0xff]  }
 0x27b   :  { %13131 = vst [vmem:[#allocation20_spill] sm:$0xff] %v10844_v10 }
 0x282   :  { %v9650_v56 = vpop.eup %9649 }
 0x283   :  { %v9652_v61 = vpop.eup %9651  ;;  %v1601_v58 = vmul.f32 %v9650_v56, %v9648_v57  ;;  %v10820_v57 = vld [vmem:[%s12798_s4 + $0x48] ss:$16 sps:$4 sm:$0xff]   ;;  %v10829_v56 = vld [vmem:[%s12798_s4 + $0x64] ss:$16 sps:$4 sm:$0xff]  }
 0x284   :  { %v1600_v0 = vmul.f32 %v9652_v61, %v10550_v55  ;;  %v9654_v9 = vpop.eup %9653  ;;  %v10670_v55 = vld [vmem:[#allocation5 + $0x20] ss:$16 sps:$4 sm:$0xff]   ;;  %13127 = vst [vmem:[#allocation16_spill] sm:$0xff] %v10820_v57  ;;  %13128 = vst [vmem:[#allocation17_spill] sm:$0xff] %v10829_v56  ;;  %v10834_v61 = vld [vmem:[%s12798_s4 + $0x6c] ss:$16 sps:$4 sm:$0xff]  }
 0x285   :  { %13129 = vst [vmem:[#allocation18_spill] sm:$0xff] %v10834_v61 }
 0x286   :  { %v10653_v60 = vadd.f32 %v1601_v58, %v1600_v0  ;;  %v10839_v58 = vld [vmem:[%s12798_s4 + $0x60] ss:$16 sps:$4 sm:$0xff]   ;;  %v10853_v0 = vld [vmem:[%s12798_s4 + $0x84] ss:$16 sps:$4 sm:$0xff]  }
 0x287   :  { %13130 = vst [vmem:[#allocation19_spill] sm:$0xff] %v10839_v58  ;;  %13132 = vst [vmem:[#allocation21_spill] sm:$0xff] %v10853_v0 }
 0x288   :  { %9655 = vtanh.f32 %v10653_v60 }
 0x292   :  { %v9656_v15 = vpop.eup %9655 }
 0x293   :  { %v1604_v7 = vmul.f32 %v9656_v15, %v9654_v9  ;;  %v10858_v9 = vld [vmem:[%s12798_s4 + $0x8c] ss:$16 sps:$4 sm:$0xff]   ;;  %v10863_v15 = vld [vmem:[%s12798_s4 + $0x80] ss:$16 sps:$4 sm:$0xff]  }
 0x294   :  { %13133 = vst [vmem:[#allocation23_spill] sm:$0xff] %v10858_v9  ;;  %13134 = vst [vmem:[#allocation25_spill] sm:$0xff] %v10863_v15 }
 0x295   :  { %v10660_v8 = vpack.c.bf16 %v1604_v7, %v1604_v7  ;;  %v10868_v7 = vld [vmem:[%s12798_s4 + $0x88] ss:$16 sps:$4 sm:$0xff]  }
 0x296   :  { %13135 = vst [vmem:[#allocation22_spill] sm:$0xff] %v10868_v7 }
 0x297   :  { %2046 = vmatmul.mubr.bf16.vlgmr.msra.gmra.mrb[32].mxu0 %v10660_v8  ;;  %2087 = vmatmul.mubr.bf16.vlgmr.msra.gmra.mrb[32].mxu1 %v10660_v8 }
 0x298   :  { %2317 = vmatpush1.bf16.msra.mxu0 %v10656_v5  ;;  %2358 = vmatpush1.bf16.msra.mxu1 %v10658_v6 }
 0x299   :  { %2318 = vmatprep.subr.bf16.mxu0 %v10662_v62  ;;  %2359 = vmatprep.subr.bf16.mxu1 %v10664_v2 }
 0x29a   :  { %2348 = vmatprep.mubr.bf16.mxu0 %v13085_v4  ;;  %2389 = vmatprep.mubr.bf16.mxu1 %v13085_v4 }
 0x29c   :  { %2319 = vmatpush1.bf16.msra.mxu0 %v10670_v55  ;;  %2360 = vmatpush1.bf16.msra.mxu1 %v10672_v63 }
 0x29d   :  { %2320 = vmatprep.subr.bf16.mxu0 %v10676_v16  ;;  %2361 = vmatprep.subr.bf16.mxu1 %v10678_v17 }
 0x2a0   :  { %2321 = vmatpush1.bf16.msra.mxu0 %v10684_v18  ;;  %2362 = vmatpush1.bf16.msra.mxu1 %v10686_v19 }
 0x2a1   :  { %2322 = vmatprep.subr.bf16.mxu0 %v10690_v20  ;;  %2363 = vmatprep.subr.bf16.mxu1 %v10692_v21 }
 0x2a4   :  { %2323 = vmatpush1.bf16.msra.mxu0 %v10696_v22  ;;  %2364 = vmatpush1.bf16.msra.mxu1 %v10698_v24 }
 0x2a5   :  { %2324 = vmatprep.subr.bf16.mxu0 %v10702_v25  ;;  %2365 = vmatprep.subr.bf16.mxu1 %v10704_v26 }
 0x2a8   :  { %2325 = vmatpush1.bf16.msra.mxu0 %v10708_v27  ;;  %2366 = vmatpush1.bf16.msra.mxu1 %v10710_v29 }
 0x2a9   :  { %2326 = vmatprep.subr.bf16.mxu0 %v10714_v30  ;;  %2367 = vmatprep.subr.bf16.mxu1 %v10716_v31 }
 0x2ac   :  { %2327 = vmatpush1.bf16.msra.mxu0 %v10720_v32  ;;  %2368 = vmatpush1.bf16.msra.mxu1 %v10722_v33 }
 0x2ad   :  { %2328 = vmatprep.subr.bf16.mxu0 %v10726_v34  ;;  %2369 = vmatprep.subr.bf16.mxu1 %v10728_v35 }
 0x2b0   :  { %2329 = vmatpush1.bf16.msra.mxu0 %v10732_v36  ;;  %2370 = vmatpush1.bf16.msra.mxu1 %v10734_v37 }
 0x2b1   :  { %2330 = vmatprep.subr.bf16.mxu0 %v10738_v38  ;;  %2371 = vmatprep.subr.bf16.mxu1 %v10740_v39 }
 0x2b4   :  { %2331 = vmatpush1.bf16.msra.mxu0 %v10744_v40  ;;  %2372 = vmatpush1.bf16.msra.mxu1 %v10746_v43 }
 0x2b5   :  { %2834 = vmatprep.subr.bf16.mxu0 %v10757_v45  ;;  %2875 = vmatprep.subr.bf16.mxu1 %v10762_v47 }
 0x2b7   :  { %2349 = vmatmul.mubr.bf16.vlgmr.msra.gmra.mrb[36].mxu0 %v10660_v8  ;;  %2390 = vmatmul.mubr.bf16.vlgmr.msra.gmra.mrb[36].mxu1 %v10660_v8  ;;  %v10877_v8 = vld [vmem:[%s12798_s4 + $0xa4] ss:$16 sps:$4 sm:$0xff]  }
 0x2b8   :  { %2835 = vmatpush1.bf16.msra.mxu0 %v10767_v48  ;;  %2876 = vmatpush1.bf16.msra.mxu1 %v10772_v49  ;;  %13136 = vst [vmem:[#allocation24_spill] sm:$0xff] %v10877_v8 }
 0x2b9   :  { %2836 = vmatprep.subr.bf16.mxu0 %v10781_v50  ;;  %2877 = vmatprep.subr.bf16.mxu1 %v10786_v51 }
 0x2bc   :  { %2837 = vmatpush1.bf16.msra.mxu0 %v10791_v52  ;;  %2878 = vmatpush1.bf16.msra.mxu1 %v10796_v53 }
 0x2bd   :  { %2838 = vmatprep.subr.bf16.mxu0 %v10805_v54  ;;  %2879 = vmatprep.subr.bf16.mxu1 %v10810_v11 }
 0x2c0   :  { %2839 = vmatpush1.bf16.msra.mxu0 %v10815_v59  ;;  %2880 = vmatpush1.bf16.msra.mxu1 %v10820_v57 }
 0x2c1   :  { %2840 = vmatprep.subr.bf16.mxu0 %v10829_v56  ;;  %2881 = vmatprep.subr.bf16.mxu1 %v10834_v61 }
 0x2c4   :  { %2841 = vmatpush1.bf16.msra.mxu0 %v10839_v58  ;;  %2882 = vmatpush1.bf16.msra.mxu1 %v10844_v10  ;;  %v10882_v10 = vld [vmem:[%s12798_s4 + $0xac] ss:$16 sps:$4 sm:$0xff]  }
 0x2c5   :  { %2842 = vmatprep.subr.bf16.mxu0 %v10853_v0  ;;  %2883 = vmatprep.subr.bf16.mxu1 %v10858_v9  ;;  %13137 = vst [vmem:[#allocation26_spill] sm:$0xff] %v10882_v10  ;;  %v10887_v0 = vld [vmem:[%s12798_s4 + $0xa0] ss:$16 sps:$4 sm:$0xff]   ;;  %v10906_v9 = vld [vmem:[%s12798_s4 + $0xcc] ss:$16 sps:$4 sm:$0xff]  }
 0x2c6   :  { %13138 = vst [vmem:[#allocation28_spill] sm:$0xff] %v10887_v0  ;;  %13141 = vst [vmem:[#allocation30_spill] sm:$0xff] %v10906_v9 }
 0x2c8   :  { %2843 = vmatpush1.bf16.msra.mxu0 %v10863_v15  ;;  %2884 = vmatpush1.bf16.msra.mxu1 %v10868_v7  ;;  %v10892_v15 = vld [vmem:[%s12798_s4 + $0xa8] ss:$16 sps:$4 sm:$0xff]   ;;  %v10901_v7 = vld [vmem:[%s12798_s4 + $0xc4] ss:$16 sps:$4 sm:$0xff]  }
 0x2c9   :  { %13139 = vst [vmem:[#allocation27_spill] sm:$0xff] %v10892_v15  ;;  %2844 = vmatprep.subr.bf16.mxu0 %v10877_v8  ;;  %2885 = vmatprep.subr.bf16.mxu1 %v10882_v10  ;;  %13140 = vst [vmem:[#allocation29_spill] sm:$0xff] %v10901_v7  ;;  %v10911_v8 = vld [vmem:[%s12798_s4 + $0xc0] ss:$16 sps:$4 sm:$0xff]   ;;  %v10930_v10 = vld [vmem:[%s12798_s4 + $0xec] ss:$16 sps:$4 sm:$0xff]  }
 0x2ca   :  { %13142 = vst [vmem:[#allocation31_spill] sm:$0xff] %v10911_v8  ;;  %13145 = vst [vmem:[#allocation65_spill] sm:$0xff] %v10930_v10 }
 0x2cc   :  { %2845 = vmatpush1.bf16.msra.mxu0 %v10887_v0  ;;  %2886 = vmatpush1.bf16.msra.mxu1 %v10892_v15  ;;  %v10916_v0 = vld [vmem:[%s12798_s4 + $0xc8] ss:$16 sps:$4 sm:$0xff]   ;;  %v10925_v15 = vld [vmem:[%s12798_s4 + $0xe4] ss:$16 sps:$4 sm:$0xff]  }
 0x2cd   :  { %13143 = vst [vmem:[#allocation32_spill] sm:$0xff] %v10916_v0  ;;  %2846 = vmatprep.subr.bf16.mxu0 %v10901_v7  ;;  %2887 = vmatprep.subr.bf16.mxu1 %v10906_v9  ;;  %13144 = vst [vmem:[#allocation33_spill] sm:$0xff] %v10925_v15  ;;  %v10935_v7 = vld [vmem:[%s12798_s4 + $0xe0] ss:$16 sps:$4 sm:$0xff]   ;;  %v10954_v9 = vld [vmem:[%s12798_s4 + $0x10c] ss:$16 sps:$4 sm:$0xff]  }
 0x2ce   :  { %13146 = vst [vmem:[#allocation63_spill] sm:$0xff] %v10935_v7  ;;  %13149 = vst [vmem:[#allocation36_spill] sm:$0xff] %v10954_v9 }
 0x2d0   :  { %2847 = vmatpush1.bf16.msra.mxu0 %v10911_v8  ;;  %2888 = vmatpush1.bf16.msra.mxu1 %v10916_v0  ;;  %v10940_v8 = vld [vmem:[%s12798_s4 + $0xe8] ss:$16 sps:$4 sm:$0xff]   ;;  %v10949_v0 = vld [vmem:[%s12798_s4 + $0x104] ss:$16 sps:$4 sm:$0xff]  }
 0x2d1   :  { %13147 = vst [vmem:[#allocation34_spill] sm:$0xff] %v10940_v8  ;;  %2848 = vmatprep.subr.bf16.mxu0 %v10925_v15  ;;  %2889 = vmatprep.subr.bf16.mxu1 %v10930_v10  ;;  %13148 = vst [vmem:[#allocation35_spill] sm:$0xff] %v10949_v0  ;;  %v10959_v15 = vld [vmem:[%s12798_s4 + $0x100] ss:$16 sps:$4 sm:$0xff]   ;;  %v10978_v10 = vld [vmem:[%s12798_s4 + $0x12c] ss:$16 sps:$4 sm:$0xff]  }
 0x2d2   :  { %13150 = vst [vmem:[#allocation37_spill] sm:$0xff] %v10959_v15  ;;  %13153 = vst [vmem:[#allocation69_spill] sm:$0xff] %v10978_v10 }
 0x2d4   :  { %2849 = vmatpush1.bf16.msra.mxu0 %v10935_v7  ;;  %2890 = vmatpush1.bf16.msra.mxu1 %v10940_v8  ;;  %v10964_v7 = vld [vmem:[%s12798_s4 + $0x108] ss:$16 sps:$4 sm:$0xff]   ;;  %v10973_v8 = vld [vmem:[%s12798_s4 + $0x124] ss:$16 sps:$4 sm:$0xff]  }
 0x2d5   :  { %13151 = vst [vmem:[#allocation67_spill] sm:$0xff] %v10964_v7  ;;  %2850 = vmatprep.subr.bf16.mxu0 %v10949_v0  ;;  %2891 = vmatprep.subr.bf16.mxu1 %v10954_v9  ;;  %13152 = vst [vmem:[#allocation68_spill] sm:$0xff] %v10973_v8  ;;  %v10983_v0 = vld [vmem:[%s12798_s4 + $0x120] ss:$16 sps:$4 sm:$0xff]   ;;  %v11002_v9 = vld [vmem:[%s12798_s4 + $0x14c] ss:$16 sps:$4 sm:$0xff]  }
 0x2d6   :  { %13154 = vst [vmem:[#allocation70_spill] sm:$0xff] %v10983_v0  ;;  %13157 = vst [vmem:[#allocation73_spill] sm:$0xff] %v11002_v9 }
 0x2d8   :  { %2851 = vmatpush1.bf16.msra.mxu0 %v10959_v15  ;;  %2892 = vmatpush1.bf16.msra.mxu1 %v10964_v7  ;;  %v10988_v15 = vld [vmem:[%s12798_s4 + $0x128] ss:$16 sps:$4 sm:$0xff]   ;;  %v10997_v7 = vld [vmem:[%s12798_s4 + $0x144] ss:$16 sps:$4 sm:$0xff]  }
 0x2d9   :  { %13155 = vst [vmem:[#allocation71_spill] sm:$0xff] %v10988_v15  ;;  %2852 = vmatprep.subr.bf16.mxu0 %v10973_v8  ;;  %2893 = vmatprep.subr.bf16.mxu1 %v10978_v10  ;;  %13156 = vst [vmem:[#allocation72_spill] sm:$0xff] %v10997_v7  ;;  %v11007_v8 = vld [vmem:[%s12798_s4 + $0x140] ss:$16 sps:$4 sm:$0xff]   ;;  %v11026_v10 = vld [vmem:[%s12798_s4 + $0x16c] ss:$16 sps:$4 sm:$0xff]  }
 0x2da   :  { %13158 = vst [vmem:[#allocation74_spill] sm:$0xff] %v11007_v8  ;;  %13161 = vst [vmem:[#allocation77_spill] sm:$0xff] %v11026_v10 }
 0x2dc   :  { %2853 = vmatpush1.bf16.msra.mxu0 %v10983_v0  ;;  %2894 = vmatpush1.bf16.msra.mxu1 %v10988_v15  ;;  %v11012_v0 = vld [vmem:[%s12798_s4 + $0x148] ss:$16 sps:$4 sm:$0xff]   ;;  %v11021_v15 = vld [vmem:[%s12798_s4 + $0x164] ss:$16 sps:$4 sm:$0xff]  }
 0x2dd   :  { %13159 = vst [vmem:[#allocation75_spill] sm:$0xff] %v11012_v0  ;;  %2854 = vmatprep.subr.bf16.mxu0 %v10997_v7  ;;  %2895 = vmatprep.subr.bf16.mxu1 %v11002_v9  ;;  %13160 = vst [vmem:[#allocation76_spill] sm:$0xff] %v11021_v15  ;;  %v11031_v7 = vld [vmem:[%s12798_s4 + $0x160] ss:$16 sps:$4 sm:$0xff]   ;;  %v11050_v9 = vld [vmem:[%s12798_s4 + $0x18c] ss:$16 sps:$4 sm:$0xff]  }
 0x2de   :  { %13162 = vst [vmem:[#allocation78_spill] sm:$0xff] %v11031_v7  ;;  %13165 = vst [vmem:[#allocation81_spill] sm:$0xff] %v11050_v9 }
 0x2e0   :  { %2855 = vmatpush1.bf16.msra.mxu0 %v11007_v8  ;;  %2896 = vmatpush1.bf16.msra.mxu1 %v11012_v0  ;;  %v11036_v8 = vld [vmem:[%s12798_s4 + $0x168] ss:$16 sps:$4 sm:$0xff]   ;;  %v11045_v0 = vld [vmem:[%s12798_s4 + $0x184] ss:$16 sps:$4 sm:$0xff]  }
 0x2e1   :  { %13163 = vst [vmem:[#allocation79_spill] sm:$0xff] %v11036_v8  ;;  %2856 = vmatprep.subr.bf16.mxu0 %v11021_v15  ;;  %2897 = vmatprep.subr.bf16.mxu1 %v11026_v10  ;;  %13164 = vst [vmem:[#allocation80_spill] sm:$0xff] %v11045_v0  ;;  %v11055_v15 = vld [vmem:[%s12798_s4 + $0x180] ss:$16 sps:$4 sm:$0xff]   ;;  %v11072_v10 = vld [vmem:[%s12798_s4 + $0x1ac] ss:$16 sps:$4 sm:$0xff]  }
 0x2e2   :  { %13166 = vst [vmem:[#allocation82_spill] sm:$0xff] %v11055_v15  ;;  %13169 = vst [vmem:[#allocation85_spill] sm:$0xff] %v11072_v10 }
 0x2e4   :  { %2857 = vmatpush1.bf16.msra.mxu0 %v11031_v7  ;;  %2898 = vmatpush1.bf16.msra.mxu1 %v11036_v8  ;;  %v11060_v7 = vld [vmem:[%s12798_s4 + $0x188] ss:$16 sps:$4 sm:$0xff]   ;;  %v11067_v8 = vld [vmem:[%s12798_s4 + $0x1a4] ss:$16 sps:$4 sm:$0xff]  }
 0x2e5   :  { %13167 = vst [vmem:[#allocation83_spill] sm:$0xff] %v11060_v7  ;;  %2858 = vmatprep.subr.bf16.mxu0 %v11045_v0  ;;  %2899 = vmatprep.subr.bf16.mxu1 %v11050_v9  ;;  %13168 = vst [vmem:[#allocation84_spill] sm:$0xff] %v11067_v8  ;;  %v11079_v0 = vld [vmem:[%s12798_s4 + $0x1a0] ss:$16 sps:$4 sm:$0xff]   ;;  %v11084_v9 = vld [vmem:[%s12798_s4 + $0x1a8] ss:$16 sps:$4 sm:$0xff]  }
 0x2e6   :  { %13170 = vst [vmem:[#allocation86_spill] sm:$0xff] %v11079_v0  ;;  %13171 = vst [vmem:[#allocation87_spill] sm:$0xff] %v11084_v9 }
 0x2e8   :  { %2859 = vmatpush1.bf16.msra.mxu0 %v11055_v15  ;;  %2900 = vmatpush1.bf16.msra.mxu1 %v11060_v7  ;;  %v11091_v15 = vld [vmem:[%s12798_s4 + $0x1c4] ss:$16 sps:$4 sm:$0xff]   ;;  %v11096_v7 = vld [vmem:[%s12798_s4 + $0x1cc] ss:$16 sps:$4 sm:$0xff]  }
 0x2e9   :  { %2860 = vmatprep.subr.bf16.mxu0 %v11067_v8  ;;  %2901 = vmatprep.subr.bf16.mxu1 %v11072_v10  ;;  %13172 = vst [vmem:[#allocation88_spill] sm:$0xff] %v11091_v15  ;;  %13173 = vst [vmem:[#allocation89_spill] sm:$0xff] %v11096_v7  ;;  %v11103_v8 = vld [vmem:[%s12798_s4 + $0x1c0] ss:$16 sps:$4 sm:$0xff]   ;;  %v11108_v10 = vld [vmem:[%s12798_s4 + $0x1c8] ss:$16 sps:$4 sm:$0xff]  }
 0x2ea   :  { %13174 = vst [vmem:[#allocation90_spill] sm:$0xff] %v11103_v8  ;;  %13175 = vst [vmem:[#allocation91_spill] sm:$0xff] %v11108_v10 }
 0x2ec   :  { %2861 = vmatpush1.bf16.msra.mxu0 %v11079_v0  ;;  %2902 = vmatpush1.bf16.msra.mxu1 %v11084_v9  ;;  %v11115_v0 = vld [vmem:[%s12798_s4 + $0x1e4] ss:$16 sps:$4 sm:$0xff]   ;;  %v11120_v9 = vld [vmem:[%s12798_s4 + $0x1ec] ss:$16 sps:$4 sm:$0xff]  }
 0x2ed   :  { %2862 = vmatprep.subr.bf16.mxu0 %v11091_v15  ;;  %2903 = vmatprep.subr.bf16.mxu1 %v11096_v7  ;;  %13176 = vst [vmem:[#allocation92_spill] sm:$0xff] %v11115_v0  ;;  %13177 = vst [vmem:[#allocation93_spill] sm:$0xff] %v11120_v9  ;;  %v11127_v15 = vld [vmem:[%s12798_s4 + $0x1e0] ss:$16 sps:$4 sm:$0xff]   ;;  %v11132_v7 = vld [vmem:[%s12798_s4 + $0x1e8] ss:$16 sps:$4 sm:$0xff]  }
 0x2ee   :  { %13178 = vst [vmem:[#allocation94_spill] sm:$0xff] %v11127_v15  ;;  %13179 = vst [vmem:[#allocation95_spill] sm:$0xff] %v11132_v7 }
 0x2f0   :  { %2863 = vmatpush1.bf16.msra.mxu0 %v11103_v8  ;;  %2904 = vmatpush1.bf16.msra.mxu1 %v11108_v10  ;;  %v1671_v10 = vld [vmem:[%s12799_s5] sm:$0xf] }
 0x2f1   :  { %2864 = vmatprep.subr.bf16.mxu0 %v11115_v0  ;;  %2905 = vmatprep.subr.bf16.mxu1 %v11120_v9  ;;  %v1676_v8 = vrot.slane %v1671_v10, %v13111_v44  ;;  %v1680_v58 = vrot.slane %v1671_v10, %v13112_v46  ;;  %v1688_v53 = vrot.slane %v1671_v10, %v13113_v12 }
 0x2f2   :  { %v1684_v44 = vrot.slane %v1671_v10, %v13114_v14 }
 0x2f4   :  { %2865 = vmatpush1.bf16.msra.mxu0 %v11127_v15  ;;  %2906 = vmatpush1.bf16.msra.mxu1 %v11132_v7 }
 0x2f5   :  { %3137 = vmatprep.subr.bf16.mxu0 %v10625_v41  ;;  %3178 = vmatprep.subr.bf16.mxu1 %v10627_v42 }
 0x36a   :  { %v2047_v61 = vpop.f32.mrb[32].mxu0  ;;  %v2088_v0 = vpop.f32.mrb[32].mxu1 }
 0x36b   :  { %v2048_v56 = vadd.f32 %v2047_v61, %v1676_v8  ;;  %v2049_v9 = vpop.f32.mrb[33].mxu0  ;;  %v2090_v57 = vpop.f32.mrb[33].mxu1  ;;  %v2089_v51 = vadd.f32 %v2088_v0, %v1684_v44  ;;  %v13181_v44 = vld [vmem:[#allocation39_spill] sm:$0xff] }
 0x36c   :  { %v2050_v15 = vadd.f32 %v2049_v9, %v1680_v58  ;;  %v2051_v59 = vpop.f32.mrb[34].mxu0  ;;  %v2092_v7 = vpop.f32.mrb[34].mxu1  ;;  %v2091_v52 = vadd.f32 %v2090_v57, %v1688_v53  ;;  %v13180_v57 = vld [vmem:[#allocation38_spill] sm:$0xff]  ;;  %v406_v10 = vadd.f32 %v13181_v44, %v10538_v3 }
 0x36d   :  { %v8106_v11 = vmul.f32 -1.442695, %v2048_v56  ;;  %v2052_v41 = vpop.f32.mrb[35].mxu0  ;;  %v2093_v54 = vpop.f32.mrb[35].mxu1 }
 0x36e   :  { %v8107_v42 = vmul.f32 -1.442695, %v2050_v15  ;;  %v8108_v46 = vmul.f32 -1.442695, %v2091_v52  ;;  %v325_v52 = vadd.f32 %v13180_v57, %v10535_v13 }
 0x36f   :  { %9657 = vpow2.f32 %v8106_v11 }
 0x370   :  { %9659 = vpow2.f32 %v8107_v42 }
 0x371   :  { %9661 = vpow2.f32 %v8108_v46  ;;  %v13182_v46 = vld [vmem:[#allocation40_spill] sm:$0xff] }
 0x372   :  { %9663 = vtanh.f32 %v2089_v51  ;;  %v13183_v51 = vld [vmem:[#allocation41_spill] sm:$0xff] }
 0x373   :  { %v408_v0 = vadd.f32 %v13183_v51, %v10544_v1 }
 0x379   :  { %v9658_v50 = vpop.eup %9657 }
 0x37a   :  { %v9660_v61 = vpop.eup %9659  ;;  %v2098_v8 = vadd.f32 1.0, %v9658_v50  ;;  %v327_v50 = vadd.f32 %v13182_v46, %v13117_v23 }
 0x37b   :  { %v2104_v59 = vadd.f32 1.0, %v9660_v61  ;;  %v9662_v56 = vpop.eup %9661 }
 0x37c   :  { %9665 = vrcp.f32 %v2098_v8  ;;  %v9664_v54 = vpop.eup %9663  ;;  %v2111_v11 = vadd.f32 1.0, %v9662_v56 }
 0x37d   :  { %9667 = vrcp.f32 %v2104_v59 }
 0x37e   :  { %9669 = vrcp.f32 %v2111_v11 }
 0x386   :  { %v9666_v58 = vpop.eup %9665 }
 0x387   :  { %v9668_v9 = vpop.eup %9667  ;;  %v2115_v15 = vmul.f32 %v9666_v58, %v9664_v54 }
 0x388   :  { %v2114_v53 = vmul.f32 %v9668_v9, %v10646_v28 }
 0x38a   :  { %v11156_v7 = vadd.f32 %v2115_v15, %v2114_v53  ;;  %v2350_v41 = vpop.f32.mrb[36].mxu0  ;;  %v2391_v42 = vpop.f32.mrb[36].mxu1 }
 0x38b   :  { %v2398_v61 = vadd.f32 %v2350_v41, %v325_v52  ;;  %v2400_v8 = vadd.f32 %v2391_v42, %v406_v10  ;;  %v2352_v28 = vpop.f32.mrb[37].mxu0  ;;  %v2393_v59 = vpop.f32.mrb[37].mxu1 }
 0x38c   :  { %v2399_v56 = vadd.f32 %v2352_v28, %v327_v50  ;;  %v2401_v54 = vadd.f32 %v2393_v59, %v408_v0  ;;  %v2354_v58 = vpop.f32.mrb[38].mxu0  ;;  %v2395_v9 = vpop.f32.mrb[38].mxu1  ;;  %9671 = vtanh.f32 %v11156_v7 }
 0x38d   :  { %v8141_v57 = vmul.f32 -1.442695, %v2398_v61  ;;  %v2355_v44 = vpop.f32.mrb[39].mxu0  ;;  %v2396_v46 = vpop.f32.mrb[39].mxu1 }
 0x38e   :  { %v8142_v23 = vmul.f32 -1.442695, %v2399_v56  ;;  %v9670_v15 = vpop.eup %9669  ;;  %v8143_v51 = vmul.f32 -1.442695, %v2401_v54  ;;  %v13219_v46 = vld [vmem:[#allocation71_spill] sm:$0xff] }
 0x38f   :  { %9673 = vpow2.f32 %v8141_v57 }
 0x390   :  { %9675 = vpow2.f32 %v8142_v23 }
 0x391   :  { %9677 = vpow2.f32 %v8143_v51  ;;  %v13222_v51 = vld [vmem:[#allocation74_spill] sm:$0xff] }
 0x392   :  { %9679 = vtanh.f32 %v2400_v8 }
 0x396   :  { %v9672_v53 = vpop.eup %9671 }
 0x397   :  { %v2118_v11 = vmul.f32 %v9672_v53, %v9670_v15  ;;  %v13220_v15 = vld [vmem:[#allocation72_spill] sm:$0xff]  ;;  %v13221_v53 = vld [vmem:[#allocation73_spill] sm:$0xff] }
 0x399   :  { %v9674_v52 = vpop.eup %9673  ;;  %2119 = vst [vmem:[%s12800_s6 + $0x8] sm:$0xff] %v2118_v11  ;;  %v2427_v10 = vpack.c.bf16 %v2118_v11, %v2118_v11  ;;  %v13223_v11 = vld [vmem:[#allocation75_spill] sm:$0xff] }
 0x39a   :  { %v9676_v50 = vpop.eup %9675  ;;  %v2405_v0 = vadd.f32 1.0, %v9674_v52  ;;  %v13224_v52 = vld [vmem:[#allocation76_spill] sm:$0xff] }
 0x39b   :  { %v2411_v41 = vadd.f32 1.0, %v9676_v50  ;;  %2866 = vmatprep.mubr.bf16.mxu0 %v2427_v10  ;;  %2907 = vmatprep.mubr.bf16.mxu1 %v2427_v10  ;;  %v9678_v23 = vpop.eup %9677  ;;  %v13225_v10 = vld [vmem:[#allocation77_spill] sm:$0xff]  ;;  %v13226_v50 = vld [vmem:[#allocation78_spill] sm:$0xff] }
 0x39c   :  { %9681 = vrcp.f32 %v2405_v0  ;;  %v9680_v42 = vpop.eup %9679  ;;  %v2418_v56 = vadd.f32 1.0, %v9678_v23  ;;  %v13227_v0 = vld [vmem:[#allocation79_spill] sm:$0xff]  ;;  %v13229_v23 = vld [vmem:[#allocation81_spill] sm:$0xff] }
 0x39d   :  { %9683 = vrcp.f32 %v2411_v41  ;;  %v13228_v41 = vld [vmem:[#allocation80_spill] sm:$0xff] }
 0x39e   :  { %9685 = vrcp.f32 %v2418_v56  ;;  %v13234_v56 = vld [vmem:[#allocation86_spill] sm:$0xff] }
 0x3a6   :  { %v9682_v61 = vpop.eup %9681 }
 0x3a7   :  { %v9684_v28 = vpop.eup %9683  ;;  %v2422_v59 = vmul.f32 %v9682_v61, %v9680_v42  ;;  %v13230_v42 = vld [vmem:[#allocation82_spill] sm:$0xff]  ;;  %v13231_v61 = vld [vmem:[#allocation83_spill] sm:$0xff] }
 0x3a8   :  { %v2421_v54 = vmul.f32 %v9684_v28, %v10653_v60  ;;  %v9686_v9 = vpop.eup %9685  ;;  %v13184_v60 = vld [vmem:[#allocation9_spill] sm:$0xff]  ;;  %v13232_v28 = vld [vmem:[#allocation84_spill] sm:$0xff] }
 0x3aa   :  { %v11163_v58 = vadd.f32 %v2422_v59, %v2421_v54  ;;  %v13233_v59 = vld [vmem:[#allocation85_spill] sm:$0xff]  ;;  %v13235_v54 = vld [vmem:[#allocation87_spill] sm:$0xff] }
 0x3ac   :  { %9687 = vtanh.f32 %v11163_v58 }
 0x3b6   :  { %v9688_v8 = vpop.eup %9687 }
 0x3b7   :  { %v2425_v57 = vmul.f32 %v9688_v8, %v9686_v9  ;;  %v13236_v9 = vld [vmem:[#allocation88_spill] sm:$0xff]  ;;  %v13237_v8 = vld [vmem:[#allocation89_spill] sm:$0xff] }
 0x3b9   :  { %v2426_v44 = vpack.c.bf16 %v2425_v57, %v2425_v57  ;;  %v13238_v57 = vld [vmem:[#allocation90_spill] sm:$0xff] }
 0x3bb   :  { %2867 = vmatmul.mubr.bf16.vlgmr.msra.gmra.mrb[40].mxu0 %v2426_v44  ;;  %2908 = vmatmul.mubr.bf16.vlgmr.msra.gmra.mrb[40].mxu1 %v2426_v44 }
 0x3bc   :  { %3138 = vmatpush1.bf16.msra.mxu0 %v10656_v5  ;;  %3179 = vmatpush1.bf16.msra.mxu1 %v10658_v6  ;;  %v13185_v5 = vld [vmem:[#allocation10_spill] sm:$0xff]  ;;  %v13186_v6 = vld [vmem:[#allocation11_spill] sm:$0xff] }
 0x3bd   :  { %3139 = vmatprep.subr.bf16.mxu0 %v10662_v62  ;;  %3180 = vmatprep.subr.bf16.mxu1 %v10664_v2  ;;  %v13187_v62 = vld [vmem:[#allocation12_spill] sm:$0xff]  ;;  %v13188_v2 = vld [vmem:[#allocation13_spill] sm:$0xff] }
 0x3be   :  { %3169 = vmatprep.mubr.bf16.mxu0 %v13085_v4  ;;  %3210 = vmatprep.mubr.bf16.mxu1 %v13085_v4 }
 0x3c0   :  { %3140 = vmatpush1.bf16.msra.mxu0 %v10670_v55  ;;  %3181 = vmatpush1.bf16.msra.mxu1 %v10672_v63  ;;  %v13189_v55 = vld [vmem:[#allocation14_spill] sm:$0xff]  ;;  %v13190_v63 = vld [vmem:[#allocation15_spill] sm:$0xff] }
 0x3c1   :  { %3141 = vmatprep.subr.bf16.mxu0 %v10676_v16  ;;  %3182 = vmatprep.subr.bf16.mxu1 %v10678_v17  ;;  %v13191_v16 = vld [vmem:[#allocation16_spill] sm:$0xff]  ;;  %v13192_v17 = vld [vmem:[#allocation17_spill] sm:$0xff] }
 0x3c4   :  { %3142 = vmatpush1.bf16.msra.mxu0 %v10684_v18  ;;  %3183 = vmatpush1.bf16.msra.mxu1 %v10686_v19  ;;  %v13193_v18 = vld [vmem:[#allocation18_spill] sm:$0xff]  ;;  %v13194_v19 = vld [vmem:[#allocation19_spill] sm:$0xff] }
 0x3c5   :  { %3143 = vmatprep.subr.bf16.mxu0 %v10690_v20  ;;  %3184 = vmatprep.subr.bf16.mxu1 %v10692_v21  ;;  %v13195_v20 = vld [vmem:[#allocation20_spill] sm:$0xff]  ;;  %v13196_v21 = vld [vmem:[#allocation21_spill] sm:$0xff] }
 0x3c8   :  { %3144 = vmatpush1.bf16.msra.mxu0 %v10696_v22  ;;  %3185 = vmatpush1.bf16.msra.mxu1 %v10698_v24  ;;  %v13197_v22 = vld [vmem:[#allocation23_spill] sm:$0xff]  ;;  %v13198_v24 = vld [vmem:[#allocation25_spill] sm:$0xff] }
 0x3c9   :  { %3145 = vmatprep.subr.bf16.mxu0 %v10702_v25  ;;  %3186 = vmatprep.subr.bf16.mxu1 %v10704_v26  ;;  %v13199_v25 = vld [vmem:[#allocation22_spill] sm:$0xff]  ;;  %v13200_v26 = vld [vmem:[#allocation24_spill] sm:$0xff] }
 0x3cc   :  { %3146 = vmatpush1.bf16.msra.mxu0 %v10708_v27  ;;  %3187 = vmatpush1.bf16.msra.mxu1 %v10710_v29  ;;  %v13201_v27 = vld [vmem:[#allocation26_spill] sm:$0xff]  ;;  %v13202_v29 = vld [vmem:[#allocation28_spill] sm:$0xff] }
 0x3cd   :  { %3147 = vmatprep.subr.bf16.mxu0 %v10714_v30  ;;  %3188 = vmatprep.subr.bf16.mxu1 %v10716_v31  ;;  %v13203_v30 = vld [vmem:[#allocation27_spill] sm:$0xff]  ;;  %v13204_v31 = vld [vmem:[#allocation29_spill] sm:$0xff] }
 0x3d0   :  { %3148 = vmatpush1.bf16.msra.mxu0 %v10720_v32  ;;  %3189 = vmatpush1.bf16.msra.mxu1 %v10722_v33  ;;  %v13205_v32 = vld [vmem:[#allocation30_spill] sm:$0xff]  ;;  %v13206_v33 = vld [vmem:[#allocation31_spill] sm:$0xff] }
 0x3d1   :  { %3149 = vmatprep.subr.bf16.mxu0 %v10726_v34  ;;  %3190 = vmatprep.subr.bf16.mxu1 %v10728_v35  ;;  %v13207_v34 = vld [vmem:[#allocation32_spill] sm:$0xff]  ;;  %v13208_v35 = vld [vmem:[#allocation33_spill] sm:$0xff] }
 0x3d4   :  { %3150 = vmatpush1.bf16.msra.mxu0 %v10732_v36  ;;  %3191 = vmatpush1.bf16.msra.mxu1 %v10734_v37  ;;  %v13209_v36 = vld [vmem:[#allocation65_spill] sm:$0xff]  ;;  %v13210_v37 = vld [vmem:[#allocation63_spill] sm:$0xff] }
 0x3d5   :  { %3151 = vmatprep.subr.bf16.mxu0 %v10738_v38  ;;  %3192 = vmatprep.subr.bf16.mxu1 %v10740_v39  ;;  %v13211_v38 = vld [vmem:[#allocation34_spill] sm:$0xff]  ;;  %v13212_v39 = vld [vmem:[#allocation35_spill] sm:$0xff] }
 0x3d8   :  { %3152 = vmatpush1.bf16.msra.mxu0 %v10744_v40  ;;  %3193 = vmatpush1.bf16.msra.mxu1 %v10746_v43  ;;  %v13213_v40 = vld [vmem:[#allocation36_spill] sm:$0xff]  ;;  %v13214_v43 = vld [vmem:[#allocation37_spill] sm:$0xff] }
 0x3d9   :  { %3655 = vmatprep.subr.bf16.mxu0 %v10757_v45  ;;  %3696 = vmatprep.subr.bf16.mxu1 %v10762_v47  ;;  %v13215_v45 = vld [vmem:[#allocation67_spill] sm:$0xff]  ;;  %v13216_v47 = vld [vmem:[#allocation68_spill] sm:$0xff] }
 0x3db   :  { %3170 = vmatmul.mubr.bf16.vlgmr.msra.gmra.mrb[44].mxu0 %v2426_v44  ;;  %3211 = vmatmul.mubr.bf16.vlgmr.msra.gmra.mrb[44].mxu1 %v2426_v44  ;;  %v13239_v44 = vld [vmem:[#allocation91_spill] sm:$0xff] }
 0x3dc   :  { %3656 = vmatpush1.bf16.msra.mxu0 %v10767_v48  ;;  %3697 = vmatpush1.bf16.msra.mxu1 %v10772_v49  ;;  %v13217_v48 = vld [vmem:[#allocation69_spill] sm:$0xff]  ;;  %v13218_v49 = vld [vmem:[#allocation70_spill] sm:$0xff] }
 0x3dd   :  { %3657 = vmatprep.subr.bf16.mxu0 %v13184_v60  ;;  %3698 = vmatprep.subr.bf16.mxu1 %v13185_v5  ;;  %v13240_v60 = vld [vmem:[#allocation92_spill] sm:$0xff]  ;;  %v13241_v5 = vld [vmem:[#allocation93_spill] sm:$0xff] }
 0x3e0   :  { %3658 = vmatpush1.bf16.msra.mxu0 %v13186_v6  ;;  %3699 = vmatpush1.bf16.msra.mxu1 %v13187_v62  ;;  %v13242_v6 = vld [vmem:[#allocation94_spill] sm:$0xff]  ;;  %v13243_v62 = vld [vmem:[#allocation95_spill] sm:$0xff] }
 0x3e1   :  { %3659 = vmatprep.subr.bf16.mxu0 %v13188_v2  ;;  %3700 = vmatprep.subr.bf16.mxu1 %v13189_v55  ;;  %v11262_v2 = vld [vmem:[#allocation5 + $0x4] ss:$16 sps:$4 sm:$0xff]   ;;  %v11264_v55 = vld [vmem:[#allocation5 + $0xc] ss:$16 sps:$4 sm:$0xff]  }
 0x3e4   :  { %3660 = vmatpush1.bf16.msra.mxu0 %v13190_v63  ;;  %3701 = vmatpush1.bf16.msra.mxu1 %v13191_v16  ;;  %v2492_v63 = vld [vmem:[%s12799_s5] sm:$0xf]  ;;  %v13244_v16 = vld [vmem:[#allocation62_spill] sm:$0xff] }
 0x3e5   :  { %3661 = vmatprep.subr.bf16.mxu0 %v13192_v17  ;;  %3702 = vmatprep.subr.bf16.mxu1 %v13193_v18  ;;  %v2497_v17 = vrot.slane %v2492_v63, %v13244_v16  ;;  %v13245_v18 = vld [vmem:[#allocation64_spill] sm:$0xff] }
 0x3e8   :  { %3662 = vmatpush1.bf16.msra.mxu0 %v13194_v19  ;;  %3703 = vmatpush1.bf16.msra.mxu1 %v13195_v20  ;;  %v2501_v19 = vrot.slane %v2492_v63, %v13245_v18 }
 0x3e9   :  { %3663 = vmatprep.subr.bf16.mxu0 %v13196_v21  ;;  %3704 = vmatprep.subr.bf16.mxu1 %v13197_v22 }
 0x3ec   :  { %3664 = vmatpush1.bf16.msra.mxu0 %v13198_v24  ;;  %3705 = vmatpush1.bf16.msra.mxu1 %v13199_v25 }
 0x3ed   :  { %3665 = vmatprep.subr.bf16.mxu0 %v13200_v26  ;;  %3706 = vmatprep.subr.bf16.mxu1 %v13201_v27 }
 0x3f0   :  { %3666 = vmatpush1.bf16.msra.mxu0 %v13202_v29  ;;  %3707 = vmatpush1.bf16.msra.mxu1 %v13203_v30 }
 0x3f1   :  { %3667 = vmatprep.subr.bf16.mxu0 %v13204_v31  ;;  %3708 = vmatprep.subr.bf16.mxu1 %v13205_v32 }
 0x3f4   :  { %3668 = vmatpush1.bf16.msra.mxu0 %v13206_v33  ;;  %3709 = vmatpush1.bf16.msra.mxu1 %v13207_v34  ;;  %v2509_v34 = vrot.slane %v2492_v63, %v13113_v12 }
 0x3f5   :  { %3669 = vmatprep.subr.bf16.mxu0 %v13208_v35  ;;  %3710 = vmatprep.subr.bf16.mxu1 %v13209_v36  ;;  %v2505_v36 = vrot.slane %v2492_v63, %v13114_v14 }
 0x3f8   :  { %3670 = vmatpush1.bf16.msra.mxu0 %v13210_v37  ;;  %3711 = vmatpush1.bf16.msra.mxu1 %v13211_v38 }
 0x3f9   :  { %3671 = vmatprep.subr.bf16.mxu0 %v13212_v39  ;;  %3712 = vmatprep.subr.bf16.mxu1 %v13213_v40 }
 0x3fc   :  { %3672 = vmatpush1.bf16.msra.mxu0 %v13214_v43  ;;  %3713 = vmatpush1.bf16.msra.mxu1 %v13215_v45 }
 0x3fd   :  { %3673 = vmatprep.subr.bf16.mxu0 %v13216_v47  ;;  %3714 = vmatprep.subr.bf16.mxu1 %v13217_v48 }
 0x400   :  { %3674 = vmatpush1.bf16.msra.mxu0 %v13218_v49  ;;  %3715 = vmatpush1.bf16.msra.mxu1 %v13219_v46 }
 0x401   :  { %3675 = vmatprep.subr.bf16.mxu0 %v13220_v15  ;;  %3716 = vmatprep.subr.bf16.mxu1 %v13221_v53 }
 0x404   :  { %3676 = vmatpush1.bf16.msra.mxu0 %v13222_v51  ;;  %3717 = vmatpush1.bf16.msra.mxu1 %v13223_v11  ;;  %v13246_v11 = vld [vmem:[#allocation42_spill] sm:$0xff] }
 0x405   :  { %3677 = vmatprep.subr.bf16.mxu0 %v13224_v52  ;;  %3718 = vmatprep.subr.bf16.mxu1 %v13225_v10  ;;  %v329_v52 = vadd.f32 %v13246_v11, %v10535_v13  ;;  %v13247_v10 = vld [vmem:[#allocation43_spill] sm:$0xff]  ;;  %v11324_v11 = vld [vmem:[#allocation5 + $0x48] ss:$16 sps:$4 sm:$0xff]  }
 0x408   :  { %3678 = vmatpush1.bf16.msra.mxu0 %v13226_v50  ;;  %3719 = vmatpush1.bf16.msra.mxu1 %v13227_v0  ;;  %v410_v50 = vadd.f32 %v13247_v10, %v10538_v3  ;;  %v13248_v0 = vld [vmem:[#allocation66_spill] sm:$0xff] }
 0x409   :  { %3679 = vmatprep.subr.bf16.mxu0 %v13228_v41  ;;  %3720 = vmatprep.subr.bf16.mxu1 %v13229_v23  ;;  %v13249_v41 = vld [vmem:[#allocation44_spill] sm:$0xff] }
 0x40a   :  { %v331_v23 = vadd.f32 %v13249_v41, %v13248_v0  ;;  %v11330_v10 = vld [vmem:[#allocation5 + $0x6c] ss:$16 sps:$4 sm:$0xff]   ;;  %v11336_v41 = vld [vmem:[#allocation5 + $0x68] ss:$16 sps:$4 sm:$0xff]  }
 0x40c   :  { %3680 = vmatpush1.bf16.msra.mxu0 %v13230_v42  ;;  %3721 = vmatpush1.bf16.msra.mxu1 %v13231_v61  ;;  %v13250_v42 = vld [vmem:[#allocation45_spill] sm:$0xff] }
 0x40d   :  { %3681 = vmatprep.subr.bf16.mxu0 %v13232_v28  ;;  %3722 = vmatprep.subr.bf16.mxu1 %v13233_v59  ;;  %v412_v61 = vadd.f32 %v13250_v42, %v10544_v1  ;;  %v11342_v42 = vld [vmem:[#allocation5 + $0x8c] ss:$16 sps:$4 sm:$0xff]  }
 0x410   :  { %3682 = vmatpush1.bf16.msra.mxu0 %v13234_v56  ;;  %3723 = vmatpush1.bf16.msra.mxu1 %v13235_v54 }
 0x411   :  { %3683 = vmatprep.subr.bf16.mxu0 %v13236_v9  ;;  %3724 = vmatprep.subr.bf16.mxu1 %v13237_v8 }
 0x414   :  { %3684 = vmatpush1.bf16.msra.mxu0 %v13238_v57  ;;  %3725 = vmatpush1.bf16.msra.mxu1 %v13239_v44 }
 0x415   :  { %3685 = vmatprep.subr.bf16.mxu0 %v13240_v60  ;;  %3726 = vmatprep.subr.bf16.mxu1 %v13241_v5 }
 0x418   :  { %3686 = vmatpush1.bf16.msra.mxu0 %v13242_v6  ;;  %3727 = vmatpush1.bf16.msra.mxu1 %v13243_v62 }
 0x419   :  { %3958 = vmatprep.subr.bf16.mxu0 %v11262_v2  ;;  %3999 = vmatprep.subr.bf16.mxu1 %v11264_v55 }
 0x48e   :  { %v2868_v20 = vpop.f32.mrb[40].mxu0  ;;  %v2909_v21 = vpop.f32.mrb[40].mxu1 }
 0x48f   :  { %v2869_v22 = vadd.f32 %v2868_v20, %v2497_v17  ;;  %v2870_v24 = vpop.f32.mrb[41].mxu0  ;;  %v2911_v25 = vpop.f32.mrb[41].mxu1  ;;  %v2910_v38 = vadd.f32 %v2909_v21, %v2505_v36 }
 0x490   :  { %v2871_v26 = vadd.f32 %v2870_v24, %v2501_v19  ;;  %v2872_v27 = vpop.f32.mrb[42].mxu0  ;;  %v2913_v29 = vpop.f32.mrb[42].mxu1  ;;  %v2912_v35 = vadd.f32 %v2911_v25, %v2509_v34 }
 0x491   :  { %v8208_v30 = vmul.f32 -1.442695, %v2869_v22  ;;  %v2873_v31 = vpop.f32.mrb[43].mxu0  ;;  %v2914_v32 = vpop.f32.mrb[43].mxu1 }
 0x492   :  { %v8209_v33 = vmul.f32 -1.442695, %v2871_v26  ;;  %v8210_v37 = vmul.f32 -1.442695, %v2912_v35 }
 0x493   :  { %9689 = vpow2.f32 %v8208_v30 }
 0x494   :  { %9691 = vpow2.f32 %v8209_v33 }
 0x495   :  { %9693 = vpow2.f32 %v8210_v37 }
 0x496   :  { %9695 = vtanh.f32 %v2910_v38 }
 0x49d   :  { %v9690_v39 = vpop.eup %9689 }
 0x49e   :  { %v9692_v40 = vpop.eup %9691  ;;  %v2919_v43 = vadd.f32 1.0, %v9690_v39 }
 0x49f   :  { %v2925_v45 = vadd.f32 1.0, %v9692_v40  ;;  %v9694_v47 = vpop.eup %9693 }
 0x4a0   :  { %9697 = vrcp.f32 %v2919_v43  ;;  %v9696_v48 = vpop.eup %9695  ;;  %v2932_v53 = vadd.f32 1.0, %v9694_v47  ;;  %v11294_v43 = vld [vmem:[#allocation5] ss:$16 sps:$4 sm:$0xff]  }
 0x4a1   :  { %9699 = vrcp.f32 %v2925_v45  ;;  %v11296_v45 = vld [vmem:[#allocation5 + $0x8] ss:$16 sps:$4 sm:$0xff]  }
 0x4a2   :  { %9701 = vrcp.f32 %v2932_v53  ;;  %v11316_v53 = vld [vmem:[#allocation5 + $0x4c] ss:$16 sps:$4 sm:$0xff]  }
 0x4aa   :  { %v9698_v49 = vpop.eup %9697 }
 0x4ab   :  { %v9700_v46 = vpop.eup %9699  ;;  %v2936_v15 = vmul.f32 %v9698_v49, %v9696_v48  ;;  %v11300_v48 = vld [vmem:[#allocation5 + $0x24] ss:$16 sps:$4 sm:$0xff]   ;;  %v11302_v49 = vld [vmem:[#allocation5 + $0x2c] ss:$16 sps:$4 sm:$0xff]  }
 0x4ac   :  { %v2935_v51 = vmul.f32 %v9700_v46, %v11156_v7  ;;  %v9702_v19 = vpop.eup %9701  ;;  %v11310_v46 = vld [vmem:[#allocation5 + $0x28] ss:$16 sps:$4 sm:$0xff]  }
 0x4ae   :  { %v11284_v28 = vadd.f32 %v2936_v15, %v2935_v51  ;;  %v3171_v59 = vpop.f32.mrb[44].mxu0  ;;  %v3212_v56 = vpop.f32.mrb[44].mxu1  ;;  %v11314_v15 = vld [vmem:[#allocation5 + $0x44] ss:$16 sps:$4 sm:$0xff]   ;;  %v11322_v51 = vld [vmem:[#allocation5 + $0x40] ss:$16 sps:$4 sm:$0xff]  }
 0x4af   :  { %v3219_v54 = vadd.f32 %v3171_v59, %v329_v52  ;;  %v3221_v9 = vadd.f32 %v3212_v56, %v410_v50  ;;  %v3173_v7 = vpop.f32.mrb[45].mxu0  ;;  %v3214_v8 = vpop.f32.mrb[45].mxu1  ;;  %v11328_v52 = vld [vmem:[#allocation5 + $0x64] ss:$16 sps:$4 sm:$0xff]   ;;  %v11334_v50 = vld [vmem:[#allocation5 + $0x60] ss:$16 sps:$4 sm:$0xff]  }
 0x4b0   :  { %v3220_v57 = vadd.f32 %v3173_v7, %v331_v23  ;;  %v3222_v44 = vadd.f32 %v3214_v8, %v412_v61  ;;  %v3175_v60 = vpop.f32.mrb[46].mxu0  ;;  %v3216_v5 = vpop.f32.mrb[46].mxu1  ;;  %9703 = vtanh.f32 %v11284_v28  ;;  %v11340_v23 = vld [vmem:[#allocation5 + $0x84] ss:$16 sps:$4 sm:$0xff]   ;;  %v11346_v61 = vld [vmem:[#allocation5 + $0x80] ss:$16 sps:$4 sm:$0xff]  }
 0x4b1   :  { %v8243_v6 = vmul.f32 -1.442695, %v3219_v54  ;;  %v3176_v62 = vpop.f32.mrb[47].mxu0  ;;  %v3217_v63 = vpop.f32.mrb[47].mxu1  ;;  %v11348_v59 = vld [vmem:[#allocation5 + $0x88] ss:$16 sps:$4 sm:$0xff]  }
 0x4b2   :  { %v8244_v17 = vmul.f32 -1.442695, %v3220_v57  ;;  %v8245_v21 = vmul.f32 -1.442695, %v3222_v44  ;;  %v11352_v56 = vld [vmem:[#allocation5 + $0xa4] ss:$16 sps:$4 sm:$0xff]  }
 0x4b3   :  { %9705 = vpow2.f32 %v8243_v6  ;;  %v11354_v54 = vld [vmem:[#allocation5 + $0xac] ss:$16 sps:$4 sm:$0xff]   ;;  %v11360_v7 = vld [vmem:[#allocation5 + $0xa8] ss:$16 sps:$4 sm:$0xff]   ;;  %v11364_v8 = vld [vmem:[#allocation5 + $0xc4] ss:$16 sps:$4 sm:$0xff]  }
 0x4b4   :  { %9707 = vpow2.f32 %v8244_v17  ;;  %v11366_v57 = vld [vmem:[#allocation5 + $0xcc] ss:$16 sps:$4 sm:$0xff]   ;;  %v11370_v44 = vld [vmem:[#allocation5 + $0xc0] ss:$16 sps:$4 sm:$0xff]   ;;  %v11372_v60 = vld [vmem:[#allocation5 + $0xc8] ss:$16 sps:$4 sm:$0xff]  }
 0x4b5   :  { %9709 = vpow2.f32 %v8245_v21  ;;  %v11376_v5 = vld [vmem:[#allocation5 + $0xe4] ss:$16 sps:$4 sm:$0xff]   ;;  %v11378_v6 = vld [vmem:[#allocation5 + $0xec] ss:$16 sps:$4 sm:$0xff]   ;;  %v11382_v62 = vld [vmem:[#allocation5 + $0xe0] ss:$16 sps:$4 sm:$0xff]  }
 0x4b6   :  { %9711 = vtanh.f32 %v3221_v9  ;;  %v11358_v9 = vld [vmem:[#allocation5 + $0xa0] ss:$16 sps:$4 sm:$0xff]   ;;  %v11384_v63 = vld [vmem:[#allocation5 + $0xe8] ss:$16 sps:$4 sm:$0xff]   ;;  %v11395_v17 = vld [vmem:[%s12798_s4 + $0x4] ss:$16 sps:$4 sm:$0xff]  }
 0x4b7   :  { %v11410_v21 = vld [vmem:[%s12798_s4 + $0x8] ss:$16 sps:$4 sm:$0xff]  }
 0x4ba   :  { %v9704_v20 = vpop.eup %9703 }
 0x4bb   :  { %v2939_v22 = vmul.f32 %v9704_v20, %v9702_v19  ;;  %v11400_v19 = vld [vmem:[%s12798_s4 + $0xc] ss:$16 sps:$4 sm:$0xff]   ;;  %v11405_v20 = vld [vmem:[%s12798_s4] ss:$16 sps:$4 sm:$0xff]  }
 0x4bd   :  { %v9706_v24 = vpop.eup %9705  ;;  %2940 = vst [vmem:[%s12800_s6 + $0x10] sm:$0xff] %v2939_v22  ;;  %v3248_v25 = vpack.c.bf16 %v2939_v22, %v2939_v22  ;;  %v11419_v22 = vld [vmem:[%s12798_s4 + $0x24] ss:$16 sps:$4 sm:$0xff]  }
 0x4be   :  { %v9708_v26 = vpop.eup %9707  ;;  %v3226_v27 = vadd.f32 1.0, %v9706_v24  ;;  %13251 = vst [vmem:[#allocation38_spill] sm:$0xff] %v11419_v22  ;;  %v11424_v24 = vld [vmem:[%s12798_s4 + $0x2c] ss:$16 sps:$4 sm:$0xff]  }
 0x4bf   :  { %v3232_v29 = vadd.f32 1.0, %v9708_v26  ;;  %3687 = vmatprep.mubr.bf16.mxu0 %v3248_v25  ;;  %3728 = vmatprep.mubr.bf16.mxu1 %v3248_v25  ;;  %v9710_v30 = vpop.eup %9709  ;;  %13252 = vst [vmem:[#allocation39_spill] sm:$0xff] %v11424_v24  ;;  %v11429_v25 = vld [vmem:[%s12798_s4 + $0x20] ss:$16 sps:$4 sm:$0xff]   ;;  %v11434_v26 = vld [vmem:[%s12798_s4 + $0x28] ss:$16 sps:$4 sm:$0xff]  }
 0x4c0   :  { %9713 = vrcp.f32 %v3226_v27  ;;  %v9712_v31 = vpop.eup %9711  ;;  %v3239_v35 = vadd.f32 1.0, %v9710_v30  ;;  %13253 = vst [vmem:[#allocation40_spill] sm:$0xff] %v11429_v25  ;;  %13254 = vst [vmem:[#allocation41_spill] sm:$0xff] %v11434_v26  ;;  %v11443_v27 = vld [vmem:[%s12798_s4 + $0x44] ss:$16 sps:$4 sm:$0xff]  }
 0x4c1   :  { %9715 = vrcp.f32 %v3232_v29  ;;  %13255 = vst [vmem:[#allocation9_spill] sm:$0xff] %v11443_v27  ;;  %v11448_v29 = vld [vmem:[%s12798_s4 + $0x4c] ss:$16 sps:$4 sm:$0xff]   ;;  %v11453_v30 = vld [vmem:[%s12798_s4 + $0x40] ss:$16 sps:$4 sm:$0xff]  }
 0x4c2   :  { %9717 = vrcp.f32 %v3239_v35  ;;  %13256 = vst [vmem:[#allocation10_spill] sm:$0xff] %v11448_v29  ;;  %13257 = vst [vmem:[#allocation11_spill] sm:$0xff] %v11453_v30  ;;  %v11482_v35 = vld [vmem:[%s12798_s4 + $0x68] ss:$16 sps:$4 sm:$0xff]  }
 0x4c3   :  { %13262 = vst [vmem:[#allocation16_spill] sm:$0xff] %v11482_v35 }
 0x4ca   :  { %v9714_v32 = vpop.eup %9713 }
 0x4cb   :  { %v9716_v33 = vpop.eup %9715  ;;  %v3243_v34 = vmul.f32 %v9714_v32, %v9712_v31  ;;  %v11458_v31 = vld [vmem:[%s12798_s4 + $0x48] ss:$16 sps:$4 sm:$0xff]   ;;  %v11467_v32 = vld [vmem:[%s12798_s4 + $0x64] ss:$16 sps:$4 sm:$0xff]  }
 0x4cc   :  { %v3242_v36 = vmul.f32 %v9716_v33, %v11163_v58  ;;  %v9718_v38 = vpop.eup %9717  ;;  %v11308_v58 = vld [vmem:[#allocation5 + $0x20] ss:$16 sps:$4 sm:$0xff]   ;;  %13258 = vst [vmem:[#allocation12_spill] sm:$0xff] %v11458_v31  ;;  %13259 = vst [vmem:[#allocation13_spill] sm:$0xff] %v11467_v32  ;;  %v11472_v33 = vld [vmem:[%s12798_s4 + $0x6c] ss:$16 sps:$4 sm:$0xff]  }
 0x4cd   :  { %13260 = vst [vmem:[#allocation14_spill] sm:$0xff] %v11472_v33 }
 0x4ce   :  { %v11291_v37 = vadd.f32 %v3243_v34, %v3242_v36  ;;  %v11477_v34 = vld [vmem:[%s12798_s4 + $0x60] ss:$16 sps:$4 sm:$0xff]   ;;  %v11491_v36 = vld [vmem:[%s12798_s4 + $0x84] ss:$16 sps:$4 sm:$0xff]  }
 0x4cf   :  { %13261 = vst [vmem:[#allocation15_spill] sm:$0xff] %v11477_v34  ;;  %13263 = vst [vmem:[#allocation17_spill] sm:$0xff] %v11491_v36 }
 0x4d0   :  { %9719 = vtanh.f32 %v11291_v37 }
 0x4da   :  { %v9720_v39 = vpop.eup %9719 }
 0x4db   :  { %v3246_v40 = vmul.f32 %v9720_v39, %v9718_v38  ;;  %v11496_v38 = vld [vmem:[%s12798_s4 + $0x8c] ss:$16 sps:$4 sm:$0xff]   ;;  %v11501_v39 = vld [vmem:[%s12798_s4 + $0x80] ss:$16 sps:$4 sm:$0xff]  }
 0x4dc   :  { %13264 = vst [vmem:[#allocation18_spill] sm:$0xff] %v11496_v38  ;;  %13265 = vst [vmem:[#allocation19_spill] sm:$0xff] %v11501_v39 }
 0x4dd   :  { %v11298_v47 = vpack.c.bf16 %v3246_v40, %v3246_v40  ;;  %v11506_v40 = vld [vmem:[%s12798_s4 + $0x88] ss:$16 sps:$4 sm:$0xff]  }
 0x4de   :  { %13266 = vst [vmem:[#allocation20_spill] sm:$0xff] %v11506_v40 }
 0x4df   :  { %3688 = vmatmul.mubr.bf16.vlgmr.msra.gmra.mrb[48].mxu0 %v11298_v47  ;;  %3729 = vmatmul.mubr.bf16.vlgmr.msra.gmra.mrb[48].mxu1 %v11298_v47 }
 0x4e0   :  { %3959 = vmatpush1.bf16.msra.mxu0 %v11294_v43  ;;  %4000 = vmatpush1.bf16.msra.mxu1 %v11296_v45 }
 0x4e1   :  { %3960 = vmatprep.subr.bf16.mxu0 %v11300_v48  ;;  %4001 = vmatprep.subr.bf16.mxu1 %v11302_v49 }
 0x4e2   :  { %3990 = vmatprep.mubr.bf16.mxu0 %v13085_v4  ;;  %4031 = vmatprep.mubr.bf16.mxu1 %v13085_v4 }
 0x4e4   :  { %3961 = vmatpush1.bf16.msra.mxu0 %v11308_v58  ;;  %4002 = vmatpush1.bf16.msra.mxu1 %v11310_v46 }
 0x4e5   :  { %3962 = vmatprep.subr.bf16.mxu0 %v11314_v15  ;;  %4003 = vmatprep.subr.bf16.mxu1 %v11316_v53 }
 0x4e8   :  { %3963 = vmatpush1.bf16.msra.mxu0 %v11322_v51  ;;  %4004 = vmatpush1.bf16.msra.mxu1 %v11324_v11 }
 0x4e9   :  { %3964 = vmatprep.subr.bf16.mxu0 %v11328_v52  ;;  %4005 = vmatprep.subr.bf16.mxu1 %v11330_v10 }
 0x4ec   :  { %3965 = vmatpush1.bf16.msra.mxu0 %v11334_v50  ;;  %4006 = vmatpush1.bf16.msra.mxu1 %v11336_v41 }
 0x4ed   :  { %3966 = vmatprep.subr.bf16.mxu0 %v11340_v23  ;;  %4007 = vmatprep.subr.bf16.mxu1 %v11342_v42 }
 0x4f0   :  { %3967 = vmatpush1.bf16.msra.mxu0 %v11346_v61  ;;  %4008 = vmatpush1.bf16.msra.mxu1 %v11348_v59 }
 0x4f1   :  { %3968 = vmatprep.subr.bf16.mxu0 %v11352_v56  ;;  %4009 = vmatprep.subr.bf16.mxu1 %v11354_v54 }
 0x4f4   :  { %3969 = vmatpush1.bf16.msra.mxu0 %v11358_v9  ;;  %4010 = vmatpush1.bf16.msra.mxu1 %v11360_v7 }
 0x4f5   :  { %3970 = vmatprep.subr.bf16.mxu0 %v11364_v8  ;;  %4011 = vmatprep.subr.bf16.mxu1 %v11366_v57 }
 0x4f8   :  { %3971 = vmatpush1.bf16.msra.mxu0 %v11370_v44  ;;  %4012 = vmatpush1.bf16.msra.mxu1 %v11372_v60 }
 0x4f9   :  { %3972 = vmatprep.subr.bf16.mxu0 %v11376_v5  ;;  %4013 = vmatprep.subr.bf16.mxu1 %v11378_v6 }
 0x4fc   :  { %3973 = vmatpush1.bf16.msra.mxu0 %v11382_v62  ;;  %4014 = vmatpush1.bf16.msra.mxu1 %v11384_v63 }
 0x4fd   :  { %4476 = vmatprep.subr.bf16.mxu0 %v11395_v17  ;;  %4517 = vmatprep.subr.bf16.mxu1 %v11400_v19 }
 0x4ff   :  { %3991 = vmatmul.mubr.bf16.vlgmr.msra.gmra.mrb[52].mxu0 %v11298_v47  ;;  %4032 = vmatmul.mubr.bf16.vlgmr.msra.gmra.mrb[52].mxu1 %v11298_v47  ;;  %v11515_v47 = vld [vmem:[%s12798_s4 + $0xa4] ss:$16 sps:$4 sm:$0xff]  }
 0x500   :  { %4477 = vmatpush1.bf16.msra.mxu0 %v11405_v20  ;;  %4518 = vmatpush1.bf16.msra.mxu1 %v11410_v21  ;;  %13267 = vst [vmem:[#allocation21_spill] sm:$0xff] %v11515_v47 }
 0x501   :  { %4478 = vmatprep.subr.bf16.mxu0 %v11419_v22  ;;  %4519 = vmatprep.subr.bf16.mxu1 %v11424_v24 }
 0x504   :  { %4479 = vmatpush1.bf16.msra.mxu0 %v11429_v25  ;;  %4520 = vmatpush1.bf16.msra.mxu1 %v11434_v26 }
 0x505   :  { %4480 = vmatprep.subr.bf16.mxu0 %v11443_v27  ;;  %4521 = vmatprep.subr.bf16.mxu1 %v11448_v29 }
 0x508   :  { %4481 = vmatpush1.bf16.msra.mxu0 %v11453_v30  ;;  %4522 = vmatpush1.bf16.msra.mxu1 %v11458_v31 }
 0x509   :  { %4482 = vmatprep.subr.bf16.mxu0 %v11467_v32  ;;  %4523 = vmatprep.subr.bf16.mxu1 %v11472_v33 }
 0x50c   :  { %4483 = vmatpush1.bf16.msra.mxu0 %v11477_v34  ;;  %4524 = vmatpush1.bf16.msra.mxu1 %v11482_v35  ;;  %v11520_v35 = vld [vmem:[%s12798_s4 + $0xac] ss:$16 sps:$4 sm:$0xff]  }
 0x50d   :  { %4484 = vmatprep.subr.bf16.mxu0 %v11491_v36  ;;  %4525 = vmatprep.subr.bf16.mxu1 %v11496_v38  ;;  %13268 = vst [vmem:[#allocation23_spill] sm:$0xff] %v11520_v35  ;;  %v11525_v36 = vld [vmem:[%s12798_s4 + $0xa0] ss:$16 sps:$4 sm:$0xff]   ;;  %v11544_v38 = vld [vmem:[%s12798_s4 + $0xcc] ss:$16 sps:$4 sm:$0xff]  }
 0x50e   :  { %13269 = vst [vmem:[#allocation25_spill] sm:$0xff] %v11525_v36  ;;  %13272 = vst [vmem:[#allocation26_spill] sm:$0xff] %v11544_v38 }
 0x510   :  { %4485 = vmatpush1.bf16.msra.mxu0 %v11501_v39  ;;  %4526 = vmatpush1.bf16.msra.mxu1 %v11506_v40  ;;  %v11530_v39 = vld [vmem:[%s12798_s4 + $0xa8] ss:$16 sps:$4 sm:$0xff]   ;;  %v11539_v40 = vld [vmem:[%s12798_s4 + $0xc4] ss:$16 sps:$4 sm:$0xff]  }
 0x511   :  { %13270 = vst [vmem:[#allocation22_spill] sm:$0xff] %v11530_v39  ;;  %4486 = vmatprep.subr.bf16.mxu0 %v11515_v47  ;;  %4527 = vmatprep.subr.bf16.mxu1 %v11520_v35  ;;  %13271 = vst [vmem:[#allocation24_spill] sm:$0xff] %v11539_v40  ;;  %v11549_v47 = vld [vmem:[%s12798_s4 + $0xc0] ss:$16 sps:$4 sm:$0xff]   ;;  %v11568_v35 = vld [vmem:[%s12798_s4 + $0xec] ss:$16 sps:$4 sm:$0xff]  }
 0x512   :  { %13273 = vst [vmem:[#allocation28_spill] sm:$0xff] %v11549_v47  ;;  %13276 = vst [vmem:[#allocation30_spill] sm:$0xff] %v11568_v35 }
 0x514   :  { %4487 = vmatpush1.bf16.msra.mxu0 %v11525_v36  ;;  %4528 = vmatpush1.bf16.msra.mxu1 %v11530_v39  ;;  %v11554_v36 = vld [vmem:[%s12798_s4 + $0xc8] ss:$16 sps:$4 sm:$0xff]   ;;  %v11563_v39 = vld [vmem:[%s12798_s4 + $0xe4] ss:$16 sps:$4 sm:$0xff]  }
 0x515   :  { %13274 = vst [vmem:[#allocation27_spill] sm:$0xff] %v11554_v36  ;;  %4488 = vmatprep.subr.bf16.mxu0 %v11539_v40  ;;  %4529 = vmatprep.subr.bf16.mxu1 %v11544_v38  ;;  %13275 = vst [vmem:[#allocation29_spill] sm:$0xff] %v11563_v39  ;;  %v11573_v40 = vld [vmem:[%s12798_s4 + $0xe0] ss:$16 sps:$4 sm:$0xff]   ;;  %v11592_v38 = vld [vmem:[%s12798_s4 + $0x10c] ss:$16 sps:$4 sm:$0xff]  }
 0x516   :  { %13277 = vst [vmem:[#allocation31_spill] sm:$0xff] %v11573_v40  ;;  %13280 = vst [vmem:[#allocation65_spill] sm:$0xff] %v11592_v38 }
 0x518   :  { %4489 = vmatpush1.bf16.msra.mxu0 %v11549_v47  ;;  %4530 = vmatpush1.bf16.msra.mxu1 %v11554_v36  ;;  %v11578_v47 = vld [vmem:[%s12798_s4 + $0xe8] ss:$16 sps:$4 sm:$0xff]   ;;  %v11587_v36 = vld [vmem:[%s12798_s4 + $0x104] ss:$16 sps:$4 sm:$0xff]  }
 0x519   :  { %13278 = vst [vmem:[#allocation32_spill] sm:$0xff] %v11578_v47  ;;  %4490 = vmatprep.subr.bf16.mxu0 %v11563_v39  ;;  %4531 = vmatprep.subr.bf16.mxu1 %v11568_v35  ;;  %13279 = vst [vmem:[#allocation33_spill] sm:$0xff] %v11587_v36  ;;  %v11597_v39 = vld [vmem:[%s12798_s4 + $0x100] ss:$16 sps:$4 sm:$0xff]   ;;  %v11616_v35 = vld [vmem:[%s12798_s4 + $0x12c] ss:$16 sps:$4 sm:$0xff]  }
 0x51a   :  { %13281 = vst [vmem:[#allocation63_spill] sm:$0xff] %v11597_v39  ;;  %13284 = vst [vmem:[#allocation36_spill] sm:$0xff] %v11616_v35 }
 0x51c   :  { %4491 = vmatpush1.bf16.msra.mxu0 %v11573_v40  ;;  %4532 = vmatpush1.bf16.msra.mxu1 %v11578_v47  ;;  %v11602_v40 = vld [vmem:[%s12798_s4 + $0x108] ss:$16 sps:$4 sm:$0xff]   ;;  %v11611_v47 = vld [vmem:[%s12798_s4 + $0x124] ss:$16 sps:$4 sm:$0xff]  }
 0x51d   :  { %13282 = vst [vmem:[#allocation34_spill] sm:$0xff] %v11602_v40  ;;  %4492 = vmatprep.subr.bf16.mxu0 %v11587_v36  ;;  %4533 = vmatprep.subr.bf16.mxu1 %v11592_v38  ;;  %13283 = vst [vmem:[#allocation35_spill] sm:$0xff] %v11611_v47  ;;  %v11621_v36 = vld [vmem:[%s12798_s4 + $0x120] ss:$16 sps:$4 sm:$0xff]   ;;  %v11640_v38 = vld [vmem:[%s12798_s4 + $0x14c] ss:$16 sps:$4 sm:$0xff]  }
 0x51e   :  { %13285 = vst [vmem:[#allocation37_spill] sm:$0xff] %v11621_v36  ;;  %13288 = vst [vmem:[#allocation69_spill] sm:$0xff] %v11640_v38 }
 0x520   :  { %4493 = vmatpush1.bf16.msra.mxu0 %v11597_v39  ;;  %4534 = vmatpush1.bf16.msra.mxu1 %v11602_v40  ;;  %v11626_v39 = vld [vmem:[%s12798_s4 + $0x128] ss:$16 sps:$4 sm:$0xff]   ;;  %v11635_v40 = vld [vmem:[%s12798_s4 + $0x144] ss:$16 sps:$4 sm:$0xff]  }
 0x521   :  { %13286 = vst [vmem:[#allocation67_spill] sm:$0xff] %v11626_v39  ;;  %4494 = vmatprep.subr.bf16.mxu0 %v11611_v47  ;;  %4535 = vmatprep.subr.bf16.mxu1 %v11616_v35  ;;  %13287 = vst [vmem:[#allocation68_spill] sm:$0xff] %v11635_v40  ;;  %v11645_v47 = vld [vmem:[%s12798_s4 + $0x140] ss:$16 sps:$4 sm:$0xff]   ;;  %v11664_v35 = vld [vmem:[%s12798_s4 + $0x16c] ss:$16 sps:$4 sm:$0xff]  }
 0x522   :  { %13289 = vst [vmem:[#allocation70_spill] sm:$0xff] %v11645_v47  ;;  %13292 = vst [vmem:[#allocation73_spill] sm:$0xff] %v11664_v35 }
 0x524   :  { %4495 = vmatpush1.bf16.msra.mxu0 %v11621_v36  ;;  %4536 = vmatpush1.bf16.msra.mxu1 %v11626_v39  ;;  %v11650_v36 = vld [vmem:[%s12798_s4 + $0x148] ss:$16 sps:$4 sm:$0xff]   ;;  %v11659_v39 = vld [vmem:[%s12798_s4 + $0x164] ss:$16 sps:$4 sm:$0xff]  }
 0x525   :  { %13290 = vst [vmem:[#allocation71_spill] sm:$0xff] %v11650_v36  ;;  %4496 = vmatprep.subr.bf16.mxu0 %v11635_v40  ;;  %4537 = vmatprep.subr.bf16.mxu1 %v11640_v38  ;;  %13291 = vst [vmem:[#allocation72_spill] sm:$0xff] %v11659_v39  ;;  %v11669_v40 = vld [vmem:[%s12798_s4 + $0x160] ss:$16 sps:$4 sm:$0xff]   ;;  %v11688_v38 = vld [vmem:[%s12798_s4 + $0x18c] ss:$16 sps:$4 sm:$0xff]  }
 0x526   :  { %13293 = vst [vmem:[#allocation74_spill] sm:$0xff] %v11669_v40  ;;  %13296 = vst [vmem:[#allocation77_spill] sm:$0xff] %v11688_v38 }
 0x528   :  { %4497 = vmatpush1.bf16.msra.mxu0 %v11645_v47  ;;  %4538 = vmatpush1.bf16.msra.mxu1 %v11650_v36  ;;  %v11674_v47 = vld [vmem:[%s12798_s4 + $0x168] ss:$16 sps:$4 sm:$0xff]   ;;  %v11683_v36 = vld [vmem:[%s12798_s4 + $0x184] ss:$16 sps:$4 sm:$0xff]  }
 0x529   :  { %13294 = vst [vmem:[#allocation75_spill] sm:$0xff] %v11674_v47  ;;  %4498 = vmatprep.subr.bf16.mxu0 %v11659_v39  ;;  %4539 = vmatprep.subr.bf16.mxu1 %v11664_v35  ;;  %13295 = vst [vmem:[#allocation76_spill] sm:$0xff] %v11683_v36  ;;  %v11693_v39 = vld [vmem:[%s12798_s4 + $0x180] ss:$16 sps:$4 sm:$0xff]   ;;  %v11710_v35 = vld [vmem:[%s12798_s4 + $0x1ac] ss:$16 sps:$4 sm:$0xff]  }
 0x52a   :  { %13297 = vst [vmem:[#allocation78_spill] sm:$0xff] %v11693_v39  ;;  %13300 = vst [vmem:[#allocation81_spill] sm:$0xff] %v11710_v35 }
 0x52c   :  { %4499 = vmatpush1.bf16.msra.mxu0 %v11669_v40  ;;  %4540 = vmatpush1.bf16.msra.mxu1 %v11674_v47  ;;  %v11698_v40 = vld [vmem:[%s12798_s4 + $0x188] ss:$16 sps:$4 sm:$0xff]   ;;  %v11705_v47 = vld [vmem:[%s12798_s4 + $0x1a4] ss:$16 sps:$4 sm:$0xff]  }
 0x52d   :  { %13298 = vst [vmem:[#allocation79_spill] sm:$0xff] %v11698_v40  ;;  %4500 = vmatprep.subr.bf16.mxu0 %v11683_v36  ;;  %4541 = vmatprep.subr.bf16.mxu1 %v11688_v38  ;;  %13299 = vst [vmem:[#allocation80_spill] sm:$0xff] %v11705_v47  ;;  %v11717_v36 = vld [vmem:[%s12798_s4 + $0x1a0] ss:$16 sps:$4 sm:$0xff]   ;;  %v11722_v38 = vld [vmem:[%s12798_s4 + $0x1a8] ss:$16 sps:$4 sm:$0xff]  }
 0x52e   :  { %13301 = vst [vmem:[#allocation82_spill] sm:$0xff] %v11717_v36  ;;  %13302 = vst [vmem:[#allocation83_spill] sm:$0xff] %v11722_v38 }
 0x530   :  { %4501 = vmatpush1.bf16.msra.mxu0 %v11693_v39  ;;  %4542 = vmatpush1.bf16.msra.mxu1 %v11698_v40  ;;  %v11729_v39 = vld [vmem:[%s12798_s4 + $0x1c4] ss:$16 sps:$4 sm:$0xff]   ;;  %v11734_v40 = vld [vmem:[%s12798_s4 + $0x1cc] ss:$16 sps:$4 sm:$0xff]  }
 0x531   :  { %4502 = vmatprep.subr.bf16.mxu0 %v11705_v47  ;;  %4543 = vmatprep.subr.bf16.mxu1 %v11710_v35  ;;  %13303 = vst [vmem:[#allocation84_spill] sm:$0xff] %v11729_v39  ;;  %13304 = vst [vmem:[#allocation85_spill] sm:$0xff] %v11734_v40  ;;  %v11741_v47 = vld [vmem:[%s12798_s4 + $0x1c0] ss:$16 sps:$4 sm:$0xff]   ;;  %v11746_v35 = vld [vmem:[%s12798_s4 + $0x1c8] ss:$16 sps:$4 sm:$0xff]  }
 0x532   :  { %13305 = vst [vmem:[#allocation86_spill] sm:$0xff] %v11741_v47  ;;  %13306 = vst [vmem:[#allocation87_spill] sm:$0xff] %v11746_v35 }
 0x534   :  { %4503 = vmatpush1.bf16.msra.mxu0 %v11717_v36  ;;  %4544 = vmatpush1.bf16.msra.mxu1 %v11722_v38  ;;  %v11753_v36 = vld [vmem:[%s12798_s4 + $0x1e4] ss:$16 sps:$4 sm:$0xff]   ;;  %v11758_v38 = vld [vmem:[%s12798_s4 + $0x1ec] ss:$16 sps:$4 sm:$0xff]  }
 0x535   :  { %4504 = vmatprep.subr.bf16.mxu0 %v11729_v39  ;;  %4545 = vmatprep.subr.bf16.mxu1 %v11734_v40  ;;  %13307 = vst [vmem:[#allocation88_spill] sm:$0xff] %v11753_v36  ;;  %13308 = vst [vmem:[#allocation89_spill] sm:$0xff] %v11758_v38  ;;  %v11765_v39 = vld [vmem:[%s12798_s4 + $0x1e0] ss:$16 sps:$4 sm:$0xff]   ;;  %v11770_v40 = vld [vmem:[%s12798_s4 + $0x1e8] ss:$16 sps:$4 sm:$0xff]  }
 0x536   :  { %13309 = vst [vmem:[#allocation90_spill] sm:$0xff] %v11765_v39  ;;  %13310 = vst [vmem:[#allocation91_spill] sm:$0xff] %v11770_v40 }
 0x538   :  { %4505 = vmatpush1.bf16.msra.mxu0 %v11741_v47  ;;  %4546 = vmatpush1.bf16.msra.mxu1 %v11746_v35  ;;  %v3313_v35 = vld [vmem:[%s12799_s5] sm:$0xf] }
 0x539   :  { %4506 = vmatprep.subr.bf16.mxu0 %v11753_v36  ;;  %4547 = vmatprep.subr.bf16.mxu1 %v11758_v38  ;;  %v3318_v47 = vrot.slane %v3313_v35, %v13244_v16  ;;  %v3322_v34 = vrot.slane %v3313_v35, %v13245_v18  ;;  %v3330_v26 = vrot.slane %v3313_v35, %v13113_v12 }
 0x53a   :  { %v3326_v16 = vrot.slane %v3313_v35, %v13114_v14 }
 0x53c   :  { %4507 = vmatpush1.bf16.msra.mxu0 %v11765_v39  ;;  %4548 = vmatpush1.bf16.msra.mxu1 %v11770_v40 }
 0x53d   :  { %4779 = vmatprep.subr.bf16.mxu0 %v11262_v2  ;;  %4820 = vmatprep.subr.bf16.mxu1 %v11264_v55 }
 0x5b2   :  { %v3689_v33 = vpop.f32.mrb[48].mxu0  ;;  %v3730_v36 = vpop.f32.mrb[48].mxu1 }
 0x5b3   :  { %v3690_v32 = vadd.f32 %v3689_v33, %v3318_v47  ;;  %v3691_v38 = vpop.f32.mrb[49].mxu0  ;;  %v3732_v31 = vpop.f32.mrb[49].mxu1  ;;  %v3731_v24 = vadd.f32 %v3730_v36, %v3326_v16  ;;  %v13312_v16 = vld [vmem:[#allocation47_spill] sm:$0xff] }
 0x5b4   :  { %v3692_v39 = vadd.f32 %v3691_v38, %v3322_v34  ;;  %v3693_v30 = vpop.f32.mrb[50].mxu0  ;;  %v3734_v40 = vpop.f32.mrb[50].mxu1  ;;  %v3733_v25 = vadd.f32 %v3732_v31, %v3330_v26  ;;  %v13311_v31 = vld [vmem:[#allocation46_spill] sm:$0xff]  ;;  %v416_v35 = vadd.f32 %v13312_v16, %v10538_v3 }
 0x5b5   :  { %v8310_v29 = vmul.f32 -1.442695, %v3690_v32  ;;  %v3694_v2 = vpop.f32.mrb[51].mxu0  ;;  %v3735_v27 = vpop.f32.mrb[51].mxu1 }
 0x5b6   :  { %v8311_v55 = vmul.f32 -1.442695, %v3692_v39  ;;  %v8312_v18 = vmul.f32 -1.442695, %v3733_v25  ;;  %v335_v25 = vadd.f32 %v13311_v31, %v10535_v13 }
 0x5b7   :  { %9721 = vpow2.f32 %v8310_v29 }
 0x5b8   :  { %9723 = vpow2.f32 %v8311_v55 }
 0x5b9   :  { %9725 = vpow2.f32 %v8312_v18  ;;  %v13313_v18 = vld [vmem:[#allocation48_spill] sm:$0xff] }
 0x5ba   :  { %9727 = vtanh.f32 %v3731_v24  ;;  %v13314_v24 = vld [vmem:[#allocation49_spill] sm:$0xff] }
 0x5bb   :  { %v418_v36 = vadd.f32 %v13314_v24, %v10544_v1 }
 0x5c1   :  { %v9722_v22 = vpop.eup %9721 }
 0x5c2   :  { %v9724_v33 = vpop.eup %9723  ;;  %v3740_v47 = vadd.f32 1.0, %v9722_v22  ;;  %v337_v22 = vadd.f32 %v13313_v18, %v13248_v0 }
 0x5c3   :  { %v3746_v30 = vadd.f32 1.0, %v9724_v33  ;;  %v9726_v32 = vpop.eup %9725 }
 0x5c4   :  { %9729 = vrcp.f32 %v3740_v47  ;;  %v9728_v27 = vpop.eup %9727  ;;  %v3753_v29 = vadd.f32 1.0, %v9726_v32 }
 0x5c5   :  { %9731 = vrcp.f32 %v3746_v30 }
 0x5c6   :  { %9733 = vrcp.f32 %v3753_v29 }
 0x5ce   :  { %v9730_v34 = vpop.eup %9729 }
 0x5cf   :  { %v9732_v38 = vpop.eup %9731  ;;  %v3757_v39 = vmul.f32 %v9730_v34, %v9728_v27 }
 0x5d0   :  { %v3756_v26 = vmul.f32 %v9732_v38, %v11284_v28 }
 0x5d2   :  { %v11794_v40 = vadd.f32 %v3757_v39, %v3756_v26  ;;  %v3992_v2 = vpop.f32.mrb[52].mxu0  ;;  %v4033_v55 = vpop.f32.mrb[52].mxu1 }
 0x5d3   :  { %v4040_v33 = vadd.f32 %v3992_v2, %v335_v25  ;;  %v4042_v47 = vadd.f32 %v4033_v55, %v416_v35  ;;  %v3994_v28 = vpop.f32.mrb[53].mxu0  ;;  %v4035_v30 = vpop.f32.mrb[53].mxu1 }
 0x5d4   :  { %v4041_v32 = vadd.f32 %v3994_v28, %v337_v22  ;;  %v4043_v27 = vadd.f32 %v4035_v30, %v418_v36  ;;  %v3996_v34 = vpop.f32.mrb[54].mxu0  ;;  %v4037_v38 = vpop.f32.mrb[54].mxu1  ;;  %9735 = vtanh.f32 %v11794_v40 }
 0x5d5   :  { %v8345_v31 = vmul.f32 -1.442695, %v4040_v33  ;;  %v3997_v16 = vpop.f32.mrb[55].mxu0  ;;  %v4038_v18 = vpop.f32.mrb[55].mxu1 }
 0x5d6   :  { %v8346_v0 = vmul.f32 -1.442695, %v4041_v32  ;;  %v9734_v39 = vpop.eup %9733  ;;  %v8347_v24 = vmul.f32 -1.442695, %v4043_v27  ;;  %v13350_v18 = vld [vmem:[#allocation67_spill] sm:$0xff] }
 0x5d7   :  { %9737 = vpow2.f32 %v8345_v31 }
 0x5d8   :  { %9739 = vpow2.f32 %v8346_v0 }
 0x5d9   :  { %9741 = vpow2.f32 %v8347_v24  ;;  %v13353_v24 = vld [vmem:[#allocation70_spill] sm:$0xff] }
 0x5da   :  { %9743 = vtanh.f32 %v4042_v47 }
 0x5de   :  { %v9736_v26 = vpop.eup %9735 }
 0x5df   :  { %v3760_v29 = vmul.f32 %v9736_v26, %v9734_v39  ;;  %v13351_v39 = vld [vmem:[#allocation68_spill] sm:$0xff]  ;;  %v13352_v26 = vld [vmem:[#allocation69_spill] sm:$0xff] }
 0x5e1   :  { %v9738_v25 = vpop.eup %9737  ;;  %3761 = vst [vmem:[%s12800_s6 + $0x18] sm:$0xff] %v3760_v29  ;;  %v4069_v35 = vpack.c.bf16 %v3760_v29, %v3760_v29  ;;  %v13354_v29 = vld [vmem:[#allocation71_spill] sm:$0xff] }
 0x5e2   :  { %v9740_v22 = vpop.eup %9739  ;;  %v4047_v36 = vadd.f32 1.0, %v9738_v25  ;;  %v13355_v25 = vld [vmem:[#allocation72_spill] sm:$0xff] }
 0x5e3   :  { %v4053_v2 = vadd.f32 1.0, %v9740_v22  ;;  %4508 = vmatprep.mubr.bf16.mxu0 %v4069_v35  ;;  %4549 = vmatprep.mubr.bf16.mxu1 %v4069_v35  ;;  %v9742_v0 = vpop.eup %9741  ;;  %v13356_v35 = vld [vmem:[#allocation73_spill] sm:$0xff]  ;;  %v13357_v22 = vld [vmem:[#allocation74_spill] sm:$0xff] }
 0x5e4   :  { %9745 = vrcp.f32 %v4047_v36  ;;  %v9744_v55 = vpop.eup %9743  ;;  %v4060_v32 = vadd.f32 1.0, %v9742_v0  ;;  %v13358_v36 = vld [vmem:[#allocation75_spill] sm:$0xff]  ;;  %v13360_v0 = vld [vmem:[#allocation77_spill] sm:$0xff] }
 0x5e5   :  { %9747 = vrcp.f32 %v4053_v2  ;;  %v13359_v2 = vld [vmem:[#allocation76_spill] sm:$0xff] }
 0x5e6   :  { %9749 = vrcp.f32 %v4060_v32  ;;  %v13365_v32 = vld [vmem:[#allocation82_spill] sm:$0xff] }
 0x5ee   :  { %v9746_v33 = vpop.eup %9745 }
 0x5ef   :  { %v9748_v28 = vpop.eup %9747  ;;  %v4064_v30 = vmul.f32 %v9746_v33, %v9744_v55  ;;  %v13361_v55 = vld [vmem:[#allocation78_spill] sm:$0xff]  ;;  %v13362_v33 = vld [vmem:[#allocation79_spill] sm:$0xff] }
 0x5f0   :  { %v4063_v27 = vmul.f32 %v9748_v28, %v11291_v37  ;;  %v9750_v38 = vpop.eup %9749  ;;  %v13315_v37 = vld [vmem:[#allocation38_spill] sm:$0xff]  ;;  %v13363_v28 = vld [vmem:[#allocation80_spill] sm:$0xff] }
 0x5f2   :  { %v11801_v34 = vadd.f32 %v4064_v30, %v4063_v27  ;;  %v13364_v30 = vld [vmem:[#allocation81_spill] sm:$0xff]  ;;  %v13366_v27 = vld [vmem:[#allocation83_spill] sm:$0xff] }
 0x5f4   :  { %9751 = vtanh.f32 %v11801_v34 }
 0x5fe   :  { %v9752_v47 = vpop.eup %9751 }
 0x5ff   :  { %v4067_v31 = vmul.f32 %v9752_v47, %v9750_v38  ;;  %v13367_v38 = vld [vmem:[#allocation84_spill] sm:$0xff]  ;;  %v13368_v47 = vld [vmem:[#allocation85_spill] sm:$0xff] }
 0x601   :  { %v4068_v16 = vpack.c.bf16 %v4067_v31, %v4067_v31  ;;  %v13369_v31 = vld [vmem:[#allocation86_spill] sm:$0xff] }
 0x603   :  { %4509 = vmatmul.mubr.bf16.vlgmr.msra.gmra.mrb[56].mxu0 %v4068_v16  ;;  %4550 = vmatmul.mubr.bf16.vlgmr.msra.gmra.mrb[56].mxu1 %v4068_v16 }
 0x604   :  { %4780 = vmatpush1.bf16.msra.mxu0 %v11294_v43  ;;  %4821 = vmatpush1.bf16.msra.mxu1 %v11296_v45  ;;  %v13316_v43 = vld [vmem:[#allocation39_spill] sm:$0xff]  ;;  %v13317_v45 = vld [vmem:[#allocation40_spill] sm:$0xff] }
 0x605   :  { %4781 = vmatprep.subr.bf16.mxu0 %v11300_v48  ;;  %4822 = vmatprep.subr.bf16.mxu1 %v11302_v49  ;;  %v13318_v48 = vld [vmem:[#allocation41_spill] sm:$0xff] }
 0x606   :  { %4811 = vmatprep.mubr.bf16.mxu0 %v13085_v4  ;;  %4852 = vmatprep.mubr.bf16.mxu1 %v13085_v4  ;;  %v13319_v49 = vld [vmem:[#allocation9_spill] sm:$0xff] }
 0x608   :  { %4782 = vmatpush1.bf16.msra.mxu0 %v11308_v58  ;;  %4823 = vmatpush1.bf16.msra.mxu1 %v11310_v46  ;;  %v13320_v58 = vld [vmem:[#allocation10_spill] sm:$0xff]  ;;  %v13321_v46 = vld [vmem:[#allocation11_spill] sm:$0xff] }
 0x609   :  { %4783 = vmatprep.subr.bf16.mxu0 %v11314_v15  ;;  %4824 = vmatprep.subr.bf16.mxu1 %v11316_v53  ;;  %v13322_v15 = vld [vmem:[#allocation12_spill] sm:$0xff]  ;;  %v13323_v53 = vld [vmem:[#allocation13_spill] sm:$0xff] }
 0x60c   :  { %4784 = vmatpush1.bf16.msra.mxu0 %v11322_v51  ;;  %4825 = vmatpush1.bf16.msra.mxu1 %v11324_v11  ;;  %v13324_v51 = vld [vmem:[#allocation14_spill] sm:$0xff]  ;;  %v13325_v11 = vld [vmem:[#allocation15_spill] sm:$0xff] }
 0x60d   :  { %4785 = vmatprep.subr.bf16.mxu0 %v11328_v52  ;;  %4826 = vmatprep.subr.bf16.mxu1 %v11330_v10  ;;  %v13326_v52 = vld [vmem:[#allocation16_spill] sm:$0xff]  ;;  %v13327_v10 = vld [vmem:[#allocation17_spill] sm:$0xff] }
 0x610   :  { %4786 = vmatpush1.bf16.msra.mxu0 %v11334_v50  ;;  %4827 = vmatpush1.bf16.msra.mxu1 %v11336_v41  ;;  %v13328_v50 = vld [vmem:[#allocation18_spill] sm:$0xff]  ;;  %v13329_v41 = vld [vmem:[#allocation19_spill] sm:$0xff] }
 0x611   :  { %4787 = vmatprep.subr.bf16.mxu0 %v11340_v23  ;;  %4828 = vmatprep.subr.bf16.mxu1 %v11342_v42  ;;  %v13330_v23 = vld [vmem:[#allocation20_spill] sm:$0xff]  ;;  %v13331_v42 = vld [vmem:[#allocation21_spill] sm:$0xff] }
 0x614   :  { %4788 = vmatpush1.bf16.msra.mxu0 %v11346_v61  ;;  %4829 = vmatpush1.bf16.msra.mxu1 %v11348_v59  ;;  %v13332_v61 = vld [vmem:[#allocation23_spill] sm:$0xff]  ;;  %v13333_v59 = vld [vmem:[#allocation25_spill] sm:$0xff] }
 0x615   :  { %4789 = vmatprep.subr.bf16.mxu0 %v11352_v56  ;;  %4830 = vmatprep.subr.bf16.mxu1 %v11354_v54  ;;  %v13334_v56 = vld [vmem:[#allocation22_spill] sm:$0xff]  ;;  %v13335_v54 = vld [vmem:[#allocation24_spill] sm:$0xff] }
 0x618   :  { %4790 = vmatpush1.bf16.msra.mxu0 %v11358_v9  ;;  %4831 = vmatpush1.bf16.msra.mxu1 %v11360_v7  ;;  %v13336_v9 = vld [vmem:[#allocation26_spill] sm:$0xff]  ;;  %v13337_v7 = vld [vmem:[#allocation28_spill] sm:$0xff] }
 0x619   :  { %4791 = vmatprep.subr.bf16.mxu0 %v11364_v8  ;;  %4832 = vmatprep.subr.bf16.mxu1 %v11366_v57  ;;  %v13338_v8 = vld [vmem:[#allocation27_spill] sm:$0xff]  ;;  %v13339_v57 = vld [vmem:[#allocation29_spill] sm:$0xff] }
 0x61c   :  { %4792 = vmatpush1.bf16.msra.mxu0 %v11370_v44  ;;  %4833 = vmatpush1.bf16.msra.mxu1 %v11372_v60  ;;  %v13340_v44 = vld [vmem:[#allocation30_spill] sm:$0xff]  ;;  %v13341_v60 = vld [vmem:[#allocation31_spill] sm:$0xff] }
 0x61d   :  { %4793 = vmatprep.subr.bf16.mxu0 %v11376_v5  ;;  %4834 = vmatprep.subr.bf16.mxu1 %v11378_v6  ;;  %v13342_v5 = vld [vmem:[#allocation32_spill] sm:$0xff]  ;;  %v13343_v6 = vld [vmem:[#allocation33_spill] sm:$0xff] }
 0x620   :  { %4794 = vmatpush1.bf16.msra.mxu0 %v11382_v62  ;;  %4835 = vmatpush1.bf16.msra.mxu1 %v11384_v63  ;;  %v13344_v62 = vld [vmem:[#allocation65_spill] sm:$0xff]  ;;  %v13345_v63 = vld [vmem:[#allocation63_spill] sm:$0xff] }
 0x621   :  { %5297 = vmatprep.subr.bf16.mxu0 %v11395_v17  ;;  %5338 = vmatprep.subr.bf16.mxu1 %v11400_v19  ;;  %v13346_v17 = vld [vmem:[#allocation34_spill] sm:$0xff]  ;;  %v13347_v19 = vld [vmem:[#allocation35_spill] sm:$0xff] }
 0x623   :  { %4812 = vmatmul.mubr.bf16.vlgmr.msra.gmra.mrb[60].mxu0 %v4068_v16  ;;  %4853 = vmatmul.mubr.bf16.vlgmr.msra.gmra.mrb[60].mxu1 %v4068_v16  ;;  %v13370_v16 = vld [vmem:[#allocation87_spill] sm:$0xff] }
 0x624   :  { %5298 = vmatpush1.bf16.msra.mxu0 %v11405_v20  ;;  %5339 = vmatpush1.bf16.msra.mxu1 %v11410_v21  ;;  %v13348_v20 = vld [vmem:[#allocation36_spill] sm:$0xff]  ;;  %v13349_v21 = vld [vmem:[#allocation37_spill] sm:$0xff] }
 0x625   :  { %5299 = vmatprep.subr.bf16.mxu0 %v13315_v37  ;;  %5340 = vmatprep.subr.bf16.mxu1 %v13316_v43  ;;  %v13371_v37 = vld [vmem:[#allocation88_spill] sm:$0xff]  ;;  %v13372_v43 = vld [vmem:[#allocation89_spill] sm:$0xff] }
 0x628   :  { %5300 = vmatpush1.bf16.msra.mxu0 %v13317_v45  ;;  %5341 = vmatpush1.bf16.msra.mxu1 %v13318_v48  ;;  %v13373_v45 = vld [vmem:[#allocation90_spill] sm:$0xff]  ;;  %v13374_v48 = vld [vmem:[#allocation91_spill] sm:$0xff] }
 0x629   :  { %5301 = vmatprep.subr.bf16.mxu0 %v13319_v49  ;;  %5342 = vmatprep.subr.bf16.mxu1 %v13320_v58  ;;  %v11900_v49 = vld [vmem:[#allocation5 + $0x4] ss:$16 sps:$4 sm:$0xff]   ;;  %v11902_v58 = vld [vmem:[#allocation5 + $0xc] ss:$16 sps:$4 sm:$0xff]  }
 0x62c   :  { %5302 = vmatpush1.bf16.msra.mxu0 %v13321_v46  ;;  %5343 = vmatpush1.bf16.msra.mxu1 %v13322_v15  ;;  %v4134_v46 = vld [vmem:[%s12799_s5] sm:$0xf]  ;;  %v13375_v15 = vld [vmem:[#allocation62_spill] sm:$0xff] }
 0x62d   :  { %5303 = vmatprep.subr.bf16.mxu0 %v13323_v53  ;;  %5344 = vmatprep.subr.bf16.mxu1 %v13324_v51  ;;  %v4139_v53 = vrot.slane %v4134_v46, %v13375_v15  ;;  %v13376_v51 = vld [vmem:[#allocation64_spill] sm:$0xff] }
 0x630   :  { %5304 = vmatpush1.bf16.msra.mxu0 %v13325_v11  ;;  %5345 = vmatpush1.bf16.msra.mxu1 %v13326_v52  ;;  %v4143_v11 = vrot.slane %v4134_v46, %v13376_v51 }
 0x631   :  { %5305 = vmatprep.subr.bf16.mxu0 %v13327_v10  ;;  %5346 = vmatprep.subr.bf16.mxu1 %v13328_v50 }
 0x634   :  { %5306 = vmatpush1.bf16.msra.mxu0 %v13329_v41  ;;  %5347 = vmatpush1.bf16.msra.mxu1 %v13330_v23 }
 0x635   :  { %5307 = vmatprep.subr.bf16.mxu0 %v13331_v42  ;;  %5348 = vmatprep.subr.bf16.mxu1 %v13332_v61 }
 0x638   :  { %5308 = vmatpush1.bf16.msra.mxu0 %v13333_v59  ;;  %5349 = vmatpush1.bf16.msra.mxu1 %v13334_v56 }
 0x639   :  { %5309 = vmatprep.subr.bf16.mxu0 %v13335_v54  ;;  %5350 = vmatprep.subr.bf16.mxu1 %v13336_v9 }
 0x63c   :  { %5310 = vmatpush1.bf16.msra.mxu0 %v13337_v7  ;;  %5351 = vmatpush1.bf16.msra.mxu1 %v13338_v8  ;;  %v4151_v8 = vrot.slane %v4134_v46, %v13113_v12 }
 0x63d   :  { %5311 = vmatprep.subr.bf16.mxu0 %v13339_v57  ;;  %5352 = vmatprep.subr.bf16.mxu1 %v13340_v44  ;;  %v4147_v44 = vrot.slane %v4134_v46, %v13114_v14 }
 0x640   :  { %5312 = vmatpush1.bf16.msra.mxu0 %v13341_v60  ;;  %5353 = vmatpush1.bf16.msra.mxu1 %v13342_v5 }
 0x641   :  { %5313 = vmatprep.subr.bf16.mxu0 %v13343_v6  ;;  %5354 = vmatprep.subr.bf16.mxu1 %v13344_v62 }
 0x644   :  { %5314 = vmatpush1.bf16.msra.mxu0 %v13345_v63  ;;  %5355 = vmatpush1.bf16.msra.mxu1 %v13346_v17 }
 0x645   :  { %5315 = vmatprep.subr.bf16.mxu0 %v13347_v19  ;;  %5356 = vmatprep.subr.bf16.mxu1 %v13348_v20 }
 0x648   :  { %5316 = vmatpush1.bf16.msra.mxu0 %v13349_v21  ;;  %5357 = vmatpush1.bf16.msra.mxu1 %v13350_v18 }
 0x649   :  { %5317 = vmatprep.subr.bf16.mxu0 %v13351_v39  ;;  %5358 = vmatprep.subr.bf16.mxu1 %v13352_v26 }
 0x64c   :  { %5318 = vmatpush1.bf16.msra.mxu0 %v13353_v24  ;;  %5359 = vmatpush1.bf16.msra.mxu1 %v13354_v29  ;;  %v13377_v29 = vld [vmem:[#allocation50_spill] sm:$0xff] }
 0x64d   :  { %5319 = vmatprep.subr.bf16.mxu0 %v13355_v25  ;;  %5360 = vmatprep.subr.bf16.mxu1 %v13356_v35  ;;  %v339_v25 = vadd.f32 %v13377_v29, %v10535_v13  ;;  %v13378_v35 = vld [vmem:[#allocation51_spill] sm:$0xff]  ;;  %v11962_v29 = vld [vmem:[#allocation5 + $0x48] ss:$16 sps:$4 sm:$0xff]  }
 0x650   :  { %5320 = vmatpush1.bf16.msra.mxu0 %v13357_v22  ;;  %5361 = vmatpush1.bf16.msra.mxu1 %v13358_v36  ;;  %v420_v22 = vadd.f32 %v13378_v35, %v10538_v3  ;;  %v13379_v36 = vld [vmem:[#allocation66_spill] sm:$0xff] }
 0x651   :  { %5321 = vmatprep.subr.bf16.mxu0 %v13359_v2  ;;  %5362 = vmatprep.subr.bf16.mxu1 %v13360_v0  ;;  %v13380_v2 = vld [vmem:[#allocation52_spill] sm:$0xff] }
 0x652   :  { %v341_v0 = vadd.f32 %v13380_v2, %v13379_v36  ;;  %v11968_v35 = vld [vmem:[#allocation5 + $0x6c] ss:$16 sps:$4 sm:$0xff]   ;;  %v11974_v2 = vld [vmem:[#allocation5 + $0x68] ss:$16 sps:$4 sm:$0xff]  }
 0x654   :  { %5322 = vmatpush1.bf16.msra.mxu0 %v13361_v55  ;;  %5363 = vmatpush1.bf16.msra.mxu1 %v13362_v33  ;;  %v13381_v55 = vld [vmem:[#allocation53_spill] sm:$0xff] }
 0x655   :  { %5323 = vmatprep.subr.bf16.mxu0 %v13363_v28  ;;  %5364 = vmatprep.subr.bf16.mxu1 %v13364_v30  ;;  %v422_v33 = vadd.f32 %v13381_v55, %v10544_v1  ;;  %v11980_v55 = vld [vmem:[#allocation5 + $0x8c] ss:$16 sps:$4 sm:$0xff]  }
 0x658   :  { %5324 = vmatpush1.bf16.msra.mxu0 %v13365_v32  ;;  %5365 = vmatpush1.bf16.msra.mxu1 %v13366_v27 }
 0x659   :  { %5325 = vmatprep.subr.bf16.mxu0 %v13367_v38  ;;  %5366 = vmatprep.subr.bf16.mxu1 %v13368_v47 }
 0x65c   :  { %5326 = vmatpush1.bf16.msra.mxu0 %v13369_v31  ;;  %5367 = vmatpush1.bf16.msra.mxu1 %v13370_v16 }
 0x65d   :  { %5327 = vmatprep.subr.bf16.mxu0 %v13371_v37  ;;  %5368 = vmatprep.subr.bf16.mxu1 %v13372_v43 }
 0x660   :  { %5328 = vmatpush1.bf16.msra.mxu0 %v13373_v45  ;;  %5369 = vmatpush1.bf16.msra.mxu1 %v13374_v48 }
 0x661   :  { %5600 = vmatprep.subr.bf16.mxu0 %v11900_v49  ;;  %5641 = vmatprep.subr.bf16.mxu1 %v11902_v58 }
 0x6d6   :  { %v4510_v52 = vpop.f32.mrb[56].mxu0  ;;  %v4551_v10 = vpop.f32.mrb[56].mxu1 }
 0x6d7   :  { %v4511_v50 = vadd.f32 %v4510_v52, %v4139_v53  ;;  %v4512_v41 = vpop.f32.mrb[57].mxu0  ;;  %v4553_v23 = vpop.f32.mrb[57].mxu1  ;;  %v4552_v5 = vadd.f32 %v4551_v10, %v4147_v44 }
 0x6d8   :  { %v4513_v42 = vadd.f32 %v4512_v41, %v4143_v11  ;;  %v4514_v61 = vpop.f32.mrb[58].mxu0  ;;  %v4555_v59 = vpop.f32.mrb[58].mxu1  ;;  %v4554_v57 = vadd.f32 %v4553_v23, %v4151_v8 }
 0x6d9   :  { %v8412_v56 = vmul.f32 -1.442695, %v4511_v50  ;;  %v4515_v54 = vpop.f32.mrb[59].mxu0  ;;  %v4556_v9 = vpop.f32.mrb[59].mxu1 }
 0x6da   :  { %v8413_v7 = vmul.f32 -1.442695, %v4513_v42  ;;  %v8414_v60 = vmul.f32 -1.442695, %v4554_v57 }
 0x6db   :  { %9753 = vpow2.f32 %v8412_v56 }
 0x6dc   :  { %9755 = vpow2.f32 %v8413_v7 }
 0x6dd   :  { %9757 = vpow2.f32 %v8414_v60 }
 0x6de   :  { %9759 = vtanh.f32 %v4552_v5 }
 0x6e5   :  { %v9754_v6 = vpop.eup %9753 }
 0x6e6   :  { %v9756_v62 = vpop.eup %9755  ;;  %v4561_v63 = vadd.f32 1.0, %v9754_v6 }
 0x6e7   :  { %v4567_v17 = vadd.f32 1.0, %v9756_v62  ;;  %v9758_v19 = vpop.eup %9757 }
 0x6e8   :  { %9761 = vrcp.f32 %v4561_v63  ;;  %v9760_v20 = vpop.eup %9759  ;;  %v4574_v26 = vadd.f32 1.0, %v9758_v19  ;;  %v11932_v63 = vld [vmem:[#allocation5] ss:$16 sps:$4 sm:$0xff]  }
 0x6e9   :  { %9763 = vrcp.f32 %v4567_v17  ;;  %v11934_v17 = vld [vmem:[#allocation5 + $0x8] ss:$16 sps:$4 sm:$0xff]  }
 0x6ea   :  { %9765 = vrcp.f32 %v4574_v26  ;;  %v11954_v26 = vld [vmem:[#allocation5 + $0x4c] ss:$16 sps:$4 sm:$0xff]  }
 0x6f2   :  { %v9762_v21 = vpop.eup %9761 }
 0x6f3   :  { %v9764_v18 = vpop.eup %9763  ;;  %v4578_v39 = vmul.f32 %v9762_v21, %v9760_v20  ;;  %v11938_v20 = vld [vmem:[#allocation5 + $0x24] ss:$16 sps:$4 sm:$0xff]   ;;  %v11940_v21 = vld [vmem:[#allocation5 + $0x2c] ss:$16 sps:$4 sm:$0xff]  }
 0x6f4   :  { %v4577_v24 = vmul.f32 %v9764_v18, %v11794_v40  ;;  %v9766_v11 = vpop.eup %9765  ;;  %v11948_v18 = vld [vmem:[#allocation5 + $0x28] ss:$16 sps:$4 sm:$0xff]  }
 0x6f6   :  { %v11922_v28 = vadd.f32 %v4578_v39, %v4577_v24  ;;  %v4813_v30 = vpop.f32.mrb[60].mxu0  ;;  %v4854_v32 = vpop.f32.mrb[60].mxu1  ;;  %v11952_v39 = vld [vmem:[#allocation5 + $0x44] ss:$16 sps:$4 sm:$0xff]   ;;  %v11960_v24 = vld [vmem:[#allocation5 + $0x40] ss:$16 sps:$4 sm:$0xff]  }
 0x6f7   :  { %v4861_v27 = vadd.f32 %v4813_v30, %v339_v25  ;;  %v4863_v38 = vadd.f32 %v4854_v32, %v420_v22  ;;  %v4815_v40 = vpop.f32.mrb[61].mxu0  ;;  %v4856_v47 = vpop.f32.mrb[61].mxu1  ;;  %v11966_v25 = vld [vmem:[#allocation5 + $0x64] ss:$16 sps:$4 sm:$0xff]   ;;  %v11972_v22 = vld [vmem:[#allocation5 + $0x60] ss:$16 sps:$4 sm:$0xff]  }
 0x6f8   :  { %v4862_v31 = vadd.f32 %v4815_v40, %v341_v0  ;;  %v4864_v16 = vadd.f32 %v4856_v47, %v422_v33  ;;  %v4817_v37 = vpop.f32.mrb[62].mxu0  ;;  %v4858_v43 = vpop.f32.mrb[62].mxu1  ;;  %9767 = vtanh.f32 %v11922_v28  ;;  %v11978_v0 = vld [vmem:[#allocation5 + $0x84] ss:$16 sps:$4 sm:$0xff]   ;;  %v11984_v33 = vld [vmem:[#allocation5 + $0x80] ss:$16 sps:$4 sm:$0xff]  }
 0x6f9   :  { %v8447_v45 = vmul.f32 -1.442695, %v4861_v27  ;;  %v4818_v48 = vpop.f32.mrb[63].mxu0  ;;  %v4859_v46 = vpop.f32.mrb[63].mxu1  ;;  %v11986_v30 = vld [vmem:[#allocation5 + $0x88] ss:$16 sps:$4 sm:$0xff]  }
 0x6fa   :  { %v8448_v53 = vmul.f32 -1.442695, %v4862_v31  ;;  %v8449_v10 = vmul.f32 -1.442695, %v4864_v16  ;;  %v11990_v32 = vld [vmem:[#allocation5 + $0xa4] ss:$16 sps:$4 sm:$0xff]  }
 0x6fb   :  { %9769 = vpow2.f32 %v8447_v45  ;;  %v11992_v27 = vld [vmem:[#allocation5 + $0xac] ss:$16 sps:$4 sm:$0xff]   ;;  %v11998_v40 = vld [vmem:[#allocation5 + $0xa8] ss:$16 sps:$4 sm:$0xff]   ;;  %v12002_v47 = vld [vmem:[#allocation5 + $0xc4] ss:$16 sps:$4 sm:$0xff]  }
 0x6fc   :  { %9771 = vpow2.f32 %v8448_v53  ;;  %v12004_v31 = vld [vmem:[#allocation5 + $0xcc] ss:$16 sps:$4 sm:$0xff]   ;;  %v12008_v16 = vld [vmem:[#allocation5 + $0xc0] ss:$16 sps:$4 sm:$0xff]   ;;  %v12010_v37 = vld [vmem:[#allocation5 + $0xc8] ss:$16 sps:$4 sm:$0xff]  }
 0x6fd   :  { %9773 = vpow2.f32 %v8449_v10  ;;  %v12014_v43 = vld [vmem:[#allocation5 + $0xe4] ss:$16 sps:$4 sm:$0xff]   ;;  %v12016_v45 = vld [vmem:[#allocation5 + $0xec] ss:$16 sps:$4 sm:$0xff]   ;;  %v12020_v48 = vld [vmem:[#allocation5 + $0xe0] ss:$16 sps:$4 sm:$0xff]  }
 0x6fe   :  { %9775 = vtanh.f32 %v4863_v38  ;;  %v11996_v38 = vld [vmem:[#allocation5 + $0xa0] ss:$16 sps:$4 sm:$0xff]   ;;  %v12022_v46 = vld [vmem:[#allocation5 + $0xe8] ss:$16 sps:$4 sm:$0xff]   ;;  %v12033_v53 = vld [vmem:[%s12798_s4 + $0x4] ss:$16 sps:$4 sm:$0xff]  }
 0x6ff   :  { %v12048_v10 = vld [vmem:[%s12798_s4 + $0x8] ss:$16 sps:$4 sm:$0xff]  }
 0x702   :  { %v9768_v52 = vpop.eup %9767 }
 0x703   :  { %v4581_v50 = vmul.f32 %v9768_v52, %v9766_v11  ;;  %v12038_v11 = vld [vmem:[%s12798_s4 + $0xc] ss:$16 sps:$4 sm:$0xff]   ;;  %v12043_v52 = vld [vmem:[%s12798_s4] ss:$16 sps:$4 sm:$0xff]  }
 0x705   :  { %v9770_v41 = vpop.eup %9769  ;;  %4582 = vst [vmem:[%s12800_s6 + $0x20] sm:$0xff] %v4581_v50  ;;  %v4890_v23 = vpack.c.bf16 %v4581_v50, %v4581_v50  ;;  %v12057_v50 = vld [vmem:[%s12798_s4 + $0x24] ss:$16 sps:$4 sm:$0xff]  }
 0x706   :  { %v9772_v42 = vpop.eup %9771  ;;  %v4868_v61 = vadd.f32 1.0, %v9770_v41  ;;  %13382 = vst [vmem:[#allocation92_spill] sm:$0xff] %v12057_v50  ;;  %v12062_v41 = vld [vmem:[%s12798_s4 + $0x2c] ss:$16 sps:$4 sm:$0xff]  }
 0x707   :  { %v4874_v59 = vadd.f32 1.0, %v9772_v42  ;;  %5329 = vmatprep.mubr.bf16.mxu0 %v4890_v23  ;;  %5370 = vmatprep.mubr.bf16.mxu1 %v4890_v23  ;;  %v9774_v56 = vpop.eup %9773  ;;  %13383 = vst [vmem:[#allocation93_spill] sm:$0xff] %v12062_v41  ;;  %v12067_v23 = vld [vmem:[%s12798_s4 + $0x20] ss:$16 sps:$4 sm:$0xff]   ;;  %v12072_v42 = vld [vmem:[%s12798_s4 + $0x28] ss:$16 sps:$4 sm:$0xff]  }
 0x708   :  { %9777 = vrcp.f32 %v4868_v61  ;;  %v9776_v54 = vpop.eup %9775  ;;  %v4881_v57 = vadd.f32 1.0, %v9774_v56  ;;  %13384 = vst [vmem:[#allocation94_spill] sm:$0xff] %v12067_v23  ;;  %13385 = vst [vmem:[#allocation95_spill] sm:$0xff] %v12072_v42  ;;  %v12081_v61 = vld [vmem:[%s12798_s4 + $0x44] ss:$16 sps:$4 sm:$0xff]  }
 0x709   :  { %9779 = vrcp.f32 %v4874_v59  ;;  %13386 = vst [vmem:[#allocation42_spill] sm:$0xff] %v12081_v61  ;;  %v12086_v59 = vld [vmem:[%s12798_s4 + $0x4c] ss:$16 sps:$4 sm:$0xff]   ;;  %v12091_v56 = vld [vmem:[%s12798_s4 + $0x40] ss:$16 sps:$4 sm:$0xff]  }
 0x70a   :  { %9781 = vrcp.f32 %v4881_v57  ;;  %13387 = vst [vmem:[#allocation43_spill] sm:$0xff] %v12086_v59  ;;  %13388 = vst [vmem:[#allocation44_spill] sm:$0xff] %v12091_v56  ;;  %v12120_v57 = vld [vmem:[%s12798_s4 + $0x68] ss:$16 sps:$4 sm:$0xff]  }
 0x70b   :  { %13393 = vst [vmem:[#allocation49_spill] sm:$0xff] %v12120_v57 }
 0x712   :  { %v9778_v9 = vpop.eup %9777 }
 0x713   :  { %v9780_v7 = vpop.eup %9779  ;;  %v4885_v8 = vmul.f32 %v9778_v9, %v9776_v54  ;;  %v12096_v54 = vld [vmem:[%s12798_s4 + $0x48] ss:$16 sps:$4 sm:$0xff]   ;;  %v12105_v9 = vld [vmem:[%s12798_s4 + $0x64] ss:$16 sps:$4 sm:$0xff]  }
 0x714   :  { %v4884_v44 = vmul.f32 %v9780_v7, %v11801_v34  ;;  %v9782_v5 = vpop.eup %9781  ;;  %v11946_v34 = vld [vmem:[#allocation5 + $0x20] ss:$16 sps:$4 sm:$0xff]   ;;  %13389 = vst [vmem:[#allocation45_spill] sm:$0xff] %v12096_v54  ;;  %13390 = vst [vmem:[#allocation46_spill] sm:$0xff] %v12105_v9  ;;  %v12110_v7 = vld [vmem:[%s12798_s4 + $0x6c] ss:$16 sps:$4 sm:$0xff]  }
 0x715   :  { %13391 = vst [vmem:[#allocation47_spill] sm:$0xff] %v12110_v7 }
 0x716   :  { %v11929_v60 = vadd.f32 %v4885_v8, %v4884_v44  ;;  %v12115_v8 = vld [vmem:[%s12798_s4 + $0x60] ss:$16 sps:$4 sm:$0xff]   ;;  %v12129_v44 = vld [vmem:[%s12798_s4 + $0x84] ss:$16 sps:$4 sm:$0xff]  }
 0x717   :  { %13392 = vst [vmem:[#allocation48_spill] sm:$0xff] %v12115_v8  ;;  %13394 = vst [vmem:[#allocation38_spill] sm:$0xff] %v12129_v44 }
 0x718   :  { %9783 = vtanh.f32 %v11929_v60 }
 0x722   :  { %v9784_v6 = vpop.eup %9783 }
 0x723   :  { %v4888_v62 = vmul.f32 %v9784_v6, %v9782_v5  ;;  %v12134_v5 = vld [vmem:[%s12798_s4 + $0x8c] ss:$16 sps:$4 sm:$0xff]   ;;  %v12139_v6 = vld [vmem:[%s12798_s4 + $0x80] ss:$16 sps:$4 sm:$0xff]  }
 0x724   :  { %13395 = vst [vmem:[#allocation39_spill] sm:$0xff] %v12134_v5  ;;  %13396 = vst [vmem:[#allocation40_spill] sm:$0xff] %v12139_v6 }
 0x725   :  { %v11936_v19 = vpack.c.bf16 %v4888_v62, %v4888_v62  ;;  %v12144_v62 = vld [vmem:[%s12798_s4 + $0x88] ss:$16 sps:$4 sm:$0xff]  }
 0x726   :  { %13397 = vst [vmem:[#allocation41_spill] sm:$0xff] %v12144_v62 }
 0x727   :  { %5330 = vmatmul.mubr.bf16.vlgmr.msra.gmra.mrb[64].mxu0 %v11936_v19  ;;  %5371 = vmatmul.mubr.bf16.vlgmr.msra.gmra.mrb[64].mxu1 %v11936_v19 }
 0x728   :  { %5601 = vmatpush1.bf16.msra.mxu0 %v11932_v63  ;;  %5642 = vmatpush1.bf16.msra.mxu1 %v11934_v17 }
 0x729   :  { %5602 = vmatprep.subr.bf16.mxu0 %v11938_v20  ;;  %5643 = vmatprep.subr.bf16.mxu1 %v11940_v21 }
 0x72a   :  { %5632 = vmatprep.mubr.bf16.mxu0 %v13085_v4  ;;  %5673 = vmatprep.mubr.bf16.mxu1 %v13085_v4 }
 0x72c   :  { %5603 = vmatpush1.bf16.msra.mxu0 %v11946_v34  ;;  %5644 = vmatpush1.bf16.msra.mxu1 %v11948_v18 }
 0x72d   :  { %5604 = vmatprep.subr.bf16.mxu0 %v11952_v39  ;;  %5645 = vmatprep.subr.bf16.mxu1 %v11954_v26 }
 0x730   :  { %5605 = vmatpush1.bf16.msra.mxu0 %v11960_v24  ;;  %5646 = vmatpush1.bf16.msra.mxu1 %v11962_v29 }
 0x731   :  { %5606 = vmatprep.subr.bf16.mxu0 %v11966_v25  ;;  %5647 = vmatprep.subr.bf16.mxu1 %v11968_v35 }
 0x734   :  { %5607 = vmatpush1.bf16.msra.mxu0 %v11972_v22  ;;  %5648 = vmatpush1.bf16.msra.mxu1 %v11974_v2 }
 0x735   :  { %5608 = vmatprep.subr.bf16.mxu0 %v11978_v0  ;;  %5649 = vmatprep.subr.bf16.mxu1 %v11980_v55 }
 0x738   :  { %5609 = vmatpush1.bf16.msra.mxu0 %v11984_v33  ;;  %5650 = vmatpush1.bf16.msra.mxu1 %v11986_v30 }
 0x739   :  { %5610 = vmatprep.subr.bf16.mxu0 %v11990_v32  ;;  %5651 = vmatprep.subr.bf16.mxu1 %v11992_v27 }
 0x73c   :  { %5611 = vmatpush1.bf16.msra.mxu0 %v11996_v38  ;;  %5652 = vmatpush1.bf16.msra.mxu1 %v11998_v40 }
 0x73d   :  { %5612 = vmatprep.subr.bf16.mxu0 %v12002_v47  ;;  %5653 = vmatprep.subr.bf16.mxu1 %v12004_v31 }
 0x740   :  { %5613 = vmatpush1.bf16.msra.mxu0 %v12008_v16  ;;  %5654 = vmatpush1.bf16.msra.mxu1 %v12010_v37 }
 0x741   :  { %5614 = vmatprep.subr.bf16.mxu0 %v12014_v43  ;;  %5655 = vmatprep.subr.bf16.mxu1 %v12016_v45 }
 0x744   :  { %5615 = vmatpush1.bf16.msra.mxu0 %v12020_v48  ;;  %5656 = vmatpush1.bf16.msra.mxu1 %v12022_v46 }
 0x745   :  { %6118 = vmatprep.subr.bf16.mxu0 %v12033_v53  ;;  %6159 = vmatprep.subr.bf16.mxu1 %v12038_v11 }
 0x747   :  { %5633 = vmatmul.mubr.bf16.vlgmr.msra.gmra.mrb[68].mxu0 %v11936_v19  ;;  %5674 = vmatmul.mubr.bf16.vlgmr.msra.gmra.mrb[68].mxu1 %v11936_v19  ;;  %v12153_v19 = vld [vmem:[%s12798_s4 + $0xa4] ss:$16 sps:$4 sm:$0xff]  }
 0x748   :  { %6119 = vmatpush1.bf16.msra.mxu0 %v12043_v52  ;;  %6160 = vmatpush1.bf16.msra.mxu1 %v12048_v10  ;;  %13398 = vst [vmem:[#allocation9_spill] sm:$0xff] %v12153_v19 }
 0x749   :  { %6120 = vmatprep.subr.bf16.mxu0 %v12057_v50  ;;  %6161 = vmatprep.subr.bf16.mxu1 %v12062_v41 }
 0x74c   :  { %6121 = vmatpush1.bf16.msra.mxu0 %v12067_v23  ;;  %6162 = vmatpush1.bf16.msra.mxu1 %v12072_v42 }
 0x74d   :  { %6122 = vmatprep.subr.bf16.mxu0 %v12081_v61  ;;  %6163 = vmatprep.subr.bf16.mxu1 %v12086_v59 }
 0x750   :  { %6123 = vmatpush1.bf16.msra.mxu0 %v12091_v56  ;;  %6164 = vmatpush1.bf16.msra.mxu1 %v12096_v54 }
 0x751   :  { %6124 = vmatprep.subr.bf16.mxu0 %v12105_v9  ;;  %6165 = vmatprep.subr.bf16.mxu1 %v12110_v7 }
 0x754   :  { %6125 = vmatpush1.bf16.msra.mxu0 %v12115_v8  ;;  %6166 = vmatpush1.bf16.msra.mxu1 %v12120_v57  ;;  %v12158_v57 = vld [vmem:[%s12798_s4 + $0xac] ss:$16 sps:$4 sm:$0xff]  }
 0x755   :  { %6126 = vmatprep.subr.bf16.mxu0 %v12129_v44  ;;  %6167 = vmatprep.subr.bf16.mxu1 %v12134_v5  ;;  %13399 = vst [vmem:[#allocation10_spill] sm:$0xff] %v12158_v57  ;;  %v12163_v44 = vld [vmem:[%s12798_s4 + $0xa0] ss:$16 sps:$4 sm:$0xff]   ;;  %v12182_v5 = vld [vmem:[%s12798_s4 + $0xcc] ss:$16 sps:$4 sm:$0xff]  }
 0x756   :  { %13400 = vst [vmem:[#allocation11_spill] sm:$0xff] %v12163_v44  ;;  %13403 = vst [vmem:[#allocation14_spill] sm:$0xff] %v12182_v5 }
 0x758   :  { %6127 = vmatpush1.bf16.msra.mxu0 %v12139_v6  ;;  %6168 = vmatpush1.bf16.msra.mxu1 %v12144_v62  ;;  %v12168_v6 = vld [vmem:[%s12798_s4 + $0xa8] ss:$16 sps:$4 sm:$0xff]   ;;  %v12177_v62 = vld [vmem:[%s12798_s4 + $0xc4] ss:$16 sps:$4 sm:$0xff]  }
 0x759   :  { %13401 = vst [vmem:[#allocation12_spill] sm:$0xff] %v12168_v6  ;;  %6128 = vmatprep.subr.bf16.mxu0 %v12153_v19  ;;  %6169 = vmatprep.subr.bf16.mxu1 %v12158_v57  ;;  %13402 = vst [vmem:[#allocation13_spill] sm:$0xff] %v12177_v62  ;;  %v12187_v19 = vld [vmem:[%s12798_s4 + $0xc0] ss:$16 sps:$4 sm:$0xff]   ;;  %v12206_v57 = vld [vmem:[%s12798_s4 + $0xec] ss:$16 sps:$4 sm:$0xff]  }
 0x75a   :  { %13404 = vst [vmem:[#allocation15_spill] sm:$0xff] %v12187_v19  ;;  %13407 = vst [vmem:[#allocation18_spill] sm:$0xff] %v12206_v57 }
 0x75c   :  { %6129 = vmatpush1.bf16.msra.mxu0 %v12163_v44  ;;  %6170 = vmatpush1.bf16.msra.mxu1 %v12168_v6  ;;  %v12192_v44 = vld [vmem:[%s12798_s4 + $0xc8] ss:$16 sps:$4 sm:$0xff]   ;;  %v12201_v6 = vld [vmem:[%s12798_s4 + $0xe4] ss:$16 sps:$4 sm:$0xff]  }
 0x75d   :  { %13405 = vst [vmem:[#allocation16_spill] sm:$0xff] %v12192_v44  ;;  %6130 = vmatprep.subr.bf16.mxu0 %v12177_v62  ;;  %6171 = vmatprep.subr.bf16.mxu1 %v12182_v5  ;;  %13406 = vst [vmem:[#allocation17_spill] sm:$0xff] %v12201_v6  ;;  %v12211_v62 = vld [vmem:[%s12798_s4 + $0xe0] ss:$16 sps:$4 sm:$0xff]   ;;  %v12230_v5 = vld [vmem:[%s12798_s4 + $0x10c] ss:$16 sps:$4 sm:$0xff]  }
 0x75e   :  { %13408 = vst [vmem:[#allocation19_spill] sm:$0xff] %v12211_v62  ;;  %13411 = vst [vmem:[#allocation23_spill] sm:$0xff] %v12230_v5 }
 0x760   :  { %6131 = vmatpush1.bf16.msra.mxu0 %v12187_v19  ;;  %6172 = vmatpush1.bf16.msra.mxu1 %v12192_v44  ;;  %v12216_v19 = vld [vmem:[%s12798_s4 + $0xe8] ss:$16 sps:$4 sm:$0xff]   ;;  %v12225_v44 = vld [vmem:[%s12798_s4 + $0x104] ss:$16 sps:$4 sm:$0xff]  }
 0x761   :  { %13409 = vst [vmem:[#allocation20_spill] sm:$0xff] %v12216_v19  ;;  %6132 = vmatprep.subr.bf16.mxu0 %v12201_v6  ;;  %6173 = vmatprep.subr.bf16.mxu1 %v12206_v57  ;;  %13410 = vst [vmem:[#allocation21_spill] sm:$0xff] %v12225_v44  ;;  %v12235_v6 = vld [vmem:[%s12798_s4 + $0x100] ss:$16 sps:$4 sm:$0xff]   ;;  %v12254_v57 = vld [vmem:[%s12798_s4 + $0x12c] ss:$16 sps:$4 sm:$0xff]  }
 0x762   :  { %13412 = vst [vmem:[#allocation25_spill] sm:$0xff] %v12235_v6  ;;  %13415 = vst [vmem:[#allocation26_spill] sm:$0xff] %v12254_v57 }
 0x764   :  { %6133 = vmatpush1.bf16.msra.mxu0 %v12211_v62  ;;  %6174 = vmatpush1.bf16.msra.mxu1 %v12216_v19  ;;  %v12240_v62 = vld [vmem:[%s12798_s4 + $0x108] ss:$16 sps:$4 sm:$0xff]   ;;  %v12249_v19 = vld [vmem:[%s12798_s4 + $0x124] ss:$16 sps:$4 sm:$0xff]  }
 0x765   :  { %13413 = vst [vmem:[#allocation22_spill] sm:$0xff] %v12240_v62  ;;  %6134 = vmatprep.subr.bf16.mxu0 %v12225_v44  ;;  %6175 = vmatprep.subr.bf16.mxu1 %v12230_v5  ;;  %13414 = vst [vmem:[#allocation24_spill] sm:$0xff] %v12249_v19  ;;  %v12259_v44 = vld [vmem:[%s12798_s4 + $0x120] ss:$16 sps:$4 sm:$0xff]   ;;  %v12278_v5 = vld [vmem:[%s12798_s4 + $0x14c] ss:$16 sps:$4 sm:$0xff]  }
 0x766   :  { %13416 = vst [vmem:[#allocation28_spill] sm:$0xff] %v12259_v44  ;;  %13419 = vst [vmem:[#allocation30_spill] sm:$0xff] %v12278_v5 }
 0x768   :  { %6135 = vmatpush1.bf16.msra.mxu0 %v12235_v6  ;;  %6176 = vmatpush1.bf16.msra.mxu1 %v12240_v62  ;;  %v12264_v6 = vld [vmem:[%s12798_s4 + $0x128] ss:$16 sps:$4 sm:$0xff]   ;;  %v12273_v62 = vld [vmem:[%s12798_s4 + $0x144] ss:$16 sps:$4 sm:$0xff]  }
 0x769   :  { %13417 = vst [vmem:[#allocation27_spill] sm:$0xff] %v12264_v6  ;;  %6136 = vmatprep.subr.bf16.mxu0 %v12249_v19  ;;  %6177 = vmatprep.subr.bf16.mxu1 %v12254_v57  ;;  %13418 = vst [vmem:[#allocation29_spill] sm:$0xff] %v12273_v62  ;;  %v12283_v19 = vld [vmem:[%s12798_s4 + $0x140] ss:$16 sps:$4 sm:$0xff]   ;;  %v12302_v57 = vld [vmem:[%s12798_s4 + $0x16c] ss:$16 sps:$4 sm:$0xff]  }
 0x76a   :  { %13420 = vst [vmem:[#allocation31_spill] sm:$0xff] %v12283_v19  ;;  %13423 = vst [vmem:[#allocation65_spill] sm:$0xff] %v12302_v57 }
 0x76c   :  { %6137 = vmatpush1.bf16.msra.mxu0 %v12259_v44  ;;  %6178 = vmatpush1.bf16.msra.mxu1 %v12264_v6  ;;  %v12288_v44 = vld [vmem:[%s12798_s4 + $0x148] ss:$16 sps:$4 sm:$0xff]   ;;  %v12297_v6 = vld [vmem:[%s12798_s4 + $0x164] ss:$16 sps:$4 sm:$0xff]  }
 0x76d   :  { %13421 = vst [vmem:[#allocation32_spill] sm:$0xff] %v12288_v44  ;;  %6138 = vmatprep.subr.bf16.mxu0 %v12273_v62  ;;  %6179 = vmatprep.subr.bf16.mxu1 %v12278_v5  ;;  %13422 = vst [vmem:[#allocation33_spill] sm:$0xff] %v12297_v6  ;;  %v12307_v62 = vld [vmem:[%s12798_s4 + $0x160] ss:$16 sps:$4 sm:$0xff]   ;;  %v12326_v5 = vld [vmem:[%s12798_s4 + $0x18c] ss:$16 sps:$4 sm:$0xff]  }
 0x76e   :  { %13424 = vst [vmem:[#allocation63_spill] sm:$0xff] %v12307_v62  ;;  %13427 = vst [vmem:[#allocation36_spill] sm:$0xff] %v12326_v5 }
 0x770   :  { %6139 = vmatpush1.bf16.msra.mxu0 %v12283_v19  ;;  %6180 = vmatpush1.bf16.msra.mxu1 %v12288_v44  ;;  %v12312_v19 = vld [vmem:[%s12798_s4 + $0x168] ss:$16 sps:$4 sm:$0xff]   ;;  %v12321_v44 = vld [vmem:[%s12798_s4 + $0x184] ss:$16 sps:$4 sm:$0xff]  }
 0x771   :  { %13425 = vst [vmem:[#allocation34_spill] sm:$0xff] %v12312_v19  ;;  %6140 = vmatprep.subr.bf16.mxu0 %v12297_v6  ;;  %6181 = vmatprep.subr.bf16.mxu1 %v12302_v57  ;;  %13426 = vst [vmem:[#allocation35_spill] sm:$0xff] %v12321_v44  ;;  %v12331_v6 = vld [vmem:[%s12798_s4 + $0x180] ss:$16 sps:$4 sm:$0xff]   ;;  %v12348_v57 = vld [vmem:[%s12798_s4 + $0x1ac] ss:$16 sps:$4 sm:$0xff]  }
 0x772   :  { %13428 = vst [vmem:[#allocation37_spill] sm:$0xff] %v12331_v6  ;;  %13431 = vst [vmem:[#allocation69_spill] sm:$0xff] %v12348_v57 }
 0x774   :  { %6141 = vmatpush1.bf16.msra.mxu0 %v12307_v62  ;;  %6182 = vmatpush1.bf16.msra.mxu1 %v12312_v19  ;;  %v12336_v62 = vld [vmem:[%s12798_s4 + $0x188] ss:$16 sps:$4 sm:$0xff]   ;;  %v12343_v19 = vld [vmem:[%s12798_s4 + $0x1a4] ss:$16 sps:$4 sm:$0xff]  }
 0x775   :  { %13429 = vst [vmem:[#allocation67_spill] sm:$0xff] %v12336_v62  ;;  %6142 = vmatprep.subr.bf16.mxu0 %v12321_v44  ;;  %6183 = vmatprep.subr.bf16.mxu1 %v12326_v5  ;;  %13430 = vst [vmem:[#allocation68_spill] sm:$0xff] %v12343_v19  ;;  %v12355_v44 = vld [vmem:[%s12798_s4 + $0x1a0] ss:$16 sps:$4 sm:$0xff]   ;;  %v12360_v5 = vld [vmem:[%s12798_s4 + $0x1a8] ss:$16 sps:$4 sm:$0xff]  }
 0x776   :  { %13432 = vst [vmem:[#allocation70_spill] sm:$0xff] %v12355_v44  ;;  %13433 = vst [vmem:[#allocation71_spill] sm:$0xff] %v12360_v5 }
 0x778   :  { %6143 = vmatpush1.bf16.msra.mxu0 %v12331_v6  ;;  %6184 = vmatpush1.bf16.msra.mxu1 %v12336_v62  ;;  %v12367_v6 = vld [vmem:[%s12798_s4 + $0x1c4] ss:$16 sps:$4 sm:$0xff]   ;;  %v12372_v62 = vld [vmem:[%s12798_s4 + $0x1cc] ss:$16 sps:$4 sm:$0xff]  }
 0x779   :  { %6144 = vmatprep.subr.bf16.mxu0 %v12343_v19  ;;  %6185 = vmatprep.subr.bf16.mxu1 %v12348_v57  ;;  %13434 = vst [vmem:[#allocation72_spill] sm:$0xff] %v12367_v6  ;;  %13435 = vst [vmem:[#allocation73_spill] sm:$0xff] %v12372_v62  ;;  %v12379_v19 = vld [vmem:[%s12798_s4 + $0x1c0] ss:$16 sps:$4 sm:$0xff]   ;;  %v12384_v57 = vld [vmem:[%s12798_s4 + $0x1c8] ss:$16 sps:$4 sm:$0xff]  }
 0x77a   :  { %13436 = vst [vmem:[#allocation74_spill] sm:$0xff] %v12379_v19  ;;  %13437 = vst [vmem:[#allocation75_spill] sm:$0xff] %v12384_v57 }
 0x77c   :  { %6145 = vmatpush1.bf16.msra.mxu0 %v12355_v44  ;;  %6186 = vmatpush1.bf16.msra.mxu1 %v12360_v5  ;;  %v12391_v44 = vld [vmem:[%s12798_s4 + $0x1e4] ss:$16 sps:$4 sm:$0xff]   ;;  %v12396_v5 = vld [vmem:[%s12798_s4 + $0x1ec] ss:$16 sps:$4 sm:$0xff]  }
 0x77d   :  { %6146 = vmatprep.subr.bf16.mxu0 %v12367_v6  ;;  %6187 = vmatprep.subr.bf16.mxu1 %v12372_v62  ;;  %13438 = vst [vmem:[#allocation76_spill] sm:$0xff] %v12391_v44  ;;  %13439 = vst [vmem:[#allocation77_spill] sm:$0xff] %v12396_v5  ;;  %v12403_v6 = vld [vmem:[%s12798_s4 + $0x1e0] ss:$16 sps:$4 sm:$0xff]   ;;  %v12408_v62 = vld [vmem:[%s12798_s4 + $0x1e8] ss:$16 sps:$4 sm:$0xff]  }
 0x77e   :  { %13440 = vst [vmem:[#allocation78_spill] sm:$0xff] %v12403_v6  ;;  %13441 = vst [vmem:[#allocation79_spill] sm:$0xff] %v12408_v62 }
 0x780   :  { %6147 = vmatpush1.bf16.msra.mxu0 %v12379_v19  ;;  %6188 = vmatpush1.bf16.msra.mxu1 %v12384_v57  ;;  %v4955_v57 = vld [vmem:[%s12799_s5] sm:$0xf] }
 0x781   :  { %6148 = vmatprep.subr.bf16.mxu0 %v12391_v44  ;;  %6189 = vmatprep.subr.bf16.mxu1 %v12396_v5  ;;  %v4960_v19 = vrot.slane %v4955_v57, %v13375_v15  ;;  %v4964_v8 = vrot.slane %v4955_v57, %v13376_v51  ;;  %v4972_v42 = vrot.slane %v4955_v57, %v13113_v12 }
 0x782   :  { %v4968_v15 = vrot.slane %v4955_v57, %v13114_v14 }
 0x784   :  { %6149 = vmatpush1.bf16.msra.mxu0 %v12403_v6  ;;  %6190 = vmatpush1.bf16.msra.mxu1 %v12408_v62 }
 0x785   :  { %6421 = vmatprep.subr.bf16.mxu0 %v11900_v49  ;;  %6462 = vmatprep.subr.bf16.mxu1 %v11902_v58 }
 0x7fa   :  { %v5331_v7 = vpop.f32.mrb[64].mxu0  ;;  %v5372_v44 = vpop.f32.mrb[64].mxu1 }
 0x7fb   :  { %v5332_v9 = vadd.f32 %v5331_v7, %v4960_v19  ;;  %v5333_v5 = vpop.f32.mrb[65].mxu0  ;;  %v5374_v54 = vpop.f32.mrb[65].mxu1  ;;  %v5373_v41 = vadd.f32 %v5372_v44, %v4968_v15  ;;  %v13443_v15 = vld [vmem:[#allocation55_spill] sm:$0xff] }
 0x7fc   :  { %v5334_v6 = vadd.f32 %v5333_v5, %v4964_v8  ;;  %v5335_v56 = vpop.f32.mrb[66].mxu0  ;;  %v5376_v62 = vpop.f32.mrb[66].mxu1  ;;  %v5375_v23 = vadd.f32 %v5374_v54, %v4972_v42  ;;  %v13442_v54 = vld [vmem:[#allocation54_spill] sm:$0xff]  ;;  %v426_v57 = vadd.f32 %v13443_v15, %v10538_v3 }
 0x7fd   :  { %v8514_v59 = vmul.f32 -1.442695, %v5332_v9  ;;  %v5336_v49 = vpop.f32.mrb[67].mxu0  ;;  %v5377_v61 = vpop.f32.mrb[67].mxu1 }
 0x7fe   :  { %v8515_v58 = vmul.f32 -1.442695, %v5334_v6  ;;  %v8516_v51 = vmul.f32 -1.442695, %v5375_v23  ;;  %v345_v23 = vadd.f32 %v13442_v54, %v10535_v13 }
 0x7ff   :  { %9785 = vpow2.f32 %v8514_v59 }
 0x800   :  { %9787 = vpow2.f32 %v8515_v58 }
 0x801   :  { %9789 = vpow2.f32 %v8516_v51  ;;  %v13444_v51 = vld [vmem:[#allocation56_spill] sm:$0xff] }
 0x802   :  { %9791 = vtanh.f32 %v5373_v41  ;;  %v13445_v41 = vld [vmem:[#allocation57_spill] sm:$0xff] }
 0x803   :  { %v428_v44 = vadd.f32 %v13445_v41, %v10544_v1 }
 0x809   :  { %v9786_v50 = vpop.eup %9785 }
 0x80a   :  { %v9788_v7 = vpop.eup %9787  ;;  %v5382_v19 = vadd.f32 1.0, %v9786_v50  ;;  %v347_v50 = vadd.f32 %v13444_v51, %v13379_v36 }
 0x80b   :  { %v5388_v56 = vadd.f32 1.0, %v9788_v7  ;;  %v9790_v9 = vpop.eup %9789 }
 0x80c   :  { %9793 = vrcp.f32 %v5382_v19  ;;  %v9792_v61 = vpop.eup %9791  ;;  %v5395_v59 = vadd.f32 1.0, %v9790_v9 }
 0x80d   :  { %9795 = vrcp.f32 %v5388_v56 }
 0x80e   :  { %9797 = vrcp.f32 %v5395_v59 }
 0x816   :  { %v9794_v8 = vpop.eup %9793 }
 0x817   :  { %v9796_v5 = vpop.eup %9795  ;;  %v5399_v6 = vmul.f32 %v9794_v8, %v9792_v61 }
 0x818   :  { %v5398_v42 = vmul.f32 %v9796_v5, %v11922_v28 }
 0x81a   :  { %v12432_v62 = vadd.f32 %v5399_v6, %v5398_v42  ;;  %v5634_v49 = vpop.f32.mrb[68].mxu0  ;;  %v5675_v58 = vpop.f32.mrb[68].mxu1 }
 0x81b   :  { %v5682_v7 = vadd.f32 %v5634_v49, %v345_v23  ;;  %v5684_v19 = vadd.f32 %v5675_v58, %v426_v57  ;;  %v5636_v28 = vpop.f32.mrb[69].mxu0  ;;  %v5677_v56 = vpop.f32.mrb[69].mxu1 }
 0x81c   :  { %v5683_v9 = vadd.f32 %v5636_v28, %v347_v50  ;;  %v5685_v61 = vadd.f32 %v5677_v56, %v428_v44  ;;  %v5638_v8 = vpop.f32.mrb[70].mxu0  ;;  %v5679_v5 = vpop.f32.mrb[70].mxu1  ;;  %9799 = vtanh.f32 %v12432_v62 }
 0x81d   :  { %v8549_v54 = vmul.f32 -1.442695, %v5682_v7  ;;  %v5639_v15 = vpop.f32.mrb[71].mxu0  ;;  %v5680_v51 = vpop.f32.mrb[71].mxu1 }
 0x81e   :  { %v8550_v36 = vmul.f32 -1.442695, %v5683_v9  ;;  %v9798_v6 = vpop.eup %9797  ;;  %v8551_v41 = vmul.f32 -1.442695, %v5685_v61  ;;  %v13481_v51 = vld [vmem:[#allocation27_spill] sm:$0xff] }
 0x81f   :  { %9801 = vpow2.f32 %v8549_v54 }
 0x820   :  { %9803 = vpow2.f32 %v8550_v36 }
 0x821   :  { %9805 = vpow2.f32 %v8551_v41  ;;  %v13484_v41 = vld [vmem:[#allocation31_spill] sm:$0xff] }
 0x822   :  { %9807 = vtanh.f32 %v5684_v19 }
 0x826   :  { %v9800_v42 = vpop.eup %9799 }
 0x827   :  { %v5402_v59 = vmul.f32 %v9800_v42, %v9798_v6  ;;  %v13482_v6 = vld [vmem:[#allocation29_spill] sm:$0xff]  ;;  %v13483_v42 = vld [vmem:[#allocation30_spill] sm:$0xff] }
 0x829   :  { %v9802_v23 = vpop.eup %9801  ;;  %5403 = vst [vmem:[%s12800_s6 + $0x28] sm:$0xff] %v5402_v59  ;;  %v5711_v57 = vpack.c.bf16 %v5402_v59, %v5402_v59  ;;  %v13485_v59 = vld [vmem:[#allocation32_spill] sm:$0xff] }
 0x82a   :  { %v9804_v50 = vpop.eup %9803  ;;  %v5689_v44 = vadd.f32 1.0, %v9802_v23  ;;  %v13486_v23 = vld [vmem:[#allocation33_spill] sm:$0xff] }
 0x82b   :  { %v5695_v49 = vadd.f32 1.0, %v9804_v50  ;;  %6150 = vmatprep.mubr.bf16.mxu0 %v5711_v57  ;;  %6191 = vmatprep.mubr.bf16.mxu1 %v5711_v57  ;;  %v9806_v36 = vpop.eup %9805  ;;  %v13487_v57 = vld [vmem:[#allocation65_spill] sm:$0xff]  ;;  %v13488_v50 = vld [vmem:[#allocation63_spill] sm:$0xff] }
 0x82c   :  { %9809 = vrcp.f32 %v5689_v44  ;;  %v9808_v58 = vpop.eup %9807  ;;  %v5702_v9 = vadd.f32 1.0, %v9806_v36  ;;  %v13489_v44 = vld [vmem:[#allocation34_spill] sm:$0xff]  ;;  %v13491_v36 = vld [vmem:[#allocation36_spill] sm:$0xff] }
 0x82d   :  { %9811 = vrcp.f32 %v5695_v49  ;;  %v13490_v49 = vld [vmem:[#allocation35_spill] sm:$0xff] }
 0x82e   :  { %9813 = vrcp.f32 %v5702_v9  ;;  %v13496_v9 = vld [vmem:[#allocation70_spill] sm:$0xff] }
 0x836   :  { %v9810_v7 = vpop.eup %9809 }
 0x837   :  { %v9812_v28 = vpop.eup %9811  ;;  %v5706_v56 = vmul.f32 %v9810_v7, %v9808_v58  ;;  %v13492_v58 = vld [vmem:[#allocation37_spill] sm:$0xff]  ;;  %v13493_v7 = vld [vmem:[#allocation67_spill] sm:$0xff] }
 0x838   :  { %v5705_v61 = vmul.f32 %v9812_v28, %v11929_v60  ;;  %v9814_v5 = vpop.eup %9813  ;;  %v13446_v60 = vld [vmem:[#allocation92_spill] sm:$0xff] }
 0x839   :  { %v13494_v28 = vld [vmem:[#allocation68_spill] sm:$0xff] }
 0x83a   :  { %v12439_v8 = vadd.f32 %v5706_v56, %v5705_v61  ;;  %v13495_v56 = vld [vmem:[#allocation69_spill] sm:$0xff]  ;;  %v13497_v61 = vld [vmem:[#allocation71_spill] sm:$0xff] }
 0x83c   :  { %9815 = vtanh.f32 %v12439_v8 }
 0x846   :  { %v9816_v19 = vpop.eup %9815 }
 0x847   :  { %v5709_v54 = vmul.f32 %v9816_v19, %v9814_v5  ;;  %v13498_v5 = vld [vmem:[#allocation72_spill] sm:$0xff]  ;;  %v13499_v19 = vld [vmem:[#allocation73_spill] sm:$0xff] }
 0x849   :  { %v5710_v15 = vpack.c.bf16 %v5709_v54, %v5709_v54  ;;  %v13500_v54 = vld [vmem:[#allocation74_spill] sm:$0xff] }
 0x84b   :  { %6151 = vmatmul.mubr.bf16.vlgmr.msra.gmra.mrb[72].mxu0 %v5710_v15  ;;  %6192 = vmatmul.mubr.bf16.vlgmr.msra.gmra.mrb[72].mxu1 %v5710_v15 }
 0x84c   :  { %6422 = vmatpush1.bf16.msra.mxu0 %v11932_v63  ;;  %6463 = vmatpush1.bf16.msra.mxu1 %v11934_v17  ;;  %v13447_v63 = vld [vmem:[#allocation93_spill] sm:$0xff]  ;;  %v13448_v17 = vld [vmem:[#allocation94_spill] sm:$0xff] }
 0x84d   :  { %6423 = vmatprep.subr.bf16.mxu0 %v11938_v20  ;;  %6464 = vmatprep.subr.bf16.mxu1 %v11940_v21  ;;  %v13449_v20 = vld [vmem:[#allocation95_spill] sm:$0xff]  ;;  %v13450_v21 = vld [vmem:[#allocation42_spill] sm:$0xff] }
 0x84e   :  { %6453 = vmatprep.mubr.bf16.mxu0 %v13085_v4  ;;  %6494 = vmatprep.mubr.bf16.mxu1 %v13085_v4 }
 0x850   :  { %6424 = vmatpush1.bf16.msra.mxu0 %v11946_v34  ;;  %6465 = vmatpush1.bf16.msra.mxu1 %v11948_v18  ;;  %v13451_v34 = vld [vmem:[#allocation43_spill] sm:$0xff]  ;;  %v13452_v18 = vld [vmem:[#allocation44_spill] sm:$0xff] }
 0x851   :  { %6425 = vmatprep.subr.bf16.mxu0 %v11952_v39  ;;  %6466 = vmatprep.subr.bf16.mxu1 %v11954_v26  ;;  %v13453_v39 = vld [vmem:[#allocation45_spill] sm:$0xff]  ;;  %v13454_v26 = vld [vmem:[#allocation46_spill] sm:$0xff] }
 0x854   :  { %6426 = vmatpush1.bf16.msra.mxu0 %v11960_v24  ;;  %6467 = vmatpush1.bf16.msra.mxu1 %v11962_v29  ;;  %v13455_v24 = vld [vmem:[#allocation47_spill] sm:$0xff]  ;;  %v13456_v29 = vld [vmem:[#allocation48_spill] sm:$0xff] }
 0x855   :  { %6427 = vmatprep.subr.bf16.mxu0 %v11966_v25  ;;  %6468 = vmatprep.subr.bf16.mxu1 %v11968_v35  ;;  %v13457_v25 = vld [vmem:[#allocation49_spill] sm:$0xff]  ;;  %v13458_v35 = vld [vmem:[#allocation38_spill] sm:$0xff] }
 0x858   :  { %6428 = vmatpush1.bf16.msra.mxu0 %v11972_v22  ;;  %6469 = vmatpush1.bf16.msra.mxu1 %v11974_v2  ;;  %v13459_v22 = vld [vmem:[#allocation39_spill] sm:$0xff]  ;;  %v13460_v2 = vld [vmem:[#allocation40_spill] sm:$0xff] }
 0x859   :  { %6429 = vmatprep.subr.bf16.mxu0 %v11978_v0  ;;  %6470 = vmatprep.subr.bf16.mxu1 %v11980_v55  ;;  %v13461_v0 = vld [vmem:[#allocation41_spill] sm:$0xff] }
 0x85a   :  { %v13462_v55 = vld [vmem:[#allocation9_spill] sm:$0xff] }
 0x85c   :  { %6430 = vmatpush1.bf16.msra.mxu0 %v11984_v33  ;;  %6471 = vmatpush1.bf16.msra.mxu1 %v11986_v30  ;;  %v13463_v33 = vld [vmem:[#allocation10_spill] sm:$0xff]  ;;  %v13464_v30 = vld [vmem:[#allocation11_spill] sm:$0xff] }
 0x85d   :  { %6431 = vmatprep.subr.bf16.mxu0 %v11990_v32  ;;  %6472 = vmatprep.subr.bf16.mxu1 %v11992_v27  ;;  %v13465_v32 = vld [vmem:[#allocation12_spill] sm:$0xff]  ;;  %v13466_v27 = vld [vmem:[#allocation13_spill] sm:$0xff] }
 0x860   :  { %6432 = vmatpush1.bf16.msra.mxu0 %v11996_v38  ;;  %6473 = vmatpush1.bf16.msra.mxu1 %v11998_v40  ;;  %v13467_v38 = vld [vmem:[#allocation14_spill] sm:$0xff]  ;;  %v13468_v40 = vld [vmem:[#allocation15_spill] sm:$0xff] }
 0x861   :  { %6433 = vmatprep.subr.bf16.mxu0 %v12002_v47  ;;  %6474 = vmatprep.subr.bf16.mxu1 %v12004_v31  ;;  %v13469_v47 = vld [vmem:[#allocation16_spill] sm:$0xff]  ;;  %v13470_v31 = vld [vmem:[#allocation17_spill] sm:$0xff] }
 0x864   :  { %6434 = vmatpush1.bf16.msra.mxu0 %v12008_v16  ;;  %6475 = vmatpush1.bf16.msra.mxu1 %v12010_v37  ;;  %v13471_v16 = vld [vmem:[#allocation18_spill] sm:$0xff]  ;;  %v13472_v37 = vld [vmem:[#allocation19_spill] sm:$0xff] }
 0x865   :  { %6435 = vmatprep.subr.bf16.mxu0 %v12014_v43  ;;  %6476 = vmatprep.subr.bf16.mxu1 %v12016_v45  ;;  %v13473_v43 = vld [vmem:[#allocation20_spill] sm:$0xff]  ;;  %v13474_v45 = vld [vmem:[#allocation21_spill] sm:$0xff] }
 0x868   :  { %6436 = vmatpush1.bf16.msra.mxu0 %v12020_v48  ;;  %6477 = vmatpush1.bf16.msra.mxu1 %v12022_v46  ;;  %v13475_v48 = vld [vmem:[#allocation23_spill] sm:$0xff]  ;;  %v13476_v46 = vld [vmem:[#allocation25_spill] sm:$0xff] }
 0x869   :  { %6939 = vmatprep.subr.bf16.mxu0 %v12033_v53  ;;  %6980 = vmatprep.subr.bf16.mxu1 %v12038_v11  ;;  %v13477_v53 = vld [vmem:[#allocation22_spill] sm:$0xff]  ;;  %v13478_v11 = vld [vmem:[#allocation24_spill] sm:$0xff] }
 0x86b   :  { %6454 = vmatmul.mubr.bf16.vlgmr.msra.gmra.mrb[76].mxu0 %v5710_v15  ;;  %6495 = vmatmul.mubr.bf16.vlgmr.msra.gmra.mrb[76].mxu1 %v5710_v15  ;;  %v13501_v15 = vld [vmem:[#allocation75_spill] sm:$0xff] }
 0x86c   :  { %6940 = vmatpush1.bf16.msra.mxu0 %v12043_v52  ;;  %6981 = vmatpush1.bf16.msra.mxu1 %v12048_v10  ;;  %v13479_v52 = vld [vmem:[#allocation26_spill] sm:$0xff]  ;;  %v13480_v10 = vld [vmem:[#allocation28_spill] sm:$0xff] }
 0x86d   :  { %6941 = vmatprep.subr.bf16.mxu0 %v13446_v60  ;;  %6982 = vmatprep.subr.bf16.mxu1 %v13447_v63  ;;  %v13502_v60 = vld [vmem:[#allocation76_spill] sm:$0xff]  ;;  %v13503_v63 = vld [vmem:[#allocation77_spill] sm:$0xff] }
 0x870   :  { %6942 = vmatpush1.bf16.msra.mxu0 %v13448_v17  ;;  %6983 = vmatpush1.bf16.msra.mxu1 %v13449_v20  ;;  %v13504_v17 = vld [vmem:[#allocation78_spill] sm:$0xff]  ;;  %v13505_v20 = vld [vmem:[#allocation79_spill] sm:$0xff] }
 0x871   :  { %6943 = vmatprep.subr.bf16.mxu0 %v13450_v21  ;;  %6984 = vmatprep.subr.bf16.mxu1 %v13451_v34  ;;  %v9467_v21 = vld [vmem:[#allocation5 + $0x4] ss:$16 sps:$4 sm:$0xff]   ;;  %v9470_v34 = vld [vmem:[#allocation5 + $0xc] ss:$16 sps:$4 sm:$0xff]  }
 0x874   :  { %6944 = vmatpush1.bf16.msra.mxu0 %v13452_v18  ;;  %6985 = vmatpush1.bf16.msra.mxu1 %v13453_v39  ;;  %v5776_v18 = vld [vmem:[%s12799_s5] sm:$0xf]  ;;  %v13506_v39 = vld [vmem:[#allocation62_spill] sm:$0xff] }
 0x875   :  { %6945 = vmatprep.subr.bf16.mxu0 %v13454_v26  ;;  %6986 = vmatprep.subr.bf16.mxu1 %v13455_v24  ;;  %v5781_v26 = vrot.slane %v5776_v18, %v13506_v39  ;;  %v13507_v24 = vld [vmem:[#allocation64_spill] sm:$0xff] }
 0x878   :  { %6946 = vmatpush1.bf16.msra.mxu0 %v13456_v29  ;;  %6987 = vmatpush1.bf16.msra.mxu1 %v13457_v25  ;;  %v5785_v29 = vrot.slane %v5776_v18, %v13507_v24 }
 0x879   :  { %6947 = vmatprep.subr.bf16.mxu0 %v13458_v35  ;;  %6988 = vmatprep.subr.bf16.mxu1 %v13459_v22 }
 0x87c   :  { %6948 = vmatpush1.bf16.msra.mxu0 %v13460_v2  ;;  %6989 = vmatpush1.bf16.msra.mxu1 %v13461_v0 }
 0x87d   :  { %6949 = vmatprep.subr.bf16.mxu0 %v13462_v55  ;;  %6990 = vmatprep.subr.bf16.mxu1 %v13463_v33 }
 0x880   :  { %6950 = vmatpush1.bf16.msra.mxu0 %v13464_v30  ;;  %6991 = vmatpush1.bf16.msra.mxu1 %v13465_v32 }
 0x881   :  { %6951 = vmatprep.subr.bf16.mxu0 %v13466_v27  ;;  %6992 = vmatprep.subr.bf16.mxu1 %v13467_v38 }
 0x884   :  { %6952 = vmatpush1.bf16.msra.mxu0 %v13468_v40  ;;  %6993 = vmatpush1.bf16.msra.mxu1 %v13469_v47  ;;  %v5793_v47 = vrot.slane %v5776_v18, %v13113_v12 }
 0x885   :  { %6953 = vmatprep.subr.bf16.mxu0 %v13470_v31  ;;  %6994 = vmatprep.subr.bf16.mxu1 %v13471_v16  ;;  %v5789_v16 = vrot.slane %v5776_v18, %v13114_v14 }
 0x888   :  { %6954 = vmatpush1.bf16.msra.mxu0 %v13472_v37  ;;  %6995 = vmatpush1.bf16.msra.mxu1 %v13473_v43 }
 0x889   :  { %6955 = vmatprep.subr.bf16.mxu0 %v13474_v45  ;;  %6996 = vmatprep.subr.bf16.mxu1 %v13475_v48 }
 0x88c   :  { %6956 = vmatpush1.bf16.msra.mxu0 %v13476_v46  ;;  %6997 = vmatpush1.bf16.msra.mxu1 %v13477_v53 }
 0x88d   :  { %6957 = vmatprep.subr.bf16.mxu0 %v13478_v11  ;;  %6998 = vmatprep.subr.bf16.mxu1 %v13479_v52 }
 0x890   :  { %6958 = vmatpush1.bf16.msra.mxu0 %v13480_v10  ;;  %6999 = vmatpush1.bf16.msra.mxu1 %v13481_v51 }
 0x891   :  { %6959 = vmatprep.subr.bf16.mxu0 %v13482_v6  ;;  %7000 = vmatprep.subr.bf16.mxu1 %v13483_v42 }
 0x894   :  { %6960 = vmatpush1.bf16.msra.mxu0 %v13484_v41  ;;  %7001 = vmatpush1.bf16.msra.mxu1 %v13485_v59  ;;  %v13508_v59 = vld [vmem:[#allocation58_spill] sm:$0xff] }
 0x895   :  { %6961 = vmatprep.subr.bf16.mxu0 %v13486_v23  ;;  %7002 = vmatprep.subr.bf16.mxu1 %v13487_v57  ;;  %v349_v23 = vadd.f32 %v13508_v59, %v10535_v13  ;;  %v13509_v57 = vld [vmem:[#allocation59_spill] sm:$0xff]  ;;  %v9488_v59 = vld [vmem:[#allocation5 + $0x6c] ss:$16 sps:$4 sm:$0xff]  }
 0x898   :  { %6962 = vmatpush1.bf16.msra.mxu0 %v13488_v50  ;;  %7003 = vmatpush1.bf16.msra.mxu1 %v13489_v44  ;;  %v430_v50 = vadd.f32 %v13509_v57, %v10538_v3  ;;  %v13510_v44 = vld [vmem:[#allocation66_spill] sm:$0xff] }
 0x899   :  { %6963 = vmatprep.subr.bf16.mxu0 %v13490_v49  ;;  %7004 = vmatprep.subr.bf16.mxu1 %v13491_v36  ;;  %v13511_v49 = vld [vmem:[#allocation60_spill] sm:$0xff] }
 0x89a   :  { %v351_v36 = vadd.f32 %v13511_v49, %v13510_v44  ;;  %v9486_v57 = vld [vmem:[#allocation5 + $0x68] ss:$16 sps:$4 sm:$0xff]   ;;  %v9494_v49 = vld [vmem:[#allocation5 + $0x8c] ss:$16 sps:$4 sm:$0xff]  }
 0x89c   :  { %6964 = vmatpush1.bf16.msra.mxu0 %v13492_v58  ;;  %7005 = vmatpush1.bf16.msra.mxu1 %v13493_v7  ;;  %v13512_v58 = vld [vmem:[#allocation61_spill] sm:$0xff] }
 0x89d   :  { %6965 = vmatprep.subr.bf16.mxu0 %v13494_v28  ;;  %7006 = vmatprep.subr.bf16.mxu1 %v13495_v56  ;;  %v432_v7 = vadd.f32 %v13512_v58, %v10544_v1  ;;  %v9497_v58 = vld [vmem:[#allocation5 + $0xa4] ss:$16 sps:$4 sm:$0xff]  }
 0x8a0   :  { %6966 = vmatpush1.bf16.msra.mxu0 %v13496_v9  ;;  %7007 = vmatpush1.bf16.msra.mxu1 %v13497_v61 }
 0x8a1   :  { %6967 = vmatprep.subr.bf16.mxu0 %v13498_v5  ;;  %7008 = vmatprep.subr.bf16.mxu1 %v13499_v19 }
 0x8a4   :  { %6968 = vmatpush1.bf16.msra.mxu0 %v13500_v54  ;;  %7009 = vmatpush1.bf16.msra.mxu1 %v13501_v15 }
 0x8a5   :  { %6969 = vmatprep.subr.bf16.mxu0 %v13502_v60  ;;  %7010 = vmatprep.subr.bf16.mxu1 %v13503_v63 }
 0x8a8   :  { %6970 = vmatpush1.bf16.msra.mxu0 %v13504_v17  ;;  %7011 = vmatpush1.bf16.msra.mxu1 %v13505_v20 }
 0x8a9   :  { %7242 = vmatprep.subr.bf16.mxu0 %v9467_v21  ;;  %7283 = vmatprep.subr.bf16.mxu1 %v9470_v34 }
 0x91e   :  { %v6152_v25 = vpop.f32.mrb[72].mxu0  ;;  %v6193_v35 = vpop.f32.mrb[72].mxu1 }
 0x91f   :  { %v6153_v22 = vadd.f32 %v6152_v25, %v5781_v26  ;;  %v6154_v2 = vpop.f32.mrb[73].mxu0  ;;  %v6195_v0 = vpop.f32.mrb[73].mxu1  ;;  %v6194_v43 = vadd.f32 %v6193_v35, %v5789_v16 }
 0x920   :  { %v6155_v55 = vadd.f32 %v6154_v2, %v5785_v29  ;;  %v6156_v33 = vpop.f32.mrb[74].mxu0  ;;  %v6197_v30 = vpop.f32.mrb[74].mxu1  ;;  %v6196_v31 = vadd.f32 %v6195_v0, %v5793_v47 }
 0x921   :  { %v8616_v32 = vmul.f32 -1.442695, %v6153_v22  ;;  %v6157_v27 = vpop.f32.mrb[75].mxu0  ;;  %v6198_v38 = vpop.f32.mrb[75].mxu1 }
 0x922   :  { %v8617_v40 = vmul.f32 -1.442695, %v6155_v55  ;;  %v8618_v37 = vmul.f32 -1.442695, %v6196_v31 }
 0x923   :  { %9817 = vpow2.f32 %v8616_v32 }
 0x924   :  { %9819 = vpow2.f32 %v8617_v40 }
 0x925   :  { %9821 = vpow2.f32 %v8618_v37 }
 0x926   :  { %9823 = vtanh.f32 %v6194_v43 }
 0x92d   :  { %v9818_v45 = vpop.eup %9817 }
 0x92e   :  { %v9820_v48 = vpop.eup %9819  ;;  %v6203_v46 = vadd.f32 1.0, %v9818_v45  ;;  %v9465_v45 = vld [vmem:[#allocation5] ss:$16 sps:$4 sm:$0xff]  }
 0x92f   :  { %v6209_v53 = vadd.f32 1.0, %v9820_v48  ;;  %v9822_v11 = vpop.eup %9821  ;;  %v9468_v48 = vld [vmem:[#allocation5 + $0x8] ss:$16 sps:$4 sm:$0xff]  }
 0x930   :  { %9825 = vrcp.f32 %v6203_v46  ;;  %v9824_v52 = vpop.eup %9823  ;;  %v6216_v42 = vadd.f32 1.0, %v9822_v11  ;;  %v9476_v11 = vld [vmem:[#allocation5 + $0x2c] ss:$16 sps:$4 sm:$0xff]  }
 0x931   :  { %9827 = vrcp.f32 %v6209_v53  ;;  %v9473_v53 = vld [vmem:[#allocation5 + $0x24] ss:$16 sps:$4 sm:$0xff]  }
 0x932   :  { %9829 = vrcp.f32 %v6216_v42  ;;  %v9480_v42 = vld [vmem:[#allocation5 + $0x48] ss:$16 sps:$4 sm:$0xff]  }
 0x93a   :  { %v9826_v10 = vpop.eup %9825 }
 0x93b   :  { %v9828_v51 = vpop.eup %9827  ;;  %v6220_v6 = vmul.f32 %v9826_v10, %v9824_v52  ;;  %v9474_v52 = vld [vmem:[#allocation5 + $0x28] ss:$16 sps:$4 sm:$0xff]   ;;  %v9479_v10 = vld [vmem:[#allocation5 + $0x44] ss:$16 sps:$4 sm:$0xff]  }
 0x93c   :  { %v6219_v41 = vmul.f32 %v9828_v51, %v12432_v62  ;;  %v9830_v18 = vpop.eup %9829  ;;  %v9482_v51 = vld [vmem:[#allocation5 + $0x4c] ss:$16 sps:$4 sm:$0xff]  }
 0x93e   :  { %v12554_v28 = vadd.f32 %v6220_v6, %v6219_v41  ;;  %v6455_v56 = vpop.f32.mrb[76].mxu0  ;;  %v6496_v9 = vpop.f32.mrb[76].mxu1  ;;  %v9477_v6 = vld [vmem:[#allocation5 + $0x40] ss:$16 sps:$4 sm:$0xff]   ;;  %v9485_v41 = vld [vmem:[#allocation5 + $0x64] ss:$16 sps:$4 sm:$0xff]  }
 0x93f   :  { %v6503_v61 = vadd.f32 %v6455_v56, %v349_v23  ;;  %v6505_v5 = vadd.f32 %v6496_v9, %v430_v50  ;;  %v6457_v62 = vpop.f32.mrb[77].mxu0  ;;  %v6498_v19 = vpop.f32.mrb[77].mxu1  ;;  %v9483_v23 = vld [vmem:[#allocation5 + $0x60] ss:$16 sps:$4 sm:$0xff]   ;;  %v9491_v50 = vld [vmem:[#allocation5 + $0x84] ss:$16 sps:$4 sm:$0xff]  }
 0x940   :  { %v6504_v54 = vadd.f32 %v6457_v62, %v351_v36  ;;  %v6506_v15 = vadd.f32 %v6498_v19, %v432_v7  ;;  %v6459_v60 = vpop.f32.mrb[78].mxu0  ;;  %v6500_v63 = vpop.f32.mrb[78].mxu1  ;;  %9831 = vtanh.f32 %v12554_v28  ;;  %v9489_v36 = vld [vmem:[#allocation5 + $0x80] ss:$16 sps:$4 sm:$0xff]   ;;  %v9500_v7 = vld [vmem:[#allocation5 + $0xac] ss:$16 sps:$4 sm:$0xff]  }
 0x941   :  { %v8651_v17 = vmul.f32 -1.442695, %v6503_v61  ;;  %v6460_v20 = vpop.f32.mrb[79].mxu0  ;;  %v6501_v21 = vpop.f32.mrb[79].mxu1  ;;  %v9495_v56 = vld [vmem:[#allocation5 + $0xa0] ss:$16 sps:$4 sm:$0xff]  }
 0x942   :  { %v8652_v34 = vmul.f32 -1.442695, %v6504_v54  ;;  %v8653_v29 = vmul.f32 -1.442695, %v6506_v15  ;;  %v9498_v9 = vld [vmem:[#allocation5 + $0xa8] ss:$16 sps:$4 sm:$0xff]  }
 0x943   :  { %9833 = vpow2.f32 %v8651_v17  ;;  %v9503_v61 = vld [vmem:[#allocation5 + $0xc4] ss:$16 sps:$4 sm:$0xff]   ;;  %v9501_v62 = vld [vmem:[#allocation5 + $0xc0] ss:$16 sps:$4 sm:$0xff]   ;;  %v9504_v19 = vld [vmem:[#allocation5 + $0xc8] ss:$16 sps:$4 sm:$0xff]  }
 0x944   :  { %9835 = vpow2.f32 %v8652_v34  ;;  %v9509_v54 = vld [vmem:[#allocation5 + $0xe4] ss:$16 sps:$4 sm:$0xff]   ;;  %v9512_v15 = vld [vmem:[#allocation5 + $0xec] ss:$16 sps:$4 sm:$0xff]   ;;  %v9507_v60 = vld [vmem:[#allocation5 + $0xe0] ss:$16 sps:$4 sm:$0xff]  }
 0x945   :  { %9837 = vpow2.f32 %v8653_v29  ;;  %v9510_v63 = vld [vmem:[#allocation5 + $0xe8] ss:$16 sps:$4 sm:$0xff]   ;;  %v9515_v17 = vld [vmem:[%s12798_s4 + $0x4] ss:$16 sps:$4 sm:$0xff]   ;;  %v9518_v20 = vld [vmem:[%s12798_s4 + $0xc] ss:$16 sps:$4 sm:$0xff]  }
 0x946   :  { %9839 = vtanh.f32 %v6505_v5  ;;  %v9506_v5 = vld [vmem:[#allocation5 + $0xcc] ss:$16 sps:$4 sm:$0xff]   ;;  %v9513_v21 = vld [vmem:[%s12798_s4] ss:$16 sps:$4 sm:$0xff]   ;;  %v9516_v34 = vld [vmem:[%s12798_s4 + $0x8] ss:$16 sps:$4 sm:$0xff]  }
 0x947   :  { %v9519_v29 = vld [vmem:[%s12798_s4 + $0x20] ss:$16 sps:$4 sm:$0xff]  }
 0x94a   :  { %v9832_v26 = vpop.eup %9831 }
 0x94b   :  { %v6223_v25 = vmul.f32 %v9832_v26, %v9830_v18  ;;  %v9521_v18 = vld [vmem:[%s12798_s4 + $0x24] ss:$16 sps:$4 sm:$0xff]   ;;  %v9524_v26 = vld [vmem:[%s12798_s4 + $0x2c] ss:$16 sps:$4 sm:$0xff]  }
 0x94d   :  { %v9834_v35 = vpop.eup %9833  ;;  %6224 = vst [vmem:[%s12800_s6 + $0x30] sm:$0xff] %v6223_v25  ;;  %v6532_v22 = vpack.c.bf16 %v6223_v25, %v6223_v25  ;;  %v9522_v25 = vld [vmem:[%s12798_s4 + $0x28] ss:$16 sps:$4 sm:$0xff]  }
 0x94e   :  { %v9836_v2 = vpop.eup %9835  ;;  %v6510_v0 = vadd.f32 1.0, %v9834_v35  ;;  %v9527_v35 = vld [vmem:[%s12798_s4 + $0x44] ss:$16 sps:$4 sm:$0xff]  }
 0x94f   :  { %v6516_v55 = vadd.f32 1.0, %v9836_v2  ;;  %6971 = vmatprep.mubr.bf16.mxu0 %v6532_v22  ;;  %7012 = vmatprep.mubr.bf16.mxu1 %v6532_v22  ;;  %v9838_v33 = vpop.eup %9837  ;;  %v9530_v22 = vld [vmem:[%s12798_s4 + $0x4c] ss:$16 sps:$4 sm:$0xff]   ;;  %v9525_v2 = vld [vmem:[%s12798_s4 + $0x40] ss:$16 sps:$4 sm:$0xff]  }
 0x950   :  { %9841 = vrcp.f32 %v6510_v0  ;;  %v9840_v30 = vpop.eup %9839  ;;  %v6523_v40 = vadd.f32 1.0, %v9838_v33  ;;  %v9528_v0 = vld [vmem:[%s12798_s4 + $0x48] ss:$16 sps:$4 sm:$0xff]   ;;  %v9536_v33 = vld [vmem:[%s12798_s4 + $0x6c] ss:$16 sps:$4 sm:$0xff]  }
 0x951   :  { %9843 = vrcp.f32 %v6516_v55  ;;  %v9533_v55 = vld [vmem:[%s12798_s4 + $0x64] ss:$16 sps:$4 sm:$0xff]  }
 0x952   :  { %9845 = vrcp.f32 %v6523_v40  ;;  %v9537_v40 = vld [vmem:[%s12798_s4 + $0x80] ss:$16 sps:$4 sm:$0xff]  }
 0x95a   :  { %v9842_v32 = vpop.eup %9841 }
 0x95b   :  { %v9844_v27 = vpop.eup %9843  ;;  %v6527_v38 = vmul.f32 %v9842_v32, %v9840_v30  ;;  %v9531_v30 = vld [vmem:[%s12798_s4 + $0x60] ss:$16 sps:$4 sm:$0xff]   ;;  %v9534_v32 = vld [vmem:[%s12798_s4 + $0x68] ss:$16 sps:$4 sm:$0xff]  }
 0x95c   :  { %v6526_v47 = vmul.f32 %v9844_v27, %v12439_v8  ;;  %v9846_v16 = vpop.eup %9845  ;;  %v9471_v8 = vld [vmem:[#allocation5 + $0x20] ss:$16 sps:$4 sm:$0xff]   ;;  %v9539_v27 = vld [vmem:[%s12798_s4 + $0x84] ss:$16 sps:$4 sm:$0xff]  }
 0x95e   :  { %v12561_v31 = vadd.f32 %v6527_v38, %v6526_v47  ;;  %v9542_v38 = vld [vmem:[%s12798_s4 + $0x8c] ss:$16 sps:$4 sm:$0xff]   ;;  %v9540_v47 = vld [vmem:[%s12798_s4 + $0x88] ss:$16 sps:$4 sm:$0xff]  }
 0x960   :  { %9847 = vtanh.f32 %v12561_v31 }
 0x96a   :  { %v9848_v37 = vpop.eup %9847 }
 0x96b   :  { %v6530_v43 = vmul.f32 %v9848_v37, %v9846_v16  ;;  %v9545_v16 = vld [vmem:[%s12798_s4 + $0xa4] ss:$16 sps:$4 sm:$0xff]   ;;  %v9548_v37 = vld [vmem:[%s12798_s4 + $0xac] ss:$16 sps:$4 sm:$0xff]  }
 0x96d   :  { %v12564_v46 = vpack.c.bf16 %v6530_v43, %v6530_v43  ;;  %v9543_v43 = vld [vmem:[%s12798_s4 + $0xa0] ss:$16 sps:$4 sm:$0xff]  }
 0x96f   :  { %6972 = vmatmul.mubr.bf16.vlgmr.msra.gmra.mrb[80].mxu0 %v12564_v46  ;;  %7013 = vmatmul.mubr.bf16.vlgmr.msra.gmra.mrb[80].mxu1 %v12564_v46 }
 0x970   :  { %7243 = vmatpush1.bf16.msra.mxu0 %v9465_v45  ;;  %7284 = vmatpush1.bf16.msra.mxu1 %v9468_v48  ;;  %v9546_v45 = vld [vmem:[%s12798_s4 + $0xa8] ss:$16 sps:$4 sm:$0xff]   ;;  %v9551_v48 = vld [vmem:[%s12798_s4 + $0xc4] ss:$16 sps:$4 sm:$0xff]  }
 0x971   :  { %7244 = vmatprep.subr.bf16.mxu0 %v9473_v53  ;;  %7285 = vmatprep.subr.bf16.mxu1 %v9476_v11  ;;  %v9549_v53 = vld [vmem:[%s12798_s4 + $0xc0] ss:$16 sps:$4 sm:$0xff]   ;;  %v9552_v11 = vld [vmem:[%s12798_s4 + $0xc8] ss:$16 sps:$4 sm:$0xff]  }
 0x972   :  { %7274 = vmatprep.mubr.bf16.mxu0 %v13085_v4  ;;  %7315 = vmatprep.mubr.bf16.mxu1 %v13085_v4  ;;  %v9492_v4 = vld [vmem:[#allocation5 + $0x88] ss:$16 sps:$4 sm:$0xff]  }
 0x974   :  { %7245 = vmatpush1.bf16.msra.mxu0 %v9471_v8  ;;  %7286 = vmatpush1.bf16.msra.mxu1 %v9474_v52  ;;  %v9557_v8 = vld [vmem:[%s12798_s4 + $0xe4] ss:$16 sps:$4 sm:$0xff]   ;;  %v9560_v52 = vld [vmem:[%s12798_s4 + $0xec] ss:$16 sps:$4 sm:$0xff]  }
 0x975   :  { %7246 = vmatprep.subr.bf16.mxu0 %v9479_v10  ;;  %7287 = vmatprep.subr.bf16.mxu1 %v9482_v51  ;;  %v9555_v10 = vld [vmem:[%s12798_s4 + $0xe0] ss:$16 sps:$4 sm:$0xff]   ;;  %v9558_v51 = vld [vmem:[%s12798_s4 + $0xe8] ss:$16 sps:$4 sm:$0xff]  }
 0x978   :  { %7247 = vmatpush1.bf16.msra.mxu0 %v9477_v6  ;;  %7288 = vmatpush1.bf16.msra.mxu1 %v9480_v42  ;;  %v9563_v6 = vld [vmem:[%s12798_s4 + $0x104] ss:$16 sps:$4 sm:$0xff]   ;;  %v9566_v42 = vld [vmem:[%s12798_s4 + $0x10c] ss:$16 sps:$4 sm:$0xff]  }
 0x979   :  { %7248 = vmatprep.subr.bf16.mxu0 %v9485_v41  ;;  %7289 = vmatprep.subr.bf16.mxu1 %v9488_v59  ;;  %v9561_v41 = vld [vmem:[%s12798_s4 + $0x100] ss:$16 sps:$4 sm:$0xff]   ;;  %v9564_v59 = vld [vmem:[%s12798_s4 + $0x108] ss:$16 sps:$4 sm:$0xff]  }
 0x97c   :  { %7249 = vmatpush1.bf16.msra.mxu0 %v9483_v23  ;;  %7290 = vmatpush1.bf16.msra.mxu1 %v9486_v57  ;;  %v9569_v23 = vld [vmem:[%s12798_s4 + $0x124] ss:$16 sps:$4 sm:$0xff]   ;;  %v9572_v57 = vld [vmem:[%s12798_s4 + $0x12c] ss:$16 sps:$4 sm:$0xff]  }
 0x97d   :  { %7250 = vmatprep.subr.bf16.mxu0 %v9491_v50  ;;  %7291 = vmatprep.subr.bf16.mxu1 %v9494_v49  ;;  %v9567_v50 = vld [vmem:[%s12798_s4 + $0x120] ss:$16 sps:$4 sm:$0xff]   ;;  %v9570_v49 = vld [vmem:[%s12798_s4 + $0x128] ss:$16 sps:$4 sm:$0xff]  }
 0x980   :  { %7251 = vmatpush1.bf16.msra.mxu0 %v9489_v36  ;;  %7292 = vmatpush1.bf16.msra.mxu1 %v9492_v4  ;;  %v9575_v36 = vld [vmem:[%s12798_s4 + $0x144] ss:$16 sps:$4 sm:$0xff]   ;;  %v9578_v4 = vld [vmem:[%s12798_s4 + $0x14c] ss:$16 sps:$4 sm:$0xff]  }
 0x981   :  { %7252 = vmatprep.subr.bf16.mxu0 %v9497_v58  ;;  %7293 = vmatprep.subr.bf16.mxu1 %v9500_v7  ;;  %v9573_v58 = vld [vmem:[%s12798_s4 + $0x140] ss:$16 sps:$4 sm:$0xff]   ;;  %v9576_v7 = vld [vmem:[%s12798_s4 + $0x148] ss:$16 sps:$4 sm:$0xff]  }
 0x984   :  { %7253 = vmatpush1.bf16.msra.mxu0 %v9495_v56  ;;  %7294 = vmatpush1.bf16.msra.mxu1 %v9498_v9  ;;  %v9581_v56 = vld [vmem:[%s12798_s4 + $0x164] ss:$16 sps:$4 sm:$0xff]   ;;  %v9584_v9 = vld [vmem:[%s12798_s4 + $0x16c] ss:$16 sps:$4 sm:$0xff]  }
 0x985   :  { %7254 = vmatprep.subr.bf16.mxu0 %v9503_v61  ;;  %7295 = vmatprep.subr.bf16.mxu1 %v9506_v5  ;;  %v9579_v61 = vld [vmem:[%s12798_s4 + $0x160] ss:$16 sps:$4 sm:$0xff]   ;;  %v9582_v5 = vld [vmem:[%s12798_s4 + $0x168] ss:$16 sps:$4 sm:$0xff]  }
 0x988   :  { %7255 = vmatpush1.bf16.msra.mxu0 %v9501_v62  ;;  %7296 = vmatpush1.bf16.msra.mxu1 %v9504_v19  ;;  %v9587_v62 = vld [vmem:[%s12798_s4 + $0x184] ss:$16 sps:$4 sm:$0xff]   ;;  %v9590_v19 = vld [vmem:[%s12798_s4 + $0x18c] ss:$16 sps:$4 sm:$0xff]  }
 0x989   :  { %7256 = vmatprep.subr.bf16.mxu0 %v9509_v54  ;;  %7297 = vmatprep.subr.bf16.mxu1 %v9512_v15  ;;  %v9585_v54 = vld [vmem:[%s12798_s4 + $0x180] ss:$16 sps:$4 sm:$0xff]   ;;  %v9588_v15 = vld [vmem:[%s12798_s4 + $0x188] ss:$16 sps:$4 sm:$0xff]  }
 0x98c   :  { %7257 = vmatpush1.bf16.msra.mxu0 %v9507_v60  ;;  %7298 = vmatpush1.bf16.msra.mxu1 %v9510_v63  ;;  %v9593_v60 = vld [vmem:[%s12798_s4 + $0x1a4] ss:$16 sps:$4 sm:$0xff]   ;;  %v9591_v63 = vld [vmem:[%s12798_s4 + $0x1a0] ss:$16 sps:$4 sm:$0xff]  }
 0x98d   :  { %7760 = vmatprep.subr.bf16.mxu0 %v9515_v17  ;;  %7801 = vmatprep.subr.bf16.mxu1 %v9518_v20  ;;  %v9594_v17 = vld [vmem:[%s12798_s4 + $0x1a8] ss:$16 sps:$4 sm:$0xff]   ;;  %v9596_v20 = vld [vmem:[%s12798_s4 + $0x1ac] ss:$16 sps:$4 sm:$0xff]  }
 0x98f   :  { %7275 = vmatmul.mubr.bf16.vlgmr.msra.gmra.mrb[16].mxu0 %v12564_v46  ;;  %7316 = vmatmul.mubr.bf16.vlgmr.msra.gmra.mrb[16].mxu1 %v12564_v46  ;;  %v9554_v46 = vld [vmem:[%s12798_s4 + $0xcc] ss:$16 sps:$4 sm:$0xff]  }
 0x990   :  { %7761 = vmatpush1.bf16.msra.mxu0 %v9513_v21  ;;  %7802 = vmatpush1.bf16.msra.mxu1 %v9516_v34  ;;  %v9599_v21 = vld [vmem:[%s12798_s4 + $0x1c4] ss:$16 sps:$4 sm:$0xff]   ;;  %v9602_v34 = vld [vmem:[%s12798_s4 + $0x1cc] ss:$16 sps:$4 sm:$0xff]  }
 0x991   :  { %7762 = vmatprep.subr.bf16.mxu0 %v9521_v18  ;;  %7803 = vmatprep.subr.bf16.mxu1 %v9524_v26  ;;  %v9597_v18 = vld [vmem:[%s12798_s4 + $0x1c0] ss:$16 sps:$4 sm:$0xff]   ;;  %v9600_v26 = vld [vmem:[%s12798_s4 + $0x1c8] ss:$16 sps:$4 sm:$0xff]  }
 0x994   :  { %7763 = vmatpush1.bf16.msra.mxu0 %v9519_v29  ;;  %7804 = vmatpush1.bf16.msra.mxu1 %v9522_v25  ;;  %v9605_v29 = vld [vmem:[%s12798_s4 + $0x1e4] ss:$16 sps:$4 sm:$0xff]   ;;  %v9608_v25 = vld [vmem:[%s12798_s4 + $0x1ec] ss:$16 sps:$4 sm:$0xff]  }
 0x995   :  { %7764 = vmatprep.subr.bf16.mxu0 %v9527_v35  ;;  %7805 = vmatprep.subr.bf16.mxu1 %v9530_v22  ;;  %v9603_v35 = vld [vmem:[%s12798_s4 + $0x1e0] ss:$16 sps:$4 sm:$0xff]   ;;  %v9606_v22 = vld [vmem:[%s12798_s4 + $0x1e8] ss:$16 sps:$4 sm:$0xff]  }
 0x998   :  { %7765 = vmatpush1.bf16.msra.mxu0 %v9525_v2  ;;  %7806 = vmatpush1.bf16.msra.mxu1 %v9528_v0  ;;  %v6597_v2 = vld [vmem:[%s12799_s5] sm:$0xf] }
 0x999   :  { %7766 = vmatprep.subr.bf16.mxu0 %v9533_v55  ;;  %7807 = vmatprep.subr.bf16.mxu1 %v9536_v33  ;;  %v6602_v0 = vrot.slane %v6597_v2, %v13506_v39  ;;  %v6606_v55 = vrot.slane %v6597_v2, %v13507_v24 }
 0x99c   :  { %7767 = vmatpush1.bf16.msra.mxu0 %v9531_v30  ;;  %7808 = vmatpush1.bf16.msra.mxu1 %v9534_v32 }
 0x99d   :  { %7768 = vmatprep.subr.bf16.mxu0 %v9539_v27  ;;  %7809 = vmatprep.subr.bf16.mxu1 %v9542_v38 }
 0x9a0   :  { %7769 = vmatpush1.bf16.msra.mxu0 %v9537_v40  ;;  %7810 = vmatpush1.bf16.msra.mxu1 %v9540_v47 }
 0x9a1   :  { %7770 = vmatprep.subr.bf16.mxu0 %v9545_v16  ;;  %7811 = vmatprep.subr.bf16.mxu1 %v9548_v37 }
 0x9a4   :  { %7771 = vmatpush1.bf16.msra.mxu0 %v9543_v43  ;;  %7812 = vmatpush1.bf16.msra.mxu1 %v9546_v45 }
 0x9a5   :  { %7772 = vmatprep.subr.bf16.mxu0 %v9551_v48  ;;  %7813 = vmatprep.subr.bf16.mxu1 %v9554_v46  ;;  %v6614_v46 = vrot.slane %v6597_v2, %v13113_v12 }
 0x9a8   :  { %7773 = vmatpush1.bf16.msra.mxu0 %v9549_v53  ;;  %7814 = vmatpush1.bf16.msra.mxu1 %v9552_v11  ;;  %v6610_v11 = vrot.slane %v6597_v2, %v13114_v14 }
 0x9a9   :  { %7774 = vmatprep.subr.bf16.mxu0 %v9557_v8  ;;  %7815 = vmatprep.subr.bf16.mxu1 %v9560_v52 }
 0x9ac   :  { %7775 = vmatpush1.bf16.msra.mxu0 %v9555_v10  ;;  %7816 = vmatpush1.bf16.msra.mxu1 %v9558_v51 }
 0x9ad   :  { %7776 = vmatprep.subr.bf16.mxu0 %v9563_v6  ;;  %7817 = vmatprep.subr.bf16.mxu1 %v9566_v42 }
 0x9b0   :  { %7777 = vmatpush1.bf16.msra.mxu0 %v9561_v41  ;;  %7818 = vmatpush1.bf16.msra.mxu1 %v9564_v59 }
 0x9b1   :  { %7778 = vmatprep.subr.bf16.mxu0 %v9569_v23  ;;  %7819 = vmatprep.subr.bf16.mxu1 %v9572_v57 }
 0x9b4   :  { %7779 = vmatpush1.bf16.msra.mxu0 %v9567_v50  ;;  %7820 = vmatpush1.bf16.msra.mxu1 %v9570_v49 }
 0x9b5   :  { %7780 = vmatprep.subr.bf16.mxu0 %v9575_v36  ;;  %7821 = vmatprep.subr.bf16.mxu1 %v9578_v4 }
 0x9b8   :  { %7781 = vmatpush1.bf16.msra.mxu0 %v9573_v58  ;;  %7822 = vmatpush1.bf16.msra.mxu1 %v9576_v7 }
 0x9b9   :  { %7782 = vmatprep.subr.bf16.mxu0 %v9581_v56  ;;  %7823 = vmatprep.subr.bf16.mxu1 %v9584_v9 }
 0x9bc   :  { %7783 = vmatpush1.bf16.msra.mxu0 %v9579_v61  ;;  %7824 = vmatpush1.bf16.msra.mxu1 %v9582_v5 }
 0x9bd   :  { %7784 = vmatprep.subr.bf16.mxu0 %v9587_v62  ;;  %7825 = vmatprep.subr.bf16.mxu1 %v9590_v19 }
 0x9c0   :  { %7785 = vmatpush1.bf16.msra.mxu0 %v9585_v54  ;;  %7826 = vmatpush1.bf16.msra.mxu1 %v9588_v15 }
 0x9c1   :  { %7786 = vmatprep.subr.bf16.mxu0 %v9593_v60  ;;  %7827 = vmatprep.subr.bf16.mxu1 %v9596_v20 }
 0x9c4   :  { %7787 = vmatpush1.bf16.msra.mxu0 %v9591_v63  ;;  %7828 = vmatpush1.bf16.msra.mxu1 %v9594_v17 }
 0x9c5   :  { %7788 = vmatprep.subr.bf16.mxu0 %v9599_v21  ;;  %7829 = vmatprep.subr.bf16.mxu1 %v9602_v34 }
 0x9c8   :  { %7789 = vmatpush1.bf16.msra.mxu0 %v9597_v18  ;;  %7830 = vmatpush1.bf16.msra.mxu1 %v9600_v26 }
 0x9c9   :  { %7790 = vmatprep.subr.bf16.mxu0 %v9605_v29  ;;  %7831 = vmatprep.subr.bf16.mxu1 %v9608_v25 }
 0x9cc   :  { %7791 = vmatpush1.bf16.msra.mxu0 %v9603_v35  ;;  %7832 = vmatpush1.bf16.msra.mxu1 %v9606_v22 }
 0xa42   :  { %v6973_v33 = vpop.f32.mrb[80].mxu0  ;;  %v7014_v30 = vpop.f32.mrb[80].mxu1 }
 0xa43   :  { %v6974_v32 = vadd.f32 %v6973_v33, %v6602_v0  ;;  %v6975_v27 = vpop.f32.mrb[81].mxu0  ;;  %v7016_v38 = vpop.f32.mrb[81].mxu1  ;;  %v7015_v52 = vadd.f32 %v7014_v30, %v6610_v11 }
 0xa44   :  { %v6976_v40 = vadd.f32 %v6975_v27, %v6606_v55  ;;  %v6977_v47 = vpop.f32.mrb[82].mxu0  ;;  %v7018_v16 = vpop.f32.mrb[82].mxu1  ;;  %v7017_v53 = vadd.f32 %v7016_v38, %v6614_v46 }
 0xa45   :  { %v8718_v37 = vmul.f32 -1.442695, %v6974_v32  ;;  %v6978_v43 = vpop.f32.mrb[83].mxu0  ;;  %v7019_v45 = vpop.f32.mrb[83].mxu1 }
 0xa46   :  { %v8719_v48 = vmul.f32 -1.442695, %v6976_v40  ;;  %v8720_v8 = vmul.f32 -1.442695, %v7017_v53  ;;  %v7418_v40 = vld [vmem:[%s12799_s5] sm:$0xf] }
 0xa47   :  { %9849 = vpow2.f32 %v8718_v37  ;;  %v7423_v47 = vrot.slane %v7418_v40, %v13506_v39  ;;  %v7427_v16 = vrot.slane %v7418_v40, %v13507_v24  ;;  %v7431_v39 = vrot.slane %v7418_v40, %v13114_v14 }
 0xa48   :  { %9851 = vpow2.f32 %v8719_v48 }
 0xa49   :  { %9853 = vpow2.f32 %v8720_v8 }
 0xa4a   :  { %9855 = vtanh.f32 %v7015_v52 }
 0xa51   :  { %v9850_v10 = vpop.eup %9849 }
 0xa52   :  { %v9852_v51 = vpop.eup %9851  ;;  %v7024_v6 = vadd.f32 1.0, %v9850_v10 }
 0xa53   :  { %v7030_v42 = vadd.f32 1.0, %v9852_v51  ;;  %v9854_v41 = vpop.eup %9853 }
 0xa54   :  { %9857 = vrcp.f32 %v7024_v6  ;;  %v9856_v59 = vpop.eup %9855  ;;  %v7037_v49 = vadd.f32 1.0, %v9854_v41  ;;  %v7435_v6 = vrot.slane %v7418_v40, %v13113_v12 }
 0xa55   :  { %9859 = vrcp.f32 %v7030_v42 }
 0xa56   :  { %9861 = vrcp.f32 %v7037_v49 }
 0xa5e   :  { %v9858_v23 = vpop.eup %9857 }
 0xa5f   :  { %v9860_v57 = vpop.eup %9859  ;;  %v7041_v50 = vmul.f32 %v9858_v23, %v9856_v59 }
 0xa60   :  { %v7040_v36 = vmul.f32 %v9860_v57, %v12554_v28  ;;  %v9862_v17 = vpop.eup %9861 }
 0xa62   :  { %v12772_v4 = vadd.f32 %v7041_v50, %v7040_v36  ;;  %v7276_v58 = vpop.f32.mrb[16].mxu0  ;;  %v7317_v7 = vpop.f32.mrb[16].mxu1 }
 0xa63   :  { %v8823_v56 = vadd.f32 %v7276_v58, %v10535_v13  ;;  %v7278_v9 = vpop.f32.mrb[17].mxu0  ;;  %v7319_v61 = vpop.f32.mrb[17].mxu1  ;;  %v8825_v13 = vadd.f32 %v7317_v7, %v10538_v3 }
 0xa64   :  { %v8824_v5 = vadd.f32 %v7278_v9, %v13510_v44  ;;  %v7280_v62 = vpop.f32.mrb[18].mxu0  ;;  %v7321_v19 = vpop.f32.mrb[18].mxu1  ;;  %9863 = vtanh.f32 %v12772_v4  ;;  %v8826_v28 = vadd.f32 %v7319_v61, %v10544_v1 }
 0xa65   :  { %v8753_v54 = vmul.f32 -1.442695, %v8823_v56  ;;  %v7281_v15 = vpop.f32.mrb[19].mxu0  ;;  %v7322_v60 = vpop.f32.mrb[19].mxu1 }
 0xa66   :  { %v8754_v63 = vmul.f32 -1.442695, %v8824_v5  ;;  %v8755_v21 = vmul.f32 -1.442695, %v8826_v28 }
 0xa67   :  { %9865 = vpow2.f32 %v8753_v54 }
 0xa68   :  { %9867 = vpow2.f32 %v8754_v63 }
 0xa69   :  { %9869 = vpow2.f32 %v8755_v21 }
 0xa6a   :  { %9871 = vtanh.f32 %v8825_v13 }
 0xa6e   :  { %v9864_v20 = vpop.eup %9863 }
 0xa6f   :  { %v7044_v34 = vmul.f32 %v9864_v20, %v9862_v17 }
 0xa71   :  { %v9866_v18 = vpop.eup %9865  ;;  %7045 = vst [vmem:[%s12800_s6 + $0x38] sm:$0xff] %v7044_v34  ;;  %v7353_v44 = vpack.c.bf16 %v7044_v34, %v7044_v34 }
 0xa72   :  { %v9868_v26 = vpop.eup %9867  ;;  %v7331_v29 = vadd.f32 1.0, %v9866_v18 }
 0xa73   :  { %v7337_v25 = vadd.f32 1.0, %v9868_v26  ;;  %7792 = vmatprep.mubr.bf16.mxu0 %v7353_v44  ;;  %7833 = vmatprep.mubr.bf16.mxu1 %v7353_v44  ;;  %v9870_v1 = vpop.eup %9869 }
 0xa74   :  { %9873 = vrcp.f32 %v7331_v29  ;;  %v9872_v35 = vpop.eup %9871  ;;  %v7344_v0 = vadd.f32 1.0, %v9870_v1 }
 0xa75   :  { %9875 = vrcp.f32 %v7337_v25 }
 0xa76   :  { %9877 = vrcp.f32 %v7344_v0 }
 0xa7e   :  { %v9874_v22 = vpop.eup %9873 }
 0xa7f   :  { %v9876_v3 = vpop.eup %9875  ;;  %v7348_v2 = vmul.f32 %v9874_v22, %v9872_v35 }
 0xa80   :  { %v7347_v55 = vmul.f32 %v9876_v3, %v12561_v31  ;;  %v9878_v30 = vpop.eup %9877 }
 0xa82   :  { %v7349_v33 = vadd.f32 %v7348_v2, %v7347_v55 }
 0xa84   :  { %9879 = vtanh.f32 %v7349_v33 }
 0xa8e   :  { %v9880_v32 = vpop.eup %9879 }
 0xa8f   :  { %v7351_v27 = vmul.f32 %v9880_v32, %v9878_v30 }
 0xa91   :  { %v7352_v38 = vpack.c.bf16 %v7351_v27, %v7351_v27 }
 0xa93   :  { %7793 = vmatmul.mubr.bf16.vlgmr.msra.gmra.mrb[84].mxu0 %v7352_v38  ;;  %7834 = vmatmul.mubr.bf16.vlgmr.msra.gmra.mrb[84].mxu1 %v7352_v38 }
 0xb66   :  { %v7794_v37 = vpop.f32.mrb[84].mxu0  ;;  %v7835_v43 = vpop.f32.mrb[84].mxu1 }
 0xb67   :  { %v7795_v31 = vadd.f32 %v7794_v37, %v7423_v47  ;;  %v7796_v45 = vpop.f32.mrb[85].mxu0  ;;  %v7837_v48 = vpop.f32.mrb[85].mxu1  ;;  %v7836_v41 = vadd.f32 %v7835_v43, %v7431_v39 }
 0xb68   :  { %v7797_v46 = vadd.f32 %v7796_v45, %v7427_v16  ;;  %v7798_v53 = vpop.f32.mrb[86].mxu0  ;;  %v7839_v11 = vpop.f32.mrb[86].mxu1  ;;  %v7838_v42 = vadd.f32 %v7837_v48, %v7435_v6 }
 0xb69   :  { %v8820_v8 = vmul.f32 -1.442695, %v7795_v31  ;;  %v7799_v52 = vpop.f32.mrb[87].mxu0  ;;  %v7840_v10 = vpop.f32.mrb[87].mxu1 }
 0xb6a   :  { %v8821_v51 = vmul.f32 -1.442695, %v7797_v46  ;;  %v8822_v24 = vmul.f32 -1.442695, %v7838_v42 }
 0xb6b   :  { %9881 = vpow2.f32 %v8820_v8 }
 0xb6c   :  { %9883 = vpow2.f32 %v8821_v51 }
 0xb6d   :  { %9885 = vpow2.f32 %v8822_v24 }
 0xb6e   :  { %9887 = vtanh.f32 %v7836_v41 }
 0xb75   :  { %v9882_v59 = vpop.eup %9881 }
 0xb76   :  { %v9884_v23 = vpop.eup %9883  ;;  %v7845_v57 = vadd.f32 1.0, %v9882_v59 }
 0xb77   :  { %v7851_v50 = vadd.f32 1.0, %v9884_v23  ;;  %v9886_v49 = vpop.eup %9885 }
 0xb78   :  { %9889 = vrcp.f32 %v7845_v57  ;;  %v9888_v36 = vpop.eup %9887  ;;  %v7858_v56 = vadd.f32 1.0, %v9886_v49 }
 0xb79   :  { %9891 = vrcp.f32 %v7851_v50 }
 0xb7a   :  { %9893 = vrcp.f32 %v7858_v56 }
 0xb82   :  { %v9890_v58 = vpop.eup %9889 }
 0xb83   :  { %v9892_v7 = vpop.eup %9891  ;;  %v7862_v12 = vmul.f32 %v9890_v58, %v9888_v36 }
 0xb84   :  { %v7861_v9 = vmul.f32 %v9892_v7, %v12772_v4  ;;  %v9894_v14 = vpop.eup %9893 }
 0xb86   :  { %v7863_v61 = vadd.f32 %v7862_v12, %v7861_v9 }
 0xb88   :  { %9895 = vtanh.f32 %v7863_v61 }
 0xb92   :  { %v9896_v5 = vpop.eup %9895 }
 0xb93   :  { %v7865_v62 = vmul.f32 %v9896_v5, %v9894_v14 }
 0xb95   :  { %7866 = vst [vmem:[%s12800_s6 + $0x40] sm:$0xff] %v7865_v62 }
 0xb96   :  { %7871 = vsyncpa [#allocation4], 1 }
 0xb97   :  { %7872 = vsyncpa [#allocation6], 1 }

</bundles_post_ra>
